<compile_context>
chip_gen: v5e
topology: v5e:2x2
jax: 0.10.0
libtpu: 0.0.40
codegen_flags: <defaults>
</compile_context>

<pallas_src>
import numpy as np
import jax
import jax.numpy as jnp
from jax.experimental import pallas as pl
from jax.experimental.pallas import tpu as pltpu

# ---------------- scaled-down config (real model: C=1024, hidden=3072) ----------------
IMAGE_DIM_OUT = 32          # C          -> 4*C = 128 (lane-dense K)
HIDDEN_SIZE = 128           # dim_projection (multiple of 128 -> lane-dense output stores)
VOCAB_SIZE = 128
H_FEAT = 24                 # base_feat_height/width; fixed by the hard-coded 12x12 HD reshape
MAX_INPUT_ID = int(1e9)


# ---------------- Pallas kernel: 2-layer MLP projection (Linear -> GELU -> Linear) ----
def _erf_approx(x):
    # Abramowitz & Stegun 7.1.26 (nn.GELU() is exact-erf GELU; erf has no guaranteed
    # Mosaic lowering, so it is expanded from exp/abs/where in-kernel).
    a1, a2, a3, a4, a5 = 0.254829592, -0.284496736, 1.421413741, -1.453152027, 1.061405429
    p = 0.3275911
    ax = jnp.abs(x)
    # divide -> EUP approximate reciprocal (frees the VALU during MXU-bound steps)
    t = pl.reciprocal(1.0 + p * ax, approx=True)
    poly = ((((a5 * t + a4) * t + a3) * t + a2) * t + a1) * t
    y = 1.0 - poly * jnp.exp(-ax * ax)
    return jnp.where(x >= 0, y, -y)


def _gelu_exact(x):
    return 0.5 * x * (1.0 + _erf_approx(x * 0.7071067811865475244))


def _img_projection_kernel(x_ref, w1_ref, b1_ref, w2_ref, b2_ref, o_ref):
    x = x_ref[...]                                                        # (tm, 4C) bf16
    # MXU in bf16, accumulate in f32
    h = jnp.dot(x, w1_ref[...], preferred_element_type=jnp.float32)      # (tm, N1) f32
    h = h + b1_ref[...]
    h = _gelu_exact(h)                                                    # f32 (VPU/EUP)
    y = jnp.dot(h.astype(w2_ref.dtype), w2_ref[...],
                preferred_element_type=jnp.float32)                       # (tm, N2) f32
    y = y + b2_ref[...]
    o_ref[...] = y.astype(o_ref.dtype)


def img_projection_pallas(x, w1, b1, w2, b2, tm=256):
    """x: (L, 4C) f32 image tokens -> (L, hidden) f32 projected tokens.

    tm=256 matches the v6e/v7x 256x256 MXU; use tm=128 on v5e.
    """
    L, K = x.shape
    N1 = w1.shape[1]
    N2 = w2.shape[1]
    n_tiles = pl.cdiv(L, tm)

    # bf16 for the MXU operands, f32 for biases / accumulation / output.
    x_bf = x.astype(jnp.bfloat16)
    w1_bf = w1.astype(jnp.bfloat16)
    w2_bf = w2.astype(jnp.bfloat16)
    b1_2d = b1.reshape(1, N1).astype(jnp.float32)
    b2_2d = b2.reshape(1, N2).astype(jnp.float32)
    out_dtype = x.dtype

    # Scoped-VMEM budget: bf16 weights (single-buffered) + double-buffered x/out tiles.
    vmem_bytes = (2 * tm * K * 2                 # x tiles (bf16, 2-deep)
                  + 2 * tm * N2 * 4              # out tiles (f32, 2-deep)
                  + (K * N1 + N1 * N2) * 2       # W1 + W2 (bf16, 1-deep)
                  + (N1 + N2) * 4)               # biases
    vmem_limit = int(min(max(2 * vmem_bytes, 32 << 20), 100 << 20))

    cost = pl.CostEstimate(
        flops=2 * L * K * N1 + 2 * L * N1 * N2,
        transcendentals=L * N1,                  # one exp per GELU element
        bytes_accessed=(L * K * 2 + K * N1 * 2 + N1 * N2 * 2
                        + (N1 + N2) * 4 + L * N2 * 4),
    )

    def _build(single_buffer_weights):
        if single_buffer_weights:
            # Weights/biases have a constant index_map -> single-buffer them.
            w_kw = dict(pipeline_mode=pl.Buffered(1))
        else:
            w_kw = {}
        in_specs = [
            pl.BlockSpec((tm, K), lambda i: (i, 0)),            # token tile (streamed)
            pl.BlockSpec((K, N1), lambda i: (0, 0), **w_kw),    # W1 (resident)
            pl.BlockSpec((1, N1), lambda i: (0, 0), **w_kw),    # b1
            pl.BlockSpec((N1, N2), lambda i: (0, 0), **w_kw),   # W2 (resident)
            pl.BlockSpec((1, N2), lambda i: (0, 0), **w_kw),    # b2
        ]
        return pl.pallas_call(
            _img_projection_kernel,
            out_shape=jax.ShapeDtypeStruct((L, N2), out_dtype),
            grid_spec=pltpu.PrefetchScalarGridSpec(
                num_scalar_prefetch=0,
                grid=(n_tiles,),                                 # ragged last tile masked
                in_specs=in_specs,
                out_specs=pl.BlockSpec((tm, N2), lambda i: (i, 0)),
            ),
            compiler_params=pltpu.CompilerParams(
                dimension_semantics=("parallel",),               # megacore over L tiles
                vmem_limit_bytes=vmem_limit,
            ),
            cost_estimate=cost,
        )

    args = (x_bf, w1_bf, b1_2d, w2_bf, b2_2d)
    try:
        out = _build(True)(*args)
        out = jax.block_until_ready(out)
    except Exception:
        # Fallback: default (double-buffered) weight specs if Buffered(1) is rejected.
        out = _build(False)(*args)
    return out


# ---------------- glue: HD transform with learnable separators ------------------------
def hd_transform_single(feats_one_img, h, w, glb_GN, sub_GN, C, H):
    """feats_one_img: (num_crops, H*H, C) patch features of one image (crop 0 = global)."""
    B_ = h * w
    glb = feats_one_img[:1]                                               # (1, H*H, C)
    glb_img = glb.reshape(1, H // 2, 2, H // 2, 2, C)
    glb_img = glb_img.transpose(0, 1, 3, 2, 4, 5).reshape(1, H // 2, H // 2, 4 * C)
    temp_glb_GN = jnp.tile(sub_GN, (1, H // 2, 1, 1))
    glb_img = jnp.concatenate([glb_img, temp_glb_GN], axis=2).reshape(1, -1, 4 * C)

    sub = feats_one_img[1:][:B_]
    sub_img = sub.reshape(B_, H // 2, 2, H // 2, 2, C)
    sub_img = sub_img.transpose(0, 1, 3, 2, 4, 5).reshape(B_, -1, 4 * C)
    sub_img = sub_img.reshape(1, h, w, 12, 12, -1).transpose(0, 1, 3, 2, 4, 5)
    sub_img = sub_img.reshape(1, h * 12, w * 12, 4 * C)
    temp_sub_GN = jnp.tile(sub_GN, (1, h * 12, 1, 1))
    sub_img = jnp.concatenate([sub_img, temp_sub_GN], axis=2).reshape(1, -1, 4 * C)

    # hd_transform_order == 'glb_sub'
    out = jnp.concatenate([glb_img, glb_GN, sub_img], axis=1)             # (1, L, 4C)
    return out[0]


# ---------------- full forward --------------------------------------------------------
def phi3_hd_image_embedding_forward(params, input_ids, img_features, img_sizes,
                                    positions=None):
    """
    input_ids:    (B, S) int32; image placeholder tokens are negative (-MAX_INPUT_ID < id < 0)
    img_features: (bs, num_crops, 1 + H*H, C) f32  -- stand-in for CLIP hidden_states[-2]
    img_sizes:    (h_pixels, w_pixels)
    positions:    optional host-precomputed (n, 2) array of placeholder positions
                  (torch.nonzero equivalent). If None it is computed here, which forces a
                  device->host sync of input_ids.
    """
    C, H = IMAGE_DIM_OUT, H_FEAT
    ids2d = input_ids.reshape(-1, input_ids.shape[-1])

    if positions is None:
        # TODO(synk): torch.nonzero has no in-kernel equivalent; host argwhere fallback.
        ids_host = np.asarray(ids2d)
        positions = np.argwhere((ids_host < 0) & (ids_host > -MAX_INPUT_ID))
    positions = np.asarray(positions)

    bs = img_features.shape[0]
    select = positions.shape[0] > 0

    img_set_tensor, output_len = [], []
    if select:
        patch_feats = img_features[:, :, 1:, :]                           # type_feature == 'patch'
        patch_feats = patch_feats.reshape(bs, -1, H * H, C)
        h = int(img_sizes[0]) // 336
        w = int(img_sizes[1]) // 336
        slabs = []
        for _bs in range(bs):
            slabs.append(hd_transform_single(patch_feats[_bs], h, w,
                                             params["glb_GN"], params["sub_GN"], C, H))
            output_len.append(int((h * w + 1) * 144 + 1 + (h + 1) * 12))

        # ONE projection call for the whole batch (amortizes weight DMA / launch cost).
        x_all = jnp.concatenate(slabs, axis=0) if len(slabs) > 1 else slabs[0]
        proj_all = img_projection_pallas(x_all, params["w1"], params["b1"],
                                         params["w2"], params["b2"])
        off = 0
        for s in slabs:
            L_i = s.shape[0]
            img_set_tensor.append(proj_all[off:off + L_i])
            off += L_i

    clipped = jnp.clip(ids2d, 0, VOCAB_SIZE)                              # clamp_min_/clamp_max_
    hidden_states = jnp.take(params["wte"], clipped, axis=0)              # (B, S, hidden)

    if select:
        idx = 0
        for i, cnt in enumerate(output_len):
            b_pos, s_pos = int(positions[idx, 0]), int(positions[idx, 1])
            hidden_states = jax.lax.dynamic_update_slice(
                hidden_states,
                img_set_tensor[i][None].astype(hidden_states.dtype),
                (b_pos, s_pos, 0))
            idx += cnt

    if hidden_states.shape[0] == 1:                                       # .squeeze(0)
        hidden_states = jnp.squeeze(hidden_states, axis=0)
    return hidden_states


# ---------------- pure-JAX reference for the projected tokens -------------------------
def _ref_projection(x, params):
    from jax.scipy.special import erf
    h = x @ params["w1"] + params["b1"]
    h = 0.5 * h * (1.0 + erf(h / jnp.sqrt(2.0)))
    return h @ params["w2"] + params["b2"]


if __name__ == "__main__":
    key = jax.random.PRNGKey(0)
    ks = jax.random.split(key, 10)
    C, H, HID = IMAGE_DIM_OUT, H_FEAT, HIDDEN_SIZE

    params = {
        "glb_GN": jax.random.normal(ks[0], (1, 1, 4 * C), jnp.float32) * 0.02,
        "sub_GN": jax.random.normal(ks[1], (1, 1, 1, 4 * C), jnp.float32) * 0.02,
        "w1": jax.random.normal(ks[2], (4 * C, HID), jnp.float32) * 0.02,
        "b1": jax.random.normal(ks[3], (HID,), jnp.float32) * 0.02,
        "w2": jax.random.normal(ks[4], (HID, HID), jnp.float32) * 0.02,
        "b2": jax.random.normal(ks[5], (HID,), jnp.float32) * 0.02,
        "wte": jax.random.normal(ks[6], (VOCAB_SIZE + 1, HID), jnp.float32) * 0.02,
    }

    img_sizes = (672, 336)                       # -> h=2, w=1 -> 2 sub crops + 1 global
    h_crops, w_crops = img_sizes[0] // 336, img_sizes[1] // 336
    num_crops = 1 + h_crops * w_crops
    bs = 2
    img_features = jax.random.normal(ks[7], (bs, num_crops, 1 + H * H, C), jnp.float32)

    cnt = (h_crops * w_crops + 1) * 144 + 1 + (h_crops + 1) * 12           # 469 image tokens
    S = 512
    starts = (8, 20)
    base_ids = np.array(jax.random.randint(ks[8], (bs, S), 1, VOCAB_SIZE, dtype=jnp.int32))
    base_ids[0, starts[0]:starts[0] + cnt] = -1                            # image placeholders
    base_ids[1, starts[1]:starts[1] + cnt] = -2
    input_ids = jnp.asarray(base_ids)
    # positions precomputed host-side (keeps the device pipeline unblocked)
    positions = np.argwhere((base_ids < 0) & (base_ids > -MAX_INPUT_ID))

    out = phi3_hd_image_embedding_forward(params, input_ids, img_features, img_sizes,
                                          positions=positions)
    out = jax.block_until_ready(out)
    assert out.shape == (bs, S, HID), out.shape

    # correctness: per image, the image-token slab must match the pure-JAX (f32, exact-erf)
    # projection of the HD transform (tolerances account for bf16 MXU operands).
    patch_feats = img_features[:, :, 1:, :].reshape(bs, -1, H * H, C)
    for b in range(bs):
        x_hd = hd_transform_single(patch_feats[b], h_crops, w_crops,
                                   params["glb_GN"], params["sub_GN"], C, H)
        ref = _ref_projection(x_hd, params)
        np.testing.assert_allclose(np.asarray(out[b, starts[b]:starts[b] + cnt]),
                                   np.asarray(ref), rtol=5e-2, atol=1e-2)
        # non-image tokens must be plain wte lookups
        ref_emb = np.asarray(jnp.take(params["wte"],
                                      jnp.clip(input_ids[b, :starts[b]], 0, VOCAB_SIZE),
                                      axis=0))
        np.testing.assert_allclose(np.asarray(out[b, :starts[b]]), ref_emb,
                                   rtol=1e-6, atol=1e-6)

    print("KERNEL_OK")
</pallas_src>

<mosaic_0001>
module attributes {stable_mosaic.version = 11 : i64} {
  func.func @_img_projection_kernel(%arg0: i32, %arg1: memref<256x128xbf16, #tpu.memory_space<vmem>>, %arg2: memref<128x128xbf16, #tpu.memory_space<vmem>>, %arg3: memref<1x128xf32, #tpu.memory_space<vmem>>, %arg4: memref<128x128xbf16, #tpu.memory_space<vmem>>, %arg5: memref<1x128xf32, #tpu.memory_space<vmem>>, %arg6: memref<256x128xf32, #tpu.memory_space<vmem>>) attributes {dimension_semantics = [#tpu.dimension_semantics<parallel>], iteration_bounds = array<i64: 4>, scalar_prefetch = 0 : i64, scratch_operands = 0 : i64, tpu.core_type = #tpu.core_type<tc>, window_params = [{transform_indices = @transform_0, window_bounds = array<i64: 256, 128>}, {pipeline_mode = #tpu.pipeline_mode<synchronous>, transform_indices = @transform_1, window_bounds = array<i64: 128, 128>}, {pipeline_mode = #tpu.pipeline_mode<synchronous>, transform_indices = @transform_2, window_bounds = array<i64: 1, 128>}, {pipeline_mode = #tpu.pipeline_mode<synchronous>, transform_indices = @transform_3, window_bounds = array<i64: 128, 128>}, {pipeline_mode = #tpu.pipeline_mode<synchronous>, transform_indices = @transform_4, window_bounds = array<i64: 1, 128>}, {transform_indices = @transform_5, window_bounds = array<i64: 256, 128>}]} {
    %c0 = arith.constant 0 : index
    %c0_0 = arith.constant 0 : index
    %0 = vector.load %arg1[%c0, %c0_0] : memref<256x128xbf16, #tpu.memory_space<vmem>>, vector<256x128xbf16>
    %c0_1 = arith.constant 0 : index
    %c0_2 = arith.constant 0 : index
    %1 = vector.load %arg2[%c0_1, %c0_2] : memref<128x128xbf16, #tpu.memory_space<vmem>>, vector<128x128xbf16>
    %cst = arith.constant dense<0.000000e+00> : vector<256x128xf32>
    %2 = tpu.matmul %0, %1, %cst {dimension_numbers = #tpu.dot_dimension_numbers<[1], [0], [0], [1], [0, 0, 1, 1], [], []>} : vector<256x128xbf16>, vector<128x128xbf16>, vector<256x128xf32> -> vector<256x128xf32>
    %c0_3 = arith.constant 0 : index
    %c0_4 = arith.constant 0 : index
    %3 = vector.load %arg3[%c0_3, %c0_4] : memref<1x128xf32, #tpu.memory_space<vmem>>, vector<1x128xf32>
    %4 = vector.broadcast %3 : vector<1x128xf32> to vector<256x128xf32>
    %5 = arith.addf %2, %4 : vector<256x128xf32>
    %cst_5 = arith.constant 5.000000e-01 : f32
    %6 = vector.broadcast %cst_5 : f32 to vector<256x128xf32>
    %7 = arith.mulf %6, %5 : vector<256x128xf32>
    %cst_6 = arith.constant 0.707106769 : f32
    %8 = vector.broadcast %cst_6 : f32 to vector<256x128xf32>
    %9 = arith.mulf %5, %8 : vector<256x128xf32>
    %10 = math.absf %9 : vector<256x128xf32>
    %cst_7 = arith.constant 0.327591091 : f32
    %11 = vector.broadcast %cst_7 : f32 to vector<256x128xf32>
    %12 = arith.mulf %11, %10 : vector<256x128xf32>
    %cst_8 = arith.constant 1.000000e+00 : f32
    %13 = vector.broadcast %cst_8 : f32 to vector<256x128xf32>
    %14 = arith.addf %13, %12 : vector<256x128xf32>
    %15 = tpu.reciprocal %14 {approx = true} : vector<256x128xf32> -> vector<256x128xf32>
    %cst_9 = arith.constant 1.06140542 : f32
    %16 = vector.broadcast %cst_9 : f32 to vector<256x128xf32>
    %17 = arith.mulf %16, %15 : vector<256x128xf32>
    %cst_10 = arith.constant -1.45315206 : f32
    %18 = vector.broadcast %cst_10 : f32 to vector<256x128xf32>
    %19 = arith.addf %17, %18 : vector<256x128xf32>
    %20 = arith.mulf %19, %15 : vector<256x128xf32>
    %cst_11 = arith.constant 1.42141378 : f32
    %21 = vector.broadcast %cst_11 : f32 to vector<256x128xf32>
    %22 = arith.addf %20, %21 : vector<256x128xf32>
    %23 = arith.mulf %22, %15 : vector<256x128xf32>
    %cst_12 = arith.constant -0.284496725 : f32
    %24 = vector.broadcast %cst_12 : f32 to vector<256x128xf32>
    %25 = arith.addf %23, %24 : vector<256x128xf32>
    %26 = arith.mulf %25, %15 : vector<256x128xf32>
    %cst_13 = arith.constant 0.254829586 : f32
    %27 = vector.broadcast %cst_13 : f32 to vector<256x128xf32>
    %28 = arith.addf %26, %27 : vector<256x128xf32>
    %29 = arith.mulf %28, %15 : vector<256x128xf32>
    %cst_14 = arith.constant 0.000000e+00 : f32
    %30 = vector.broadcast %cst_14 : f32 to vector<256x128xf32>
    %31 = arith.subf %30, %10 : vector<256x128xf32>
    %32 = arith.mulf %31, %10 : vector<256x128xf32>
    %33 = math.exp %32 : vector<256x128xf32>
    %34 = arith.mulf %29, %33 : vector<256x128xf32>
    %cst_15 = arith.constant 1.000000e+00 : f32
    %35 = vector.broadcast %cst_15 : f32 to vector<256x128xf32>
    %36 = arith.subf %35, %34 : vector<256x128xf32>
    %cst_16 = arith.constant 0.000000e+00 : f32
    %37 = vector.broadcast %cst_16 : f32 to vector<256x128xf32>
    %38 = arith.cmpf oge, %9, %37 : vector<256x128xf32>
    %cst_17 = arith.constant 0.000000e+00 : f32
    %39 = vector.broadcast %cst_17 : f32 to vector<256x128xf32>
    %40 = arith.subf %39, %36 : vector<256x128xf32>
    %41 = arith.select %38, %36, %40 : vector<256x128xi1>, vector<256x128xf32>
    %cst_18 = arith.constant 1.000000e+00 : f32
    %42 = vector.broadcast %cst_18 : f32 to vector<256x128xf32>
    %43 = arith.addf %42, %41 : vector<256x128xf32>
    %44 = arith.mulf %7, %43 : vector<256x128xf32>
    %45 = arith.truncf %44 : vector<256x128xf32> to vector<256x128xbf16>
    %c0_19 = arith.constant 0 : index
    %c0_20 = arith.constant 0 : index
    %46 = vector.load %arg4[%c0_19, %c0_20] : memref<128x128xbf16, #tpu.memory_space<vmem>>, vector<128x128xbf16>
    %cst_21 = arith.constant dense<0.000000e+00> : vector<256x128xf32>
    %47 = tpu.matmul %45, %46, %cst_21 {dimension_numbers = #tpu.dot_dimension_numbers<[1], [0], [0], [1], [0, 0, 1, 1], [], []>} : vector<256x128xbf16>, vector<128x128xbf16>, vector<256x128xf32> -> vector<256x128xf32>
    %c0_22 = arith.constant 0 : index
    %c0_23 = arith.constant 0 : index
    %48 = vector.load %arg5[%c0_22, %c0_23] : memref<1x128xf32, #tpu.memory_space<vmem>>, vector<1x128xf32>
    %49 = vector.broadcast %48 : vector<1x128xf32> to vector<256x128xf32>
    %50 = arith.addf %47, %49 : vector<256x128xf32>
    %c0_24 = arith.constant 0 : index
    %c0_25 = arith.constant 0 : index
    %51 = vector.load %arg6[%c0_24, %c0_25] : memref<256x128xf32, #tpu.memory_space<vmem>>, vector<256x128xf32>
    tpu.vector_store %arg6[%c0_24, %c0_25], %50 {strides = array<i32>} : memref<256x128xf32, #tpu.memory_space<vmem>>, vector<256x128xf32>,
    return
  }
  func.func @transform_0(%arg0: i32) -> (i32, i32) {
    %c0_i32 = arith.constant 0 : i32
    %c0_i32_0 = arith.constant 0 : i32
    return %arg0, %c0_i32 : i32, i32
  }
  func.func @transform_1(%arg0: i32) -> (i32, i32) {
    %c0_i32 = arith.constant 0 : i32
    %c0_i32_0 = arith.constant 0 : i32
    %c0_i32_1 = arith.constant 0 : i32
    return %c0_i32, %c0_i32_0 : i32, i32
  }
  func.func @transform_2(%arg0: i32) -> (i32, i32) {
    %c0_i32 = arith.constant 0 : i32
    %c0_i32_0 = arith.constant 0 : i32
    %c0_i32_1 = arith.constant 0 : i32
    return %c0_i32, %c0_i32_0 : i32, i32
  }
  func.func @transform_3(%arg0: i32) -> (i32, i32) {
    %c0_i32 = arith.constant 0 : i32
    %c0_i32_0 = arith.constant 0 : i32
    %c0_i32_1 = arith.constant 0 : i32
    return %c0_i32, %c0_i32_0 : i32, i32
  }
  func.func @transform_4(%arg0: i32) -> (i32, i32) {
    %c0_i32 = arith.constant 0 : i32
    %c0_i32_0 = arith.constant 0 : i32
    %c0_i32_1 = arith.constant 0 : i32
    return %c0_i32, %c0_i32_0 : i32, i32
  }
  func.func @transform_5(%arg0: i32) -> (i32, i32) {
    %c0_i32 = arith.constant 0 : i32
    %c0_i32_0 = arith.constant 0 : i32
    return %arg0, %c0_i32 : i32, i32
  }
}

module attributes {stable_mosaic.version = 11 : i64} {
  func.func @_img_projection_kernel(%arg0: i32, %arg1: memref<256x128xbf16, #tpu.memory_space<vmem>>, %arg2: memref<128x128xbf16, #tpu.memory_space<vmem>>, %arg3: memref<1x128xf32, #tpu.memory_space<vmem>>, %arg4: memref<128x128xbf16, #tpu.memory_space<vmem>>, %arg5: memref<1x128xf32, #tpu.memory_space<vmem>>, %arg6: memref<256x128xf32, #tpu.memory_space<vmem>>) attributes {dimension_semantics = [#tpu.dimension_semantics<parallel>], iteration_bounds = array<i64: 4>, scalar_prefetch = 0 : i64, scratch_operands = 0 : i64, tpu.core_type = #tpu.core_type<tc>, window_params = [{transform_indices = @transform_0, window_bounds = array<i64: 256, 128>}, {pipeline_mode = #tpu.pipeline_mode<synchronous>, transform_indices = @transform_1, window_bounds = array<i64: 128, 128>}, {pipeline_mode = #tpu.pipeline_mode<synchronous>, transform_indices = @transform_2, window_bounds = array<i64: 1, 128>}, {pipeline_mode = #tpu.pipeline_mode<synchronous>, transform_indices = @transform_3, window_bounds = array<i64: 128, 128>}, {pipeline_mode = #tpu.pipeline_mode<synchronous>, transform_indices = @transform_4, window_bounds = array<i64: 1, 128>}, {transform_indices = @transform_5, window_bounds = array<i64: 256, 128>}]} {
    %c0 = arith.constant 0 : index
    %c0_0 = arith.constant 0 : index
    %0 = vector.load %arg1[%c0, %c0_0] : memref<256x128xbf16, #tpu.memory_space<vmem>>, vector<256x128xbf16>
    %c0_1 = arith.constant 0 : index
    %c0_2 = arith.constant 0 : index
    %1 = vector.load %arg2[%c0_1, %c0_2] : memref<128x128xbf16, #tpu.memory_space<vmem>>, vector<128x128xbf16>
    %cst = arith.constant dense<0.000000e+00> : vector<256x128xf32>
    %2 = tpu.matmul %0, %1, %cst {dimension_numbers = #tpu.dot_dimension_numbers<[1], [0], [0], [1], [0, 0, 1, 1], [], []>} : vector<256x128xbf16>, vector<128x128xbf16>, vector<256x128xf32> -> vector<256x128xf32>
    %c0_3 = arith.constant 0 : index
    %c0_4 = arith.constant 0 : index
    %3 = vector.load %arg3[%c0_3, %c0_4] : memref<1x128xf32, #tpu.memory_space<vmem>>, vector<1x128xf32>
    %4 = vector.broadcast %3 : vector<1x128xf32> to vector<256x128xf32>
    %5 = arith.addf %2, %4 : vector<256x128xf32>
    %cst_5 = arith.constant 5.000000e-01 : f32
    %6 = vector.broadcast %cst_5 : f32 to vector<256x128xf32>
    %7 = arith.mulf %6, %5 : vector<256x128xf32>
    %cst_6 = arith.constant 0.707106769 : f32
    %8 = vector.broadcast %cst_6 : f32 to vector<256x128xf32>
    %9 = arith.mulf %5, %8 : vector<256x128xf32>
    %10 = math.absf %9 : vector<256x128xf32>
    %cst_7 = arith.constant 0.327591091 : f32
    %11 = vector.broadcast %cst_7 : f32 to vector<256x128xf32>
    %12 = arith.mulf %11, %10 : vector<256x128xf32>
    %cst_8 = arith.constant 1.000000e+00 : f32
    %13 = vector.broadcast %cst_8 : f32 to vector<256x128xf32>
    %14 = arith.addf %13, %12 : vector<256x128xf32>
    %15 = tpu.reciprocal %14 {approx = true} : vector<256x128xf32> -> vector<256x128xf32>
    %cst_9 = arith.constant 1.06140542 : f32
    %16 = vector.broadcast %cst_9 : f32 to vector<256x128xf32>
    %17 = arith.mulf %16, %15 : vector<256x128xf32>
    %cst_10 = arith.constant -1.45315206 : f32
    %18 = vector.broadcast %cst_10 : f32 to vector<256x128xf32>
    %19 = arith.addf %17, %18 : vector<256x128xf32>
    %20 = arith.mulf %19, %15 : vector<256x128xf32>
    %cst_11 = arith.constant 1.42141378 : f32
    %21 = vector.broadcast %cst_11 : f32 to vector<256x128xf32>
    %22 = arith.addf %20, %21 : vector<256x128xf32>
    %23 = arith.mulf %22, %15 : vector<256x128xf32>
    %cst_12 = arith.constant -0.284496725 : f32
    %24 = vector.broadcast %cst_12 : f32 to vector<256x128xf32>
    %25 = arith.addf %23, %24 : vector<256x128xf32>
    %26 = arith.mulf %25, %15 : vector<256x128xf32>
    %cst_13 = arith.constant 0.254829586 : f32
    %27 = vector.broadcast %cst_13 : f32 to vector<256x128xf32>
    %28 = arith.addf %26, %27 : vector<256x128xf32>
    %29 = arith.mulf %28, %15 : vector<256x128xf32>
    %cst_14 = arith.constant 0.000000e+00 : f32
    %30 = vector.broadcast %cst_14 : f32 to vector<256x128xf32>
    %31 = arith.subf %30, %10 : vector<256x128xf32>
    %32 = arith.mulf %31, %10 : vector<256x128xf32>
    %33 = math.exp %32 : vector<256x128xf32>
    %34 = arith.mulf %29, %33 : vector<256x128xf32>
    %cst_15 = arith.constant 1.000000e+00 : f32
    %35 = vector.broadcast %cst_15 : f32 to vector<256x128xf32>
    %36 = arith.subf %35, %34 : vector<256x128xf32>
    %cst_16 = arith.constant 0.000000e+00 : f32
    %37 = vector.broadcast %cst_16 : f32 to vector<256x128xf32>
    %38 = arith.cmpf oge, %9, %37 : vector<256x128xf32>
    %cst_17 = arith.constant 0.000000e+00 : f32
    %39 = vector.broadcast %cst_17 : f32 to vector<256x128xf32>
    %40 = arith.subf %39, %36 : vector<256x128xf32>
    %41 = arith.select %38, %36, %40 : vector<256x128xi1>, vector<256x128xf32>
    %cst_18 = arith.constant 1.000000e+00 : f32
    %42 = vector.broadcast %cst_18 : f32 to vector<256x128xf32>
    %43 = arith.addf %42, %41 : vector<256x128xf32>
    %44 = arith.mulf %7, %43 : vector<256x128xf32>
    %45 = arith.truncf %44 : vector<256x128xf32> to vector<256x128xbf16>
    %c0_19 = arith.constant 0 : index
    %c0_20 = arith.constant 0 : index
    %46 = vector.load %arg4[%c0_19, %c0_20] : memref<128x128xbf16, #tpu.memory_space<vmem>>, vector<128x128xbf16>
    %cst_21 = arith.constant dense<0.000000e+00> : vector<256x128xf32>
    %47 = tpu.matmul %45, %46, %cst_21 {dimension_numbers = #tpu.dot_dimension_numbers<[1], [0], [0], [1], [0, 0, 1, 1], [], []>} : vector<256x128xbf16>, vector<128x128xbf16>, vector<256x128xf32> -> vector<256x128xf32>
    %c0_22 = arith.constant 0 : index
    %c0_23 = arith.constant 0 : index
    %48 = vector.load %arg5[%c0_22, %c0_23] : memref<1x128xf32, #tpu.memory_space<vmem>>, vector<1x128xf32>
    %49 = vector.broadcast %48 : vector<1x128xf32> to vector<256x128xf32>
    %50 = arith.addf %47, %49 : vector<256x128xf32>
    %c0_24 = arith.constant 0 : index
    %c0_25 = arith.constant 0 : index
    %51 = vector.load %arg6[%c0_24, %c0_25] : memref<256x128xf32, #tpu.memory_space<vmem>>, vector<256x128xf32>
    tpu.vector_store %arg6[%c0_24, %c0_25], %50 {strides = array<i32>} : memref<256x128xf32, #tpu.memory_space<vmem>>, vector<256x128xf32>,
    return
  }
  func.func @transform_0(%arg0: i32) -> (i32, i32) {
    %c0_i32 = arith.constant 0 : i32
    %c0_i32_0 = arith.constant 0 : i32
    return %arg0, %c0_i32 : i32, i32
  }
  func.func @transform_1(%arg0: i32) -> (i32, i32) {
    %c0_i32 = arith.constant 0 : i32
    %c0_i32_0 = arith.constant 0 : i32
    %c0_i32_1 = arith.constant 0 : i32
    return %c0_i32, %c0_i32_0 : i32, i32
  }
  func.func @transform_2(%arg0: i32) -> (i32, i32) {
    %c0_i32 = arith.constant 0 : i32
    %c0_i32_0 = arith.constant 0 : i32
    %c0_i32_1 = arith.constant 0 : i32
    return %c0_i32, %c0_i32_0 : i32, i32
  }
  func.func @transform_3(%arg0: i32) -> (i32, i32) {
    %c0_i32 = arith.constant 0 : i32
    %c0_i32_0 = arith.constant 0 : i32
    %c0_i32_1 = arith.constant 0 : i32
    return %c0_i32, %c0_i32_0 : i32, i32
  }
  func.func @transform_4(%arg0: i32) -> (i32, i32) {
    %c0_i32 = arith.constant 0 : i32
    %c0_i32_0 = arith.constant 0 : i32
    %c0_i32_1 = arith.constant 0 : i32
    return %c0_i32, %c0_i32_0 : i32, i32
  }
  func.func @transform_5(%arg0: i32) -> (i32, i32) {
    %c0_i32 = arith.constant 0 : i32
    %c0_i32_0 = arith.constant 0 : i32
    return %arg0, %c0_i32 : i32, i32
  }
}

</mosaic_0001>

<bundles_post_ra>
// kernel: tpu_custom_call.1
= control target key start
LH: loop header
LB: loop body
LE: loop exit
PB: predicated region body
PF: predicated region fallthrough
CT: control target
= control target key end

     0   :  { %s3388_s0 = inlined_call_operand.hbm [shape: bf16[938,128], index: 0, kind: input, shape index: {}]   ;;  %s3389_s1 = inlined_call_operand.hbm [shape: bf16[128,128], index: 1, kind: input, shape index: {}]   ;;  %s3390_s2 = inlined_call_operand.vmem [shape: f32[1,128], index: 2, kind: input, shape index: {}]   ;;  %s3391_s3 = inlined_call_operand.hbm [shape: bf16[128,128], index: 3, kind: input, shape index: {}]   ;;  %s3392_s4 = inlined_call_operand.vmem [shape: f32[1,128], index: 4, kind: input, shape index: {}]   ;;  %s3393_s5 = inlined_call_operand.hbm [shape: f32[938,128], index: 5, kind: output, shape index: {}]  }
   0x1   :  { %3427 = sst [smem:[#allocation37_spill]] %s3389_s1 }
   0x2   :  { %10 = vsyncpa [#allocation3], 0 }
   0x3   :  { %12 = vsyncpa [#allocation3 + $0x1], 0 }
   0x4   :  { %13 = vsyncpa [#allocation6], 0 }
   0x5   :  { %14 = vsyncpa [#allocation4], 0 }
   0x6   :  { %16 = vsyncpa [#allocation4 + $0x1], 0  ;;  %s2355_s18 = smov 0   ;;  %s2357_s19 = smov 0  }
   0x7   :  { %s2359_s20 = smov 0   ;;  %s2361_s21 = smov 0  }
   0x8 LB: > { %s2376_s22 = sadd.s32 4294967295, %s2313_s21   ;;  %s1732_s23 = sadd.s32 4294967294, %s2313_s21   ;;  %s2313_s21 = sphi %s2361_s21, %s3509_s21   ;;  %s2309_s20 = sphi %s2359_s20, %s3508_s20   ;;  %s2305_s19 = sphi %s2357_s19, %s3507_s19   ;;  %s2301_s18 = sphi %s2355_s18, %s3506_s18  }
   0x9   : > { %s2380_s24 = sadd.s32 1, %s2313_s21   ;;  %s29_s25 = sadd.s32 1, %s2309_s20 }
   0xa   : > { %s26_s26 = ssub.s32 %s2313_s21, %s2380_s24  ;;  %p36_p0 = scmp.ne.s32.totalorder %s2309_s20, %s2305_s19 }
   0xb   : > { %p27_p1 = scmp.eq.s32.totalorder %s26_s26, 0  ;;  %p37_p2 = scmp.eq.s32.totalorder %s2313_s21, 0 }
   0xc   : > { %p42_p3 = scmp.ne.s32.totalorder %s2305_s19, %s2301_s18  ;;  %p3395_p4 = scmp.eq.s32.totalorder %s2376_s22, 0 }
   0xd   : > { %s2392_s27 = scalar_select %p27_p1, %s2309_s20, %s29_s25  }
   0xe   : > { %p2394_p5 = por %p37_p2, %p36_p0  ;;  %p2400_p6 = por %p3395_p4, %p42_p3 }
   0xf   : > { %p150_p7 = scmp.eq.s32.totalorder %s2376_s22, 3  ;;  %p156_p8 = scmp.eq.s32.totalorder %s1732_s23, 3 }
  0x10   : > { %p1733_p9 = scmp.ge.s32.totalorder %s2313_s21, 1  ;;  %p163_p10 = scmp.lt.s32.totalorder %s2313_s21, 5 }
  0x11   : > { %p2407_p11 = por %p150_p7, %p36_p0  ;;  %p2411_p12 = por %p156_p8, %p42_p3 }
  0x12   : > { %p2415_p13 = pnand %p1733_p9, %p163_p10  ;;  %s3433_s1 = sld [smem:[#allocation37_spill]] }
  0x13   : > { %s3431_s6 = scalar_select %p2411_p12, 1, 0 }
  0x14   : > { %p1946_p1 = pneg %p2415_p13  ;;  %s2315_s11 = smov [#allocation5]  }
  0x15   : > { %s176_s12 = sshll.u32 %s2315_s11, 4  ;;  %s191_s15 = sshll.u32 %s3391_s3, 4  ;;  %s177_s12 = int_to_ptr.vmem [resolvable:$true] %s176_s12  ;;  %s192_s15 = int_to_ptr.hbm [resolvable:$true] %s191_s15 }
  0x16   : > { %p1947_p0 = pnand %p1946_p1, %p3395_p4  ;;  %s2316_s16 = smov 64  }
  0x17   : > { %s2317_s17 = smov 4   ;;  %s2318_s23 = smov [#allocation7]  }
  0x18   : > { %s174_s10 = sshll.u32 %s3433_s1, 4  ;;  %s193_s25 = sshll.u32 %s2318_s23, 4  ;;  %s175_s10 = int_to_ptr.hbm [resolvable:$true] %s174_s10  ;;  %s194_s25 = int_to_ptr.vmem [resolvable:$true] %s193_s25 }
  0x19   : > { %1949 = dma.hbm_to_vmem [thread:$0]  (!%p1947_p0), %s175_s10, 1024, %s177_s12, [#allocation6], %s2316_s16, %s2316_s16, %s2317_s17  }
  0x1a   : > { %1952 = dma.hbm_to_vmem [thread:$0]  (!%p1947_p0), %s192_s15, 1024, %s194_s25, [#allocation6], %s2316_s16, %s2316_s16, %s2317_s17  }
  0x1b   : > { %p1736_p2 = scmp.ge.s32.totalorder %s2313_s21, 4 }
  0x1d   : > { %206 = sbr.rel (%p1736_p2) target bundleno = 71 (0x47), region = 32 }
  0x22   : > { %209 = sbr.rel (!%p2394_p5) target bundleno = 71 (0x47), region = 36  ;;  %s210_s26 = sand.u32 (%p2394_p5), 1, %s2309_s20  }
  0x23   : > { %s1738_s8 = sshll.u32 (%p2394_p5), %s2313_s21, 5  ;;  %s1737_s9 = sshll.u32 (%p2394_p5), %s210_s26, 7 }
  0x24   : > { %s216_s11 = ssub.s32 (%p2394_p5), 118, %s1738_s8  ;;  %s2437_s14 = scalar_lea.sflag (%p2394_p5), [#allocation3], %s210_s26 }
  0x25   : > { %p217_p3 = scmp.lt.s32.totalorder (%p2394_p5), %s216_s11, 32  ;;  %s214_s15 = scalar_lea.vmem (%p2394_p5), [#allocation2], %s1737_s9 }
  0x27   : > { %s3511_s11 = smov (!%p217_p3, %s216_s11), 32 }
  0x28   : > { %s1739_s10 = sshll.u32 %s3511_s11, 2 }
  0x29   : > { %s220_s12 = ssub.s32 128, %s1739_s10 }
  0x2a   : > { %s221_s13 = sshll.u32 %s220_s12, 4 }
  0x2b   : > { %222 = vsyncadd %s2437_s14, %s221_s13  ;;  %p2440_p5 = scmp.ne.s32.totalorder %s1739_s10, 0  ;;  %s1886_s16 = sshll.u32 %s2313_s21, 7 }
  0x2c   : > { %s225_s25 = scalar_lea.hbm %s3388_s0, %s1886_s16  ;;  %s2448_s8 = sshll.u32 %s214_s15, 4  ;;  %s230_s8 = int_to_ptr.vmem [resolvable:$true] %s2448_s8 }
  0x2d   : > { %s227_s26 = sshll.u32 %s225_s25, 4  ;;  %s3394_s9 = sshll.u32 %s3511_s11, 6  ;;  %s2451_s26 = int_to_ptr.hbm [resolvable:$true] %s227_s26 }
  0x2e   : > { %s2193_s12 = sshra.s32 %s2451_s26, 4  ;;  %s2195_s10 = sshrl.u32 %s3394_s9, 4  ;;  %s2194_s12 = int_to_ptr.hbm [resolvable:$true] %s2193_s12 }
  0x2f   : > { %s2200_s13 = scalar_lea.hbm %s2194_s12, %s2195_s10  ;;  %s2204_s15 = scalar_lea.hbm %s3388_s0, 472 }
  0x30   : > { %p2201_p7 = scmp.ne.s32.totalorder %s2194_s12, %s2200_s13  ;;  %p2205_p10 = scmp.lt.s32.totalorder %s2194_s12, %s3388_s0 }
  0x31   : > { %p2206_p1 = scmp.lt.s32.totalorder %s2204_s15, %s2200_s13 }
  0x32   : > { %p2202_p8 = pnand %p2201_p7, %p2440_p5 }
  0x33   : > { %p2207_p0 = por %p2206_p1, %p2205_p10 }
  0x34   : > { %p2203_p9 = pneg %p2202_p8 }
  0x36   : > { %p2208_p2 = pnand %p2207_p0, %p2203_p9 }
  0x38   : > { %2211 = shalt.err (!%p2208_p2)
}
  0x39   : > { %s2212_s9 = sshra.s32 %s230_s8, 4  ;;  %s2319_s17 = smov [#allocation2]   ;;  %s2213_s9 = int_to_ptr.vmem [resolvable:$true] %s2212_s9 }
  0x3a   : > { %s2219_s1 = scalar_lea.vmem %s2213_s9, %s2195_s10  ;;  %s2223_s16 = scalar_lea.vmem %s2319_s17, 256 }
  0x3b   : > { %p2220_p3 = scmp.ne.s32.totalorder %s2213_s9, %s2219_s1  ;;  %p2225_p4 = scmp.lt.s32.totalorder %s2223_s16, %s2219_s1 }
  0x3d   : > { %p2221_p7 = pnand %p2220_p3, %p2440_p5 }
  0x3f   : > { %p2222_p8 = pneg %p2221_p7 }
  0x41   : > { %p2227_p12 = pnand %p2225_p4, %p2222_p8 }
  0x43   : > { %2230 = shalt.err (!%p2227_p12)
}
  0x44   : > { %s2320_s12 = smov 64   ;;  %s2321_s13 = smov 4  }
  0x45   : > { %s3435_s15 = sshll.u32 %s3511_s11, 6 }
  0x46   : > { %235 = dma.hbm_to_vmem [thread:$0]  (%p2440_p5), %s2451_s26, %s3435_s15, %s230_s8, %s2437_s14, %s2320_s12, %s2320_s12, %s2321_s13  }
  0x47 PF: > { %241 = sbr.rel (%p2415_p13) target bundleno = 659 (0x293), region = 40 }
  0x4c   : > { %s2480_s1 = sand.u32 1, %s2305_s19  }
  0x4d   : > { %s1745_s9 = sshll.u32 %s2480_s1, 7  ;;  %s244_s10 = scalar_lea.sflag [#allocation3], %s2480_s1 }
  0x4e   : > { %s2484_s23 = scalar_lea.vmem [#allocation2], %s1745_s9 }
  0x4f   : > { %2288 = dma.done.wait (%p2400_p6), %s244_s10, 2048  }
  0x50   : > { %2290 = vsyncadd (%p2400_p6), %s244_s10, 4294965248  ;;  %p3436_p4 = scmp.eq.s32.totalorder %s2376_s22, 0 }
  0x52   : > { %2292 = dma.done.wait (%p3436_p4), [#allocation6], 2048   ;;  %p3437_p12 = pmov %p3436_p4 }
  0x53   : > { %v1910_v0 = vld [vmem:[#allocation5 + $0x38] sm:$0xff]  ;;  %v1909_v1 = vld [vmem:[#allocation5 + $0x30] sm:$0xff]  ;;  %v1908_v2 = vld [vmem:[#allocation5 + $0x28] sm:$0xff]  ;;  %s1748_s28 = sshll.u32 %s2480_s1, 8  ;;  %s1618_s17 = scalar_lea.sflag [#allocation4], %s2480_s1 }
  0x54   : > { %2294 = vsyncadd (%p3437_p12), [#allocation6], 4294965248  ;;  %491 = vmatpush.bf16.msra.mxu0 %v1910_v0  ;;  %1920 = vmatpush.bf16.msra.mxu2 %v1910_v0  ;;  %v1907_v3 = vld [vmem:[#allocation5 + $0x20] sm:$0xff]  ;;  %v1906_v4 = vld [vmem:[#allocation5 + $0x18] sm:$0xff]  ;;  %s3247_s25 = scalar_lea.vmem [#allocation8], %s1748_s28  ;;  %s1878_s16 = sshll.u32 (%p2407_p11), %s2376_s22, 5 }
  0x55   : > { %v1905_v5 = vld [vmem:[#allocation5 + $0x10] sm:$0xff]  ;;  %v1904_v6 = vld [vmem:[#allocation5 + $0x8] sm:$0xff]  ;;  %v1903_v7 = vld [vmem:[#allocation5] sm:$0xff]  ;;  %s1626_s12 = ssub.s32 (%p2407_p11), 118, %s1878_s16 }
  0x56   : > { %v1887_v8 = vld [vmem:[%s2484_s23] sm:$0xff]  ;;  %v1888_v10 = vld [vmem:[%s2484_s23 + $0x8] sm:$0xff]  ;;  %v1889_v12 = vld [vmem:[%s2484_s23 + $0x10] sm:$0xff]  ;;  %p1627_p6 = scmp.lt.s32.totalorder (%p2407_p11), %s1626_s12, 32 }
  0x57   : > { %v1895_v9 = vld [vmem:[%s2484_s23 + $0x40] sm:$0xff]  ;;  %v1896_v11 = vld [vmem:[%s2484_s23 + $0x48] sm:$0xff]  ;;  %v1897_v13 = vld [vmem:[%s2484_s23 + $0x50] sm:$0xff] }
  0x58   : > { %492 = vmatpush.bf16.msra.mxu0 %v1909_v1  ;;  %1921 = vmatpush.bf16.msra.mxu2 %v1909_v1  ;;  %v1890_v14 = vld [vmem:[%s2484_s23 + $0x18] sm:$0xff]  ;;  %v1891_v16 = vld [vmem:[%s2484_s23 + $0x20] sm:$0xff]  ;;  %v1892_v18 = vld [vmem:[%s2484_s23 + $0x28] sm:$0xff] }
  0x59   : > { %v1898_v15 = vld [vmem:[%s2484_s23 + $0x58] sm:$0xff]  ;;  %v1899_v17 = vld [vmem:[%s2484_s23 + $0x60] sm:$0xff]  ;;  %v1900_v19 = vld [vmem:[%s2484_s23 + $0x68] sm:$0xff] }
  0x5a   : > { %v1893_v20 = vld [vmem:[%s2484_s23 + $0x30] sm:$0xff]  ;;  %v1894_v22 = vld [vmem:[%s2484_s23 + $0x38] sm:$0xff]  ;;  %v2513_v25 = vld [vmem:[%s3390_s2] ss:$0 sm:$0xff] }
  0x5b   : > { %v1901_v21 = vld [vmem:[%s2484_s23 + $0x70] sm:$0xff]  ;;  %v1902_v23 = vld [vmem:[%s2484_s23 + $0x78] sm:$0xff]  ;;  %v1916_v29 = vld [vmem:[#allocation7 + $0x28] sm:$0xff] }
  0x5c   : > { %493 = vmatpush.bf16.msra.mxu0 %v1908_v2  ;;  %1922 = vmatpush.bf16.msra.mxu2 %v1908_v2  ;;  %v1918_v24 = vld [vmem:[#allocation7 + $0x38] sm:$0xff]  ;;  %v1917_v26 = vld [vmem:[#allocation7 + $0x30] sm:$0xff]  ;;  %v1915_v32 = vld [vmem:[#allocation7 + $0x20] sm:$0xff] }
  0x5d   : > { %1496 = vmatpush.bf16.msra.mxu1 %v1918_v24  ;;  %1928 = vmatpush.bf16.msra.mxu3 %v1918_v24  ;;  %v1914_v38 = vld [vmem:[#allocation7 + $0x18] sm:$0xff]  ;;  %v1913_v42 = vld [vmem:[#allocation7 + $0x10] sm:$0xff]  ;;  %v1912_v50 = vld [vmem:[#allocation7 + $0x8] sm:$0xff] }
  0x5e   : > { %v1911_v55 = vld [vmem:[#allocation7] sm:$0xff] }
  0x60   : > { %494 = vmatpush.bf16.msra.mxu0 %v1907_v3  ;;  %1923 = vmatpush.bf16.msra.mxu2 %v1907_v3 }
  0x61   : > { %1497 = vmatpush.bf16.msra.mxu1 %v1917_v26  ;;  %1929 = vmatpush.bf16.msra.mxu3 %v1917_v26 }
  0x64   : > { %495 = vmatpush.bf16.msra.mxu0 %v1906_v4  ;;  %1924 = vmatpush.bf16.msra.mxu2 %v1906_v4 }
  0x65   : > { %1498 = vmatpush.bf16.msra.mxu1 %v1916_v29  ;;  %1930 = vmatpush.bf16.msra.mxu3 %v1916_v29 }
  0x68   : > { %496 = vmatpush.bf16.msra.mxu0 %v1905_v5  ;;  %1925 = vmatpush.bf16.msra.mxu2 %v1905_v5 }
  0x69   : > { %1499 = vmatpush.bf16.msra.mxu1 %v1915_v32  ;;  %1931 = vmatpush.bf16.msra.mxu3 %v1915_v32 }
  0x6c   : > { %497 = vmatpush.bf16.msra.mxu0 %v1904_v6  ;;  %1926 = vmatpush.bf16.msra.mxu2 %v1904_v6 }
  0x6d   : > { %1500 = vmatpush.bf16.msra.mxu1 %v1914_v38  ;;  %1932 = vmatpush.bf16.msra.mxu3 %v1914_v38 }
  0x70   : > { %498 = vmatpush.bf16.msra.mxu0 %v1903_v7  ;;  %1927 = vmatpush.bf16.msra.mxu2 %v1903_v7 }
  0x71   : > { %1501 = vmatpush.bf16.msra.mxu1 %v1913_v42  ;;  %1933 = vmatpush.bf16.msra.mxu3 %v1913_v42 }
  0x73   : > { %499 = vmatmul.bf16.vlgmr.msra.gmra.mxu0 %v1887_v8  ;;  %539 = vmatmul.bf16.vlgmr.msra.gmra.mxu2 %v1895_v9 }
  0x75   : > { %1502 = vmatpush.bf16.msra.mxu1 %v1912_v50  ;;  %1934 = vmatpush.bf16.msra.mxu3 %v1912_v50 }
  0x79   : > { %1503 = vmatpush.bf16.msra.mxu1 %v1911_v55  ;;  %1935 = vmatpush.bf16.msra.mxu3 %v1911_v55 }
  0x83   : > { %504 = vmatmul.bf16.gmra.mxu0 %v1888_v10  ;;  %544 = vmatmul.bf16.gmra.mxu2 %v1896_v11 }
  0x93   : > { %509 = vmatmul.bf16.gmra.mxu0 %v1889_v12  ;;  %549 = vmatmul.bf16.gmra.mxu2 %v1897_v13 }
  0xa3   : > { %514 = vmatmul.bf16.gmra.mxu0 %v1890_v14  ;;  %554 = vmatmul.bf16.gmra.mxu2 %v1898_v15 }
  0xb3   : > { %519 = vmatmul.bf16.gmra.mxu0 %v1891_v16  ;;  %559 = vmatmul.bf16.gmra.mxu2 %v1899_v17 }
  0xc3   : > { %524 = vmatmul.bf16.gmra.mxu0 %v1892_v18  ;;  %564 = vmatmul.bf16.gmra.mxu2 %v1900_v19 }
  0xd3   : > { %529 = vmatmul.bf16.gmra.mxu0 %v1893_v20  ;;  %569 = vmatmul.bf16.gmra.mxu2 %v1901_v21 }
  0xe3   : > { %534 = vmatmul.bf16.gmra.mxu0 %v1894_v22  ;;  %574 = vmatmul.bf16.gmra.mxu2 %v1902_v23 }
  0xf0   : > { %v500_v27 = vpop.f32.mrf.mxu0 }
  0xf1   : > { %v2516_v28 = vadd.f32 %v2513_v25, %v500_v27 }
  0xf3   : > { %v2519_v30 = vmul.f32 0.70710677, %v2516_v28  ;;  %v2576_v29 = vmul.f32 0.5, %v2516_v28 }
  0xf5   : > { %v644_v31 = vand.u32 2147483647, %v2519_v30  ;;  %vm1252_vm0 = vcmp.ge.f32.partialorder %v2519_v30, 0.0 }
  0xf6   : > { %v540_v33 = vpop.f32.mrf.mxu2 }
  0xf7   : > { %v676_v34 = vmul.f32 0.3275911, %v644_v31  ;;  %v2523_v35 = vadd.f32 %v2513_v25, %v540_v33  ;;  %v1060_v57 = vsub.f32 0.0, %v644_v31 }
  0xf8   : > { %v502_v36 = vpop.f32.mrf.mxu0 }
  0xf9   : > { %v708_v37 = vadd.f32 1.0, %v676_v34  ;;  %v2526_v39 = vadd.f32 %v2513_v25, %v502_v36  ;;  %v2529_v40 = vmul.f32 0.70710677, %v2523_v35  ;;  %v1092_v4 = vmul.f32 %v1060_v57, %v644_v31 }
  0xfa   : > { %v2581_v38 = vmul.f32 0.5, %v2523_v35 }
  0xfb   : > { %2004 = vrcp.f32 %v708_v37  ;;  %v2532_v41 = vmul.f32 0.70710677, %v2526_v39  ;;  %v660_v45 = vand.u32 2147483647, %v2529_v40  ;;  %v1124_v16 = vmul.f32 1.442695, %v1092_v4 }
  0xfc   : > { %vm1268_vm2 = vcmp.ge.f32.partialorder %v2529_v40, 0.0 }
  0xfd   : > { %v645_v43 = vand.u32 2147483647, %v2532_v41  ;;  %v692_v53 = vmul.f32 0.3275911, %v660_v45  ;;  %v1076_v60 = vsub.f32 0.0, %v660_v45  ;;  %vm1253_vm1 = vcmp.ge.f32.partialorder %v2532_v41, 0.0 }
  0xfe   : > { %v542_v44 = vpop.f32.mrf.mxu2 }
  0xff   : > { %v677_v46 = vmul.f32 0.3275911, %v645_v43  ;;  %v2537_v47 = vadd.f32 %v2513_v25, %v542_v44  ;;  %v724_v63 = vadd.f32 1.0, %v692_v53  ;;  %v1061_v2 = vsub.f32 0.0, %v645_v43 }
 0x100   : > { %v505_v48 = vpop.f32.mrf.mxu0  ;;  %v1108_v7 = vmul.f32 %v1076_v60, %v660_v45  ;;  %v2585_v44 = vmul.f32 0.5, %v2526_v39 }
 0x101   : > { %v2539_v49 = vpop.eup %2004  ;;  %v709_v51 = vadd.f32 1.0, %v677_v46  ;;  %v2543_v54 = vmul.f32 0.70710677, %v2537_v47  ;;  %v2546_v58 = vadd.f32 %v2513_v25, %v505_v48  ;;  %v1093_v12 = vmul.f32 %v1061_v2, %v645_v43 }
 0x102   : > { %v772_v52 = vmul.f32 1.0614054, %v2539_v49  ;;  %v1156_v19 = vmul.f32 1.442695, %v1108_v7 }
 0x103   : > { %2006 = vrcp.f32 %v709_v51  ;;  %v661_v0 = vand.u32 2147483647, %v2543_v54  ;;  %v2556_v5 = vmul.f32 0.70710677, %v2546_v58  ;;  %v1126_v31 = vmul.f32 1.442695, %v1093_v12 }
 0x104   : > { %v804_v56 = vadd.f32 -1.4531521, %v772_v52  ;;  %2008 = vrcp.f32 %v724_v63  ;;  %v2607_v7 = vmul.f32 0.5, %v2546_v58  ;;  %vm1269_vm3 = vcmp.ge.f32.partialorder %v2543_v54, 0.0 }
 0x105   : > { %v693_v10 = vmul.f32 0.3275911, %v661_v0  ;;  %v1077_v13 = vsub.f32 0.0, %v661_v0  ;;  %v646_v17 = vand.u32 2147483647, %v2556_v5  ;;  %2010 = vpow2.f32 %v1124_v16 }
 0x106   : > { %v545_v59 = vpop.f32.mrf.mxu2  ;;  %v836_v62 = vmul.f32 %v2539_v49, %v804_v56  ;;  %2012 = vpow2.f32 %v1156_v19  ;;  %vm1254_vm4 = vcmp.ge.f32.partialorder %v2556_v5, 0.0 }
 0x107   : > { %v2549_v61 = vadd.f32 %v2513_v25, %v545_v59  ;;  %v725_v22 = vadd.f32 1.0, %v693_v10  ;;  %v1109_v32 = vmul.f32 %v1077_v13, %v661_v0  ;;  %v678_v34 = vmul.f32 0.3275911, %v646_v17 }
 0x108   : > { %v507_v1 = vpop.f32.mrf.mxu0  ;;  %v868_v6 = vadd.f32 1.4214138, %v836_v62  ;;  %v1062_v36 = vsub.f32 0.0, %v646_v17 }
 0x109   : > { %v2553_v3 = vpop.eup %2006  ;;  %v2559_v8 = vmul.f32 0.70710677, %v2549_v61  ;;  %v2563_v11 = vadd.f32 %v2513_v25, %v507_v1  ;;  %2014 = vrcp.f32 %v725_v22  ;;  %v1158_v46 = vmul.f32 1.442695, %v1109_v32 }
 0x10a   : > { %v773_v9 = vmul.f32 1.0614054, %v2553_v3  ;;  %v900_v15 = vmul.f32 %v2539_v49, %v868_v6  ;;  %v2578_v33 = vpop.eup %2008  ;;  %2016 = vpow2.f32 %v1126_v31  ;;  %v710_v35 = vadd.f32 1.0, %v678_v34 }
 0x10b   : > { %v662_v20 = vand.u32 2147483647, %v2559_v8  ;;  %v2570_v23 = vmul.f32 0.70710677, %v2563_v11  ;;  %v1094_v51 = vmul.f32 %v1062_v36, %v646_v17  ;;  %v788_v39 = vmul.f32 1.0614054, %v2578_v33  ;;  %v2011_v60 = vpop.eup %2010 }
 0x10c   : > { %v805_v14 = vadd.f32 -1.4531521, %v773_v9  ;;  %v932_v27 = vadd.f32 -0.28449672, %v900_v15  ;;  %v2601_v4 = vpop.eup %2012  ;;  %v2604_v6 = vmul.f32 0.5, %v2537_v47  ;;  %2018 = vpow2.f32 %v1158_v46 }
 0x10d   : > { %v1078_v42 = vsub.f32 0.0, %v662_v20  ;;  %v647_v28 = vand.u32 2147483647, %v2570_v23  ;;  %v694_v55 = vmul.f32 0.3275911, %v662_v20  ;;  %v2610_v9 = vmul.f32 0.5, %v2549_v61 }
 0x10e   : > { %v547_v18 = vpop.f32.mrf.mxu2  ;;  %v837_v21 = vmul.f32 %v2553_v3, %v805_v14  ;;  %v964_v43 = vmul.f32 %v2539_v49, %v932_v27  ;;  %v1128_v12 = vmul.f32 1.442695, %v1094_v51  ;;  %v820_v14 = vadd.f32 -1.4531521, %v788_v39 }
 0x10f   : > { %v2573_v24 = vadd.f32 %v2513_v25, %v547_v18  ;;  %v1110_v56 = vmul.f32 %v1078_v42, %v662_v20  ;;  %v1063_v57 = vsub.f32 0.0, %v647_v28  ;;  %v679_v62 = vmul.f32 0.3275911, %v647_v28  ;;  %v2612_v10 = vpop.eup %2014 }
 0x110   : > { %v510_v26 = vpop.f32.mrf.mxu0  ;;  %v869_v37 = vadd.f32 1.4214138, %v837_v21  ;;  %v996_v50 = vadd.f32 0.2548296, %v964_v43  ;;  %v2017_v15 = vpop.eup %2016  ;;  %v726_v16 = vadd.f32 1.0, %v694_v55  ;;  %2020 = vrcp.f32 %v710_v35 }
 0x111   : > { %v2589_v45 = vmul.f32 0.70710677, %v2573_v24  ;;  %v2593_v52 = vadd.f32 %v2513_v25, %v510_v26  ;;  %v1160_v47 = vmul.f32 1.442695, %v1110_v56  ;;  %v1095_v17 = vmul.f32 %v1063_v57, %v647_v28 }
 0x112   : > { %v901_v48 = vmul.f32 %v2553_v3, %v869_v37  ;;  %v1028_v2 = vmul.f32 %v2539_v49, %v996_v50  ;;  %v711_v58 = vadd.f32 1.0, %v679_v62  ;;  %v789_v26 = vmul.f32 1.0614054, %v2612_v10  ;;  %v2628_v36 = vpop.eup %2018 }
 0x113   : > { %v663_v63 = vand.u32 2147483647, %v2589_v45  ;;  %v2615_v13 = vmul.f32 0.70710677, %v2593_v52  ;;  %2022 = vpow2.f32 %v1128_v12  ;;  %v852_v34 = vmul.f32 %v2578_v33, %v820_v14 }
 0x114   : > { %v933_v59 = vadd.f32 -0.28449672, %v901_v48  ;;  %v1188_v18 = vmul.f32 %v2011_v60, %v1028_v2  ;;  %2024 = vrcp.f32 %v726_v16  ;;  %v1130_v37 = vmul.f32 1.442695, %v1095_v17 }
 0x115   : > { %v695_v19 = vmul.f32 0.3275911, %v663_v63  ;;  %v1079_v20 = vsub.f32 0.0, %v663_v63  ;;  %v648_v27 = vand.u32 2147483647, %v2615_v13  ;;  %2026 = vpow2.f32 %v1160_v47 }
 0x116   : > { %v550_v53 = vpop.f32.mrf.mxu2  ;;  %v965_v49 = vmul.f32 %v2553_v3, %v933_v59  ;;  %v1220_v32 = vsub.f32 1.0, %v1188_v18  ;;  %2028 = vrcp.f32 %v711_v58  ;;  %v2639_v39 = vpop.eup %2020  ;;  %v2648_v59 = vmul.f32 0.5, %v2563_v11 }
 0x117   : > { %v2598_v0 = vadd.f32 %v2513_v25, %v550_v53  ;;  %v727_v28 = vadd.f32 1.0, %v695_v19  ;;  %v1064_v46 = vsub.f32 0.0, %v648_v27  ;;  %v1111_v35 = vmul.f32 %v1079_v20, %v663_v63 }
 0x118   : > { %v512_v1 = vpop.f32.mrf.mxu0  ;;  %v997_v22 = vadd.f32 0.2548296, %v965_v49  ;;  %v821_v53 = vadd.f32 -1.4531521, %v789_v26  ;;  %v1284_v57 = vsub.f32 0.0, %v1220_v32  ;;  %2030 = vpow2.f32 %v1130_v37 }
 0x119   : > { %v2619_v61 = vmul.f32 0.70710677, %v2598_v0  ;;  %v2623_v21 = vadd.f32 %v2513_v25, %v512_v1  ;;  %v2651_v60 = vmul.f32 0.5, %v2573_v24  ;;  %v680_v62 = vmul.f32 0.3275911, %v648_v27  ;;  %v2653_v63 = vpop.eup %2022 }
 0x11a   : > { %v1029_v43 = vmul.f32 %v2553_v3, %v997_v22  ;;  %2032 = vrcp.f32 %v727_v28  ;;  %v2656_v1 = vmul.f32 0.5, %v2593_v52  ;;  %v1096_v2 = vmul.f32 %v1064_v46, %v648_v27  ;;  %v2658_v49 = vpop.eup %2024 }
 0x11b   : > { %v664_v48 = vand.u32 2147483647, %v2619_v61  ;;  %v2637_v51 = vmul.f32 0.70710677, %v2623_v21  ;;  %v1162_v14 = vmul.f32 1.442695, %v1111_v35  ;;  %v853_v16 = vmul.f32 %v2612_v10, %v821_v53  ;;  %v2662_v47 = vpop.eup %2026 }
 0x11c   : > { %v1189_v56 = vmul.f32 %v2017_v15, %v1029_v43  ;;  %v1316_v52 = vsel %vm1252_vm0, %v1220_v32, %v1284_v57  ;;  %v884_v58 = vadd.f32 1.4214138, %v852_v34  ;;  %v2670_v19 = vpop.eup %2028  ;;  %v712_v20 = vadd.f32 1.0, %v680_v62 }
 0x11d   : > { %v1080_v12 = vsub.f32 0.0, %v664_v48  ;;  %v649_v15 = vand.u32 2147483647, %v2637_v51  ;;  %v696_v22 = vmul.f32 0.3275911, %v664_v48  ;;  %v2676_v37 = vmul.f32 0.5, %v2598_v0 }
 0x11e   : > { %v552_v31 = vpop.f32.mrf.mxu2  ;;  %v1221_v11 = vsub.f32 1.0, %v1189_v56  ;;  %2034 = vpow2.f32 %v1162_v14  ;;  %v1348_v32 = vadd.f32 1.0, %v1316_v52  ;;  %v885_v34 = vadd.f32 1.4214138, %v853_v16 }
 0x11f   : > { %v2631_v42 = vadd.f32 %v2513_v25, %v552_v31  ;;  %v1132_v31 = vmul.f32 1.442695, %v1096_v2  ;;  %3439 = vst [vmem:[#allocation13_spill] sm:$0xff] %v2676_v37  ;;  %v1112_v43 = vmul.f32 %v1080_v12, %v664_v48  ;;  %v1065_v28 = vsub.f32 0.0, %v649_v15 }
 0x120   : > { %v515_v50 = vpop.f32.mrf.mxu0  ;;  %v1285_v27 = vsub.f32 0.0, %v1221_v11  ;;  %v681_v30 = vmul.f32 0.3275911, %v649_v15  ;;  %v916_v0 = vmul.f32 %v2578_v33, %v884_v58  ;;  %2036 = vrcp.f32 %v712_v20 }
 0x121   : > { %v2642_v55 = vmul.f32 0.70710677, %v2631_v42  ;;  %v2645_v3 = vadd.f32 %v2513_v25, %v515_v50  ;;  %v2678_v50 = vpop.eup %2030  ;;  %v728_v48 = vadd.f32 1.0, %v696_v22  ;;  %v1164_v12 = vmul.f32 1.442695, %v1112_v43 }
 0x122   : > { %v2680_v35 = vpop.eup %2032  ;;  %v1317_v57 = vsel %vm1253_vm1, %v1221_v11, %v1285_v27  ;;  %v1097_v14 = vmul.f32 %v1065_v28, %v649_v15  ;;  %v917_v11 = vmul.f32 %v2612_v10, %v885_v34  ;;  %2038 = vpow2.f32 %v1132_v31 }
 0x123   : > { %v665_v24 = vand.u32 2147483647, %v2642_v55  ;;  %v2666_v17 = vmul.f32 0.70710677, %v2645_v3  ;;  %v1349_v2 = vadd.f32 1.0, %v1317_v57  ;;  %v713_v58 = vadd.f32 1.0, %v681_v30 }
 0x124   : > { %v948_v27 = vadd.f32 -0.28449672, %v916_v0  ;;  %v2695_v37 = vpop.eup %2034  ;;  %2040 = vrcp.f32 %v728_v48  ;;  %vm1255_vm5 = vcmp.ge.f32.partialorder %v2570_v23, 0.0  ;;  %vm1270_vm6 = vcmp.ge.f32.partialorder %v2559_v8, 0.0 }
 0x125   : > { %3438 = vst [vmem:[#allocation12_spill] sm:$0xff] %v2666_v17  ;;  %v1081_v53 = vsub.f32 0.0, %v665_v24  ;;  %v650_v56 = vand.u32 2147483647, %v2666_v17  ;;  %v1380_v17 = vmul.f32 %v1348_v32, %v2576_v29  ;;  %v1381_v41 = vmul.f32 %v1349_v2, %v2585_v44 }
 0x126   : > { %v555_v18 = vpop.f32.mrf.mxu2  ;;  %v1134_v29 = vmul.f32 1.442695, %v1097_v14  ;;  %v949_v32 = vadd.f32 -0.28449672, %v917_v11  ;;  %v980_v44 = vmul.f32 %v2578_v33, %v948_v27  ;;  %v2702_v34 = vpop.eup %2036  ;;  %2042 = vpow2.f32 %v1164_v12 }
 0x127   : > { %v2673_v26 = vadd.f32 %v2513_v25, %v555_v18  ;;  %v697_v18 = vmul.f32 0.3275911, %v665_v24  ;;  %v1066_v16 = vsub.f32 0.0, %v650_v56  ;;  %v1113_v20 = vmul.f32 %v1081_v53, %v665_v24 }
 0x128   : > { %v517_v46 = vpop.f32.mrf.mxu0  ;;  %v682_v43 = vmul.f32 0.3275911, %v650_v56  ;;  %v1412_v28 = vpack.c.bf16 %v1381_v41, %v1380_v17  ;;  %v981_v0 = vmul.f32 %v2612_v10, %v949_v32  ;;  %v1012_v48 = vadd.f32 0.2548296, %v980_v44  ;;  %v2715_v14 = vpop.eup %2038 }
 0x129   : > { %v2687_v62 = vmul.f32 0.70710677, %v2673_v26  ;;  %v2690_v52 = vadd.f32 %v2513_v25, %v517_v46  ;;  %v729_v24 = vadd.f32 1.0, %v697_v18  ;;  %v1098_v31 = vmul.f32 %v1066_v16, %v650_v56 }
 0x12a   : > { %1504 = vmatmul.bf16.vlgmr.msra.gmra.mxu1 %v1412_v28  ;;  %v1166_v57 = vmul.f32 1.442695, %v1113_v20  ;;  %v2713_v2 = vmul.f32 0.5, %v2623_v21  ;;  %2044 = vrcp.f32 %v713_v58  ;;  %v714_v12 = vadd.f32 1.0, %v682_v43 }
 0x12b   : > { %3440 = vst [vmem:[#allocation14_spill] sm:$0xff] %v2687_v62  ;;  %v666_v15 = vand.u32 2147483647, %v2687_v62  ;;  %v2705_v30 = vmul.f32 0.70710677, %v2690_v52  ;;  %2046 = vpow2.f32 %v1134_v29  ;;  %v1044_v16 = vmul.f32 %v2578_v33, %v1012_v48 }
 0x12c   : > { %3443 = vst [vmem:[#allocation17_spill] sm:$0xff] %v2713_v2  ;;  %v1013_v18 = vadd.f32 0.2548296, %v981_v0  ;;  %2048 = vrcp.f32 %v729_v24  ;;  %v1136_v11 = vmul.f32 1.442695, %v1098_v31  ;;  %v2731_v29 = vmul.f32 0.5, %v2631_v42 }
 0x12d   : > { %3441 = vst [vmem:[#allocation15_spill] sm:$0xff] %v2705_v30  ;;  %v1082_v56 = vsub.f32 0.0, %v666_v15  ;;  %v698_v20 = vmul.f32 0.3275911, %v666_v15  ;;  %v651_v21 = vand.u32 2147483647, %v2705_v30  ;;  %2050 = vpow2.f32 %v1166_v57 }
 0x12e   : > { %v557_v22 = vpop.f32.mrf.mxu2  ;;  %v1045_v27 = vmul.f32 %v2612_v10, %v1013_v18  ;;  %v1204_v43 = vmul.f32 %v2601_v4, %v1044_v16  ;;  %3444 = vst [vmem:[#allocation18_spill] sm:$0xff] %v2731_v29  ;;  %2052 = vrcp.f32 %v714_v12  ;;  %v2743_v4 = vmul.f32 0.5, %v2645_v3 }
 0x12f   : > { %v2699_v46 = vadd.f32 %v2513_v25, %v557_v22  ;;  %v2723_v22 = vpop.eup %2040  ;;  %v1114_v32 = vmul.f32 %v1082_v56, %v666_v15  ;;  %v1067_v44 = vsub.f32 0.0, %v651_v21  ;;  %2054 = vpow2.f32 %v1136_v11 }
 0x130   : > { %v520_v53 = vpop.f32.mrf.mxu0  ;;  %v2728_v28 = vpop.eup %2042  ;;  %v1205_v24 = vmul.f32 %v2628_v36, %v1045_v27  ;;  %v1236_v31 = vsub.f32 1.0, %v1204_v43  ;;  %3446 = vst [vmem:[#allocation20_spill] sm:$0xff] %v2743_v4  ;;  %v2746_v42 = vmul.f32 0.5, %v2673_v26  ;;  %v730_v15 = vadd.f32 1.0, %v698_v20 }
 0x131   : > { %v2708_v17 = vmul.f32 0.70710677, %v2699_v46  ;;  %v2719_v41 = vadd.f32 %v2513_v25, %v520_v53  ;;  %v2740_v10 = vpop.eup %2044  ;;  %v683_v36 = vmul.f32 0.3275911, %v651_v21  ;;  %v1168_v16 = vmul.f32 1.442695, %v1114_v32 }
 0x132   : > { %3447 = vst [vmem:[#allocation21_spill] sm:$0xff] %v2746_v42  ;;  %v2748_v0 = vpop.eup %2046  ;;  %v1237_v12 = vsub.f32 1.0, %v1205_v24  ;;  %v1300_v56 = vsub.f32 0.0, %v1236_v31  ;;  %v1099_v27 = vmul.f32 %v1067_v44, %v651_v21  ;;  %v774_v3 = vmul.f32 1.0614054, %v2639_v39 }
 0x133   : > { %3442 = vst [vmem:[#allocation16_spill] sm:$0xff] %v2708_v17  ;;  %v667_v58 = vand.u32 2147483647, %v2708_v17  ;;  %v2735_v53 = vmul.f32 0.70710677, %v2719_v41  ;;  %v2750_v18 = vpop.eup %2048  ;;  %2056 = vrcp.f32 %v730_v15  ;;  %v2764_v21 = vmul.f32 0.5, %v2690_v52 }
 0x134   : > { %v2753_v4 = vpop.eup %2050  ;;  %v1301_v11 = vsub.f32 0.0, %v1237_v12  ;;  %v1332_v26 = vsel %vm1268_vm2, %v1236_v31, %v1300_v56  ;;  %v775_v44 = vmul.f32 1.0614054, %v2670_v19  ;;  %v715_v17 = vadd.f32 1.0, %v683_v36 }
 0x135   : > { %3445 = vst [vmem:[#allocation19_spill] sm:$0xff] %v2735_v53  ;;  %v1083_v48 = vsub.f32 0.0, %v667_v58  ;;  %v699_v43 = vmul.f32 0.3275911, %v667_v58  ;;  %v652_v20 = vand.u32 2147483647, %v2735_v53  ;;  %v2761_v24 = vpop.eup %2052  ;;  %2058 = vpow2.f32 %v1168_v16 }
 0x136   : > { %v560_v33 = vpop.f32.mrf.mxu2  ;;  %3449 = vst [vmem:[#allocation23_spill] sm:$0xff] %v2764_v21  ;;  %v1364_v32 = vadd.f32 1.0, %v1332_v26  ;;  %v1333_v40 = vsel %vm1269_vm3, %v1237_v12, %v1301_v11  ;;  %v2772_v56 = vpop.eup %2054  ;;  %v1138_v53 = vmul.f32 1.442695, %v1099_v27  ;;  %v806_v15 = vadd.f32 -1.4531521, %v774_v3 }
 0x137   : > { %v2738_v57 = vadd.f32 %v2513_v25, %v560_v33  ;;  %v1115_v62 = vmul.f32 %v1083_v48, %v667_v58  ;;  %v1365_v30 = vadd.f32 1.0, %v1333_v40  ;;  %v731_v52 = vadd.f32 1.0, %v699_v43 }
 0x138   : > { %v522_v33 = vpop.f32.mrf.mxu0  ;;  %v684_v21 = vmul.f32 0.3275911, %v652_v20  ;;  %v1068_v26 = vsub.f32 0.0, %v652_v20  ;;  %v1396_v58 = vmul.f32 %v1364_v32, %v2581_v38  ;;  %v807_v36 = vadd.f32 -1.4531521, %v775_v44 }
 0x139   : > { %v2759_v42 = vmul.f32 0.70710677, %v2738_v57  ;;  %v2770_v31 = vadd.f32 %v2513_v25, %v522_v33  ;;  %v1397_v54 = vmul.f32 %v1365_v30, %v2604_v6  ;;  %v838_v48 = vmul.f32 %v2639_v39, %v806_v15  ;;  %v2784_v43 = vpop.eup %2056 }
 0x13a   : > { %2060 = vrcp.f32 %v715_v17  ;;  %v1170_v12 = vmul.f32 1.442695, %v1115_v62  ;;  %v839_v3 = vmul.f32 %v2670_v19, %v807_v36  ;;  %v716_v6 = vadd.f32 1.0, %v684_v21 }
 0x13b   : > { %3448 = vst [vmem:[#allocation22_spill] sm:$0xff] %v2759_v42  ;;  %v668_v2 = vand.u32 2147483647, %v2759_v42  ;;  %v2779_v16 = vmul.f32 0.70710677, %v2770_v31  ;;  %2062 = vpow2.f32 %v1138_v53  ;;  %v1420_v33 = vpack.c.bf16 %v1397_v54, %v1396_v58  ;;  %v2787_v32 = vpop.eup %2058 }
 0x13c   : > { %v870_v38 = vadd.f32 1.4214138, %v838_v48  ;;  %2064 = vrcp.f32 %v731_v52  ;;  %v1100_v30 = vmul.f32 %v1068_v26, %v652_v20  ;;  %v871_v62 = vadd.f32 1.4214138, %v839_v3 }
 0x13d   : > { %3450 = vst [vmem:[#allocation24_spill] sm:$0xff] %v2779_v16  ;;  %v1084_v11 = vsub.f32 0.0, %v668_v2  ;;  %1544 = vmatmul.bf16.vlgmr.msra.gmra.mxu3 %v1420_v33  ;;  %v791_v44 = vmul.f32 1.0614054, %v2680_v35  ;;  %2066 = vpow2.f32 %v1170_v12  ;;  %v700_v53 = vmul.f32 0.3275911, %v668_v2 }
 0x13e   : > { %v562_v29 = vpop.f32.mrf.mxu2  ;;  %v902_v17 = vmul.f32 %v2639_v39, %v870_v38  ;;  %v653_v40 = vand.u32 2147483647, %v2779_v16  ;;  %v903_v20 = vmul.f32 %v2670_v19, %v871_v62  ;;  %v2800_v36 = vmul.f32 0.5, %v2699_v46 }
 0x13f   : > { %v2782_v27 = vadd.f32 %v2513_v25, %v562_v29  ;;  %v790_v29 = vmul.f32 1.0614054, %v2658_v49  ;;  %v823_v26 = vadd.f32 -1.4531521, %v791_v44  ;;  %2068 = vrcp.f32 %v716_v6 }
 0x140   : > { %v934_v21 = vadd.f32 -0.28449672, %v902_v17  ;;  %v525_v58 = vpop.f32.mrf.mxu0  ;;  %v2797_v54 = vpop.eup %2060  ;;  %3452 = vst [vmem:[#allocation26_spill] sm:$0xff] %v2800_v36  ;;  %v1140_v48 = vmul.f32 1.442695, %v1100_v30  ;;  %v1116_v12 = vmul.f32 %v1084_v11, %v668_v2  ;;  %v1069_v16 = vsub.f32 0.0, %v653_v40 }
 0x141   : > { %v2794_v15 = vmul.f32 0.70710677, %v2782_v27  ;;  %v822_v52 = vadd.f32 -1.4531521, %v790_v29  ;;  %v2802_v33 = vpop.eup %2062  ;;  %v935_v3 = vadd.f32 -0.28449672, %v903_v20  ;;  %v855_v62 = vmul.f32 %v2680_v35, %v823_v26 }
 0x142   : > { %v966_v38 = vmul.f32 %v2639_v39, %v934_v21  ;;  %v2807_v17 = vpop.eup %2064  ;;  %v732_v29 = vadd.f32 1.0, %v700_v53  ;;  %v685_v44 = vmul.f32 0.3275911, %v653_v40  ;;  %v2815_v20 = vmul.f32 0.5, %v2719_v41 }
 0x143   : > { %3451 = vst [vmem:[#allocation25_spill] sm:$0xff] %v2794_v15  ;;  %v854_v42 = vmul.f32 %v2658_v49, %v822_v52  ;;  %v669_v46 = vand.u32 2147483647, %v2794_v15  ;;  %v967_v6 = vmul.f32 %v2670_v19, %v935_v3  ;;  %v887_v11 = vadd.f32 1.4214138, %v855_v62  ;;  %v2811_v36 = vpop.eup %2066 }
 0x144   : > { %v998_v30 = vadd.f32 0.2548296, %v966_v38  ;;  %3453 = vst [vmem:[#allocation27_spill] sm:$0xff] %v2815_v20  ;;  %2070 = vpow2.f32 %v1140_v48  ;;  %v1172_v21 = vmul.f32 1.442695, %v1116_v12  ;;  %v526_v53 = vadd.f32 %v2513_v25, %v525_v58 }
 0x145   : > { %v886_v2 = vadd.f32 1.4214138, %v854_v42  ;;  %v999_v52 = vadd.f32 0.2548296, %v967_v6  ;;  %v919_v3 = vmul.f32 %v2680_v35, %v887_v11  ;;  %v2821_v38 = vpop.eup %2068  ;;  %2072 = vrcp.f32 %v732_v29 }
 0x146   : > { %v1030_v26 = vmul.f32 %v2639_v39, %v998_v30  ;;  %v565_v42 = vpop.f32.mrf.mxu2  ;;  %3454 = vst [vmem:[#allocation28_spill] sm:$0xff] %v2821_v38  ;;  %v717_v62 = vadd.f32 1.0, %v685_v44  ;;  %v1101_v41 = vmul.f32 %v1069_v16, %v653_v40  ;;  %v701_v20 = vmul.f32 0.3275911, %v669_v46 }
 0x147   : > { %v918_v15 = vmul.f32 %v2658_v49, %v886_v2  ;;  %v1031_v48 = vmul.f32 %v2670_v19, %v999_v52  ;;  %v951_v6 = vadd.f32 -0.28449672, %v919_v3  ;;  %2074 = vpow2.f32 %v1172_v21 }
 0x148   : > { %v1190_v58 = vmul.f32 %v2653_v63, %v1030_v26  ;;  %v1085_v39 = vsub.f32 0.0, %v669_v46  ;;  %v2826_v30 = vmul.f32 0.70710677, %v526_v53  ;;  %v2829_v2 = vadd.f32 %v2513_v25, %v565_v42  ;;  %v527_v40 = vpop.f32.mrf.mxu0 }
 0x149   : > { %v950_v12 = vadd.f32 -0.28449672, %v918_v15  ;;  %v1191_v11 = vmul.f32 %v2678_v50, %v1031_v48  ;;  %v983_v16 = vmul.f32 %v2680_v35, %v951_v6  ;;  %v2837_v63 = vmul.f32 0.5, %v2738_v57 }
 0x14a   : > { %v1222_v38 = vsub.f32 1.0, %v1190_v58  ;;  %v2834_v19 = vpop.eup %2070  ;;  %2076 = vrcp.f32 %v717_v62  ;;  %v1142_v15 = vmul.f32 1.442695, %v1101_v41  ;;  %v733_v44 = vadd.f32 1.0, %v701_v20 }
 0x14b   : > { %v982_v29 = vmul.f32 %v2658_v49, %v950_v12  ;;  %v1223_v21 = vsub.f32 1.0, %v1191_v11  ;;  %v1015_v3 = vadd.f32 0.2548296, %v983_v16  ;;  %v2839_v42 = vpop.eup %2072  ;;  %vm1271_vm7 = vcmp.ge.f32.partialorder %v2589_v45, 0.0 }
 0x14c   : > { %v1286_v52 = vsub.f32 0.0, %v1222_v38  ;;  %v1117_v50 = vmul.f32 %v1085_v39, %v669_v46  ;;  %v654_v48 = vand.u32 2147483647, %v2826_v30  ;;  %v2845_v58 = vmul.f32 0.70710677, %v2829_v2 }
 0x14d   : > { %v1014_v26 = vadd.f32 0.2548296, %v982_v29  ;;  %v2848_v57 = vadd.f32 %v2513_v25, %v527_v40  ;;  %v1287_v20 = vsub.f32 0.0, %v1223_v21  ;;  %v1047_v12 = vmul.f32 %v2680_v35, %v1015_v3  ;;  %v2854_v6 = vpop.eup %2074 }
 0x14e   : > { %v1318_v62 = vsel %vm1254_vm4, %v1222_v38, %v1286_v52  ;;  %v2857_v46 = vmul.f32 0.5, %v2770_v31  ;;  %2078 = vpow2.f32 %v1142_v15  ;;  %v2860_v11 = vmul.f32 0.5, %v2782_v27  ;;  %v567_v23 = vpop.f32.mrf.mxu2 }
 0x14f   : > { %v1046_v41 = vmul.f32 %v2658_v49, %v1014_v26  ;;  %v1350_v39 = vadd.f32 1.0, %v1318_v62  ;;  %v1319_v29 = vsel %vm1255_vm5, %v1223_v21, %v1287_v20  ;;  %v1207_v38 = vmul.f32 %v2695_v37, %v1047_v12 }
 0x150   : > { %v1070_v49 = vsub.f32 0.0, %v654_v48  ;;  %v2866_v16 = vpop.eup %2076  ;;  %v1351_v35 = vadd.f32 1.0, %v1319_v29  ;;  %2080 = vrcp.f32 %v733_v44  ;;  %v1174_v40 = vmul.f32 1.442695, %v1117_v50 }
 0x151   : > { %v1206_v5 = vmul.f32 %v2662_v47, %v1046_v41  ;;  %v2868_v31 = vmul.f32 0.5, %v526_v53  ;;  %v1239_v52 = vsub.f32 1.0, %v1207_v38  ;;  %v670_v27 = vand.u32 2147483647, %v2845_v58 }
 0x152   : > { %v2872_v26 = vmul.f32 0.70710677, %v2848_v57  ;;  %v1382_v47 = vmul.f32 %v1350_v39, %v2607_v7  ;;  %v1383_v37 = vmul.f32 %v1351_v35, %v2648_v59  ;;  %v776_v21 = vmul.f32 1.0614054, %v2702_v34 }
 0x153   : > { %v1238_v15 = vsub.f32 1.0, %v1206_v5  ;;  %v777_v3 = vmul.f32 1.0614054, %v2740_v10  ;;  %v1303_v50 = vsub.f32 0.0, %v1239_v52  ;;  %v686_v53 = vmul.f32 0.3275911, %v654_v48 }
 0x154   : > { %v1102_v20 = vmul.f32 %v1070_v49, %v654_v48  ;;  %v2878_v62 = vpop.eup %2078  ;;  %v1413_v41 = vpack.c.bf16 %v1383_v37, %v1382_v47  ;;  %v808_v12 = vadd.f32 -1.4531521, %v776_v21  ;;  %v2881_v5 = vadd.f32 %v2513_v25, %v567_v23 }
 0x155   : > { %v1302_v44 = vsub.f32 0.0, %v1238_v15  ;;  %v809_v29 = vadd.f32 -1.4531521, %v777_v3  ;;  %v1335_v59 = vsel %vm1271_vm7, %v1239_v52, %v1303_v50  ;;  %v1086_v39 = vsub.f32 0.0, %v670_v27 }
 0x156   : > { %v655_v38 = vand.u32 2147483647, %v2872_v26  ;;  %v2888_v35 = vpop.eup %2080  ;;  %1509 = vmatmul.bf16.gmra.mxu1 %v1413_v41  ;;  %v1367_v49 = vadd.f32 1.0, %v1335_v59  ;;  %v840_v47 = vmul.f32 %v2702_v34, %v808_v12  ;;  %2082 = vpow2.f32 %v1174_v40 }
 0x157   : > { %v1334_v7 = vsel %vm1270_vm6, %v1238_v15, %v1302_v44  ;;  %v841_v37 = vmul.f32 %v2740_v10, %v809_v29  ;;  %v718_v23 = vadd.f32 1.0, %v686_v53  ;;  %v1144_v21 = vmul.f32 1.442695, %v1102_v20  ;;  %v530_v20 = vpop.f32.mrf.mxu0 }
 0x158   : > { %v1366_v48 = vadd.f32 1.0, %v1334_v7  ;;  %v2893_v8 = vmul.f32 0.70710677, %v2881_v5  ;;  %v1399_v15 = vmul.f32 %v1367_v49, %v2651_v60  ;;  %v872_v52 = vadd.f32 1.4214138, %v840_v47 }
 0x159   : > { %v873_v3 = vadd.f32 1.4214138, %v841_v37  ;;  %v702_v44 = vmul.f32 0.3275911, %v670_v27  ;;  %v1118_v50 = vmul.f32 %v1086_v39, %v670_v27  ;;  %v687_v41 = vmul.f32 0.3275911, %v655_v38 }
 0x15a   : > { %v1398_v45 = vmul.f32 %v1366_v48, %v2610_v9  ;;  %v792_v7 = vmul.f32 1.0614054, %v2723_v22  ;;  %v904_v29 = vmul.f32 %v2702_v34, %v872_v52  ;;  %v793_v53 = vmul.f32 1.0614054, %v2750_v18 }
 0x15b   : > { %v905_v40 = vmul.f32 %v2740_v10, %v873_v3  ;;  %v2902_v59 = vmul.f32 0.5, %v2829_v2  ;;  %v1071_v9 = vsub.f32 0.0, %v655_v38  ;;  %v671_v60 = vand.u32 2147483647, %v2893_v8 }
 0x15c   : > { %v1421_v12 = vpack.c.bf16 %v1399_v15, %v1398_v45  ;;  %v824_v48 = vadd.f32 -1.4531521, %v792_v7  ;;  %2084 = vrcp.f32 %v718_v23  ;;  %v936_v27 = vadd.f32 -0.28449672, %v904_v29  ;;  %v2905_v47 = vpop.eup %2082 }
 0x15d   : > { %3455 = vst [vmem:[#allocation29_spill] sm:$0xff] %v2902_v59  ;;  %v937_v39 = vadd.f32 -0.28449672, %v905_v40  ;;  %v825_v49 = vadd.f32 -1.4531521, %v793_v53  ;;  %v734_v37 = vadd.f32 1.0, %v702_v44  ;;  %v531_v2 = vadd.f32 %v2513_v25, %v530_v20  ;;  %v570_v59 = vpop.f32.mrf.mxu2 }
 0x15e   : > { %1549 = vmatmul.bf16.gmra.mxu3 %v1421_v12  ;;  %v2908_v45 = vmul.f32 0.5, %v2848_v57  ;;  %v856_v15 = vmul.f32 %v2723_v22, %v824_v48  ;;  %v1176_v52 = vmul.f32 1.442695, %v1118_v50  ;;  %v968_v3 = vmul.f32 %v2702_v34, %v936_v27 }
 0x15f   : > { %v969_v7 = vmul.f32 %v2740_v10, %v937_v39  ;;  %v857_v23 = vmul.f32 %v2750_v18, %v825_v49  ;;  %v719_v12 = vadd.f32 1.0, %v687_v41  ;;  %v1103_v29 = vmul.f32 %v1071_v9, %v655_v38 }
 0x160   : > { %3456 = vst [vmem:[#allocation30_spill] sm:$0xff] %v2908_v45  ;;  %v1087_v40 = vsub.f32 0.0, %v671_v60  ;;  %v888_v53 = vadd.f32 1.4214138, %v856_v15  ;;  %2086 = vpow2.f32 %v1144_v21  ;;  %v1000_v44 = vadd.f32 0.2548296, %v968_v3 }
 0x161   : > { %v1001_v57 = vadd.f32 0.2548296, %v969_v7  ;;  %v889_v45 = vadd.f32 1.4214138, %v857_v23  ;;  %vm1256_vm8 = vcmp.ge.f32.partialorder %v2615_v13, 0.0  ;;  %vm1257_vm9 = vcmp.ge.f32.partialorder %v2637_v51, 0.0 }
 0x162   : > { %2088 = vrcp.f32 %v734_v37  ;;  %v703_v50 = vmul.f32 0.3275911, %v671_v60  ;;  %v920_v20 = vmul.f32 %v2723_v22, %v888_v53  ;;  %v2918_v48 = vmul.f32 0.70710677, %v531_v2  ;;  %v2920_v27 = vpop.eup %2084 }
 0x163   : > { %v1032_v38 = vmul.f32 %v2702_v34, %v1000_v44  ;;  %v1033_v41 = vmul.f32 %v2740_v10, %v1001_v57  ;;  %v921_v21 = vmul.f32 %v2750_v18, %v889_v45  ;;  %v2926_v9 = vadd.f32 %v2513_v25, %v570_v59  ;;  %v532_v25 = vpop.f32.mrf.mxu0 }
 0x164   : > { %3457 = vst [vmem:[#allocation31_spill] sm:$0xff] %v2918_v48  ;;  %2090 = vpow2.f32 %v1176_v52  ;;  %v1146_v39 = vmul.f32 1.442695, %v1103_v29  ;;  %v1119_v49 = vmul.f32 %v1087_v40, %v671_v60  ;;  %v952_v37 = vadd.f32 -0.28449672, %v920_v20 }
 0x165   : > { %2092 = vrcp.f32 %v719_v12  ;;  %v1192_v15 = vmul.f32 %v2715_v14, %v1032_v38  ;;  %v1193_v3 = vmul.f32 %v2748_v0, %v1033_v41  ;;  %v953_v7 = vadd.f32 -0.28449672, %v921_v21  ;;  %v572_v51 = vpop.f32.mrf.mxu2 }
 0x166   : > { %v2931_v23 = vmul.f32 0.5, %v2881_v5  ;;  %v735_v34 = vadd.f32 1.0, %v703_v50  ;;  %v984_v10 = vmul.f32 %v2723_v22, %v952_v37  ;;  %v656_v45 = vand.u32 2147483647, %v2918_v48  ;;  %v2935_v59 = vpop.eup %2086  ;;  %v2949_v50 = vld [vmem:[%s3390_s2] ss:$0 sm:$0xff] }
 0x167   : > { %v1224_v52 = vsub.f32 1.0, %v1192_v15  ;;  %v1225_v60 = vsub.f32 1.0, %v1193_v3  ;;  %v985_v12 = vmul.f32 %v2750_v18, %v953_v7  ;;  %v2939_v14 = vmul.f32 0.70710677, %v2926_v9 }
 0x168   : > { %v2941_v0 = vpop.eup %2088  ;;  %2094 = vpow2.f32 %v1146_v39  ;;  %v1178_v5 = vmul.f32 1.442695, %v1119_v49  ;;  %v1016_v29 = vadd.f32 0.2548296, %v984_v10  ;;  %v2943_v40 = vmul.f32 0.5, %v531_v2 }
 0x169   : > { %3458 = vst [vmem:[#allocation32_spill] sm:$0xff] %v2939_v14  ;;  %vm1272_vm10 = vcmp.ge.f32.partialorder %v2619_v61, 0.0  ;;  %v1288_v53 = vsub.f32 0.0, %v1224_v52  ;;  %v1289_v44 = vsub.f32 0.0, %v1225_v60  ;;  %v1017_v57 = vadd.f32 0.2548296, %v985_v12 }
 0x16a   : > { %3459 = vst [vmem:[#allocation33_spill] sm:$0xff] %v2943_v40  ;;  %v2952_v20 = vadd.f32 %v2949_v50, %v532_v25  ;;  %v2954_v38 = vpop.eup %2090  ;;  %vm1273_vm11 = vcmp.ge.f32.partialorder %v2642_v55, 0.0  ;;  %2096 = vrcp.f32 %v735_v34  ;;  %v1048_v2 = vmul.f32 %v2723_v22, %v1016_v29  ;;  %v3460_v12 = vld [vmem:[#allocation17_spill] sm:$0xff] }
 0x16b   : > { %v688_v41 = vmul.f32 0.3275911, %v656_v45  ;;  %v1072_v21 = vsub.f32 0.0, %v656_v45  ;;  %v2958_v39 = vpop.eup %2092  ;;  %v1320_v49 = vsel %vm1256_vm8, %v1224_v52, %v1288_v53  ;;  %v1321_v37 = vsel %vm1257_vm9, %v1225_v60, %v1289_v44 }
 0x16c   : > { %v1049_v15 = vmul.f32 %v2750_v18, %v1017_v57  ;;  %v672_v3 = vand.u32 2147483647, %v2939_v14  ;;  %v1352_v7 = vadd.f32 1.0, %v1320_v49  ;;  %v1353_v10 = vadd.f32 1.0, %v1321_v37 }
 0x16d   : > { %2098 = vpow2.f32 %v1178_v5  ;;  %v1208_v34 = vmul.f32 %v2728_v28, %v1048_v2  ;;  %v2969_v25 = vmul.f32 0.70710677, %v2952_v20  ;;  %v778_v13 = vmul.f32 1.0614054, %v2761_v24 }
 0x16e   : > { %v1209_v22 = vmul.f32 %v2753_v4, %v1049_v15  ;;  %v779_v52 = vmul.f32 1.0614054, %v2797_v54  ;;  %v2973_v60 = vpop.eup %2094  ;;  %v1384_v18 = vmul.f32 %v1352_v7, %v2656_v1  ;;  %v1385_v29 = vmul.f32 %v1353_v10, %v3460_v12 }
 0x16f   : > { %v1240_v53 = vsub.f32 1.0, %v1208_v34  ;;  %v1104_v5 = vmul.f32 %v1072_v21, %v656_v45  ;;  %v720_v28 = vadd.f32 1.0, %v688_v41  ;;  %v1088_v57 = vsub.f32 0.0, %v672_v3 }
 0x170   : > { %v1241_v44 = vsub.f32 1.0, %v1209_v22  ;;  %v810_v4 = vadd.f32 -1.4531521, %v778_v13  ;;  %v2977_v2 = vpop.eup %2096  ;;  %v1414_v49 = vpack.c.bf16 %v1385_v29, %v1384_v18  ;;  %v811_v15 = vadd.f32 -1.4531521, %v779_v52 }
 0x171   : > { %v1304_v37 = vsub.f32 0.0, %v1240_v53  ;;  %v2980_v40 = vadd.f32 %v2949_v50, %v572_v51  ;;  %v704_v48 = vmul.f32 0.3275911, %v672_v3  ;;  %v657_v1 = vand.u32 2147483647, %v2969_v25 }
 0x172   : > { %v1305_v14 = vsub.f32 0.0, %v1241_v44  ;;  %v842_v7 = vmul.f32 %v2761_v24, %v810_v4  ;;  %1514 = vmatmul.bf16.gmra.mxu1 %v1414_v49  ;;  %v1148_v41 = vmul.f32 1.442695, %v1104_v5  ;;  %v843_v21 = vmul.f32 %v2797_v54, %v811_v15  ;;  %v3463_v4 = vld [vmem:[#allocation13_spill] sm:$0xff] }
 0x173   : > { %3461 = vst [vmem:[#allocation17_spill] sm:$0xff] %v2980_v40  ;;  %v2984_v10 = vpop.eup %2098  ;;  %v1336_v45 = vsel %vm1272_vm10, %v1240_v53, %v1304_v37  ;;  %v2990_v34 = vmul.f32 0.70710677, %v2980_v40  ;;  %v1120_v52 = vmul.f32 %v1088_v57, %v672_v3  ;;  %v1073_v51 = vsub.f32 0.0, %v657_v1  ;;  %v3464_v37 = vld [vmem:[#allocation18_spill] sm:$0xff]  ;;  %v535_v3 = vpop.f32.mrf.mxu0 }
 0x174   : > { %v1337_v22 = vsel %vm1273_vm11, %v1241_v44, %v1305_v14  ;;  %v1368_v13 = vadd.f32 1.0, %v1336_v45  ;;  %2100 = vrcp.f32 %v720_v28  ;;  %v874_v12 = vadd.f32 1.4214138, %v842_v7  ;;  %v575_v45 = vpop.f32.mrf.mxu2 }
 0x175   : > { %3462 = vst [vmem:[#allocation34_spill] sm:$0xff] %v2990_v34  ;;  %v1369_v18 = vadd.f32 1.0, %v1337_v22  ;;  %v875_v29 = vadd.f32 1.4214138, %v843_v21  ;;  %v736_v61 = vadd.f32 1.0, %v704_v48  ;;  %v1105_v57 = vmul.f32 %v1073_v51, %v657_v1 }
 0x176   : > { %v1400_v49 = vmul.f32 %v1368_v13, %v3463_v4  ;;  %v689_v53 = vmul.f32 0.3275911, %v657_v1  ;;  %v673_v5 = vand.u32 2147483647, %v2990_v34  ;;  %v906_v40 = vmul.f32 %v2761_v24, %v874_v12 }
 0x177   : > { %v1401_v15 = vmul.f32 %v1369_v18, %v3464_v37  ;;  %v907_v55 = vmul.f32 %v2797_v54, %v875_v29  ;;  %v794_v14 = vmul.f32 1.0614054, %v2784_v43  ;;  %v1180_v44 = vmul.f32 1.442695, %v1120_v52 }
 0x178   : > { %v1089_v28 = vsub.f32 0.0, %v673_v5  ;;  %v795_v7 = vmul.f32 1.0614054, %v2807_v17  ;;  %v938_v48 = vadd.f32 -0.28449672, %v906_v40  ;;  %2102 = vpow2.f32 %v1148_v41 }
 0x179   : > { %v1422_v21 = vpack.c.bf16 %v1401_v15, %v1400_v49  ;;  %v939_v22 = vadd.f32 -0.28449672, %v907_v55  ;;  %v826_v13 = vadd.f32 -1.4531521, %v794_v14  ;;  %v721_v4 = vadd.f32 1.0, %v689_v53  ;;  %v3467_v14 = vld [vmem:[#allocation12_spill] sm:$0xff] }
 0x17a   : > { %v827_v18 = vadd.f32 -1.4531521, %v795_v7  ;;  %v3002_v12 = vadd.f32 %v2949_v50, %v535_v3  ;;  %v3004_v29 = vpop.eup %2100  ;;  %v970_v52 = vmul.f32 %v2761_v24, %v938_v48  ;;  %v3010_v49 = vadd.f32 %v2949_v50, %v575_v45  ;;  %v3468_v3 = vld [vmem:[#allocation15_spill] sm:$0xff] }
 0x17b   : > { %1554 = vmatmul.bf16.gmra.mxu3 %v1422_v21  ;;  %v971_v1 = vmul.f32 %v2797_v54, %v939_v22  ;;  %v858_v51 = vmul.f32 %v2784_v43, %v826_v13  ;;  %2104 = vrcp.f32 %v736_v61  ;;  %v1150_v40 = vmul.f32 1.442695, %v1105_v57 }
 0x17c   : > { %3465 = vst [vmem:[#allocation13_spill] sm:$0xff] %v3002_v12  ;;  %v1121_v41 = vmul.f32 %v1089_v28, %v673_v5  ;;  %v859_v53 = vmul.f32 %v2807_v17, %v827_v18  ;;  %2106 = vpow2.f32 %v1180_v44  ;;  %v1002_v37 = vadd.f32 0.2548296, %v970_v52  ;;  %v537_v52 = vpop.f32.mrf.mxu0 }
 0x17d   : > { %3466 = vst [vmem:[#allocation18_spill] sm:$0xff] %v3010_v49  ;;  %v1003_v15 = vadd.f32 0.2548296, %v971_v1  ;;  %v890_v55 = vadd.f32 1.4214138, %v858_v51  ;;  %vm1258_vm12 = vcmp.ge.f32.partialorder %v3467_v14, 0.0  ;;  %2108 = vrcp.f32 %v721_v4 }
 0x17e   : > { %vm1259_vm13 = vcmp.ge.f32.partialorder %v3468_v3, 0.0  ;;  %v705_v7 = vmul.f32 0.3275911, %v673_v5  ;;  %v891_v21 = vadd.f32 1.4214138, %v859_v53  ;;  %v1034_v61 = vmul.f32 %v2761_v24, %v1002_v37  ;;  %v3024_v45 = vpop.eup %2102  ;;  %v3475_v14 = vld [vmem:[#allocation20_spill] sm:$0xff] }
 0x17f   : > { %v3016_v48 = vmul.f32 0.70710677, %v3002_v12  ;;  %v1035_v57 = vmul.f32 %v2797_v54, %v1003_v15  ;;  %v922_v28 = vmul.f32 %v2784_v43, %v890_v55  ;;  %v3022_v44 = vmul.f32 0.70710677, %v3010_v49 }
 0x180   : > { %2110 = vpow2.f32 %v1150_v40  ;;  %v1182_v22 = vmul.f32 1.442695, %v1121_v41  ;;  %v923_v13 = vmul.f32 %v2807_v17, %v891_v21  ;;  %v1194_v4 = vmul.f32 %v2772_v56, %v1034_v61 }
 0x181   : > { %3469 = vst [vmem:[#allocation12_spill] sm:$0xff] %v3016_v48  ;;  %v658_v5 = vand.u32 2147483647, %v3016_v48  ;;  %v1195_v18 = vmul.f32 %v2802_v33, %v1035_v57  ;;  %v954_v24 = vadd.f32 -0.28449672, %v922_v28  ;;  %v3031_v1 = vpop.eup %2104  ;;  %v737_v51 = vadd.f32 1.0, %v705_v7 }
 0x182   : > { %3470 = vst [vmem:[#allocation15_spill] sm:$0xff] %v3022_v44  ;;  %v674_v54 = vand.u32 2147483647, %v3022_v44  ;;  %v955_v53 = vadd.f32 -0.28449672, %v923_v13  ;;  %v3033_v40 = vpop.eup %2106  ;;  %v1226_v41 = vsub.f32 1.0, %v1194_v4  ;;  %v3040_v28 = vadd.f32 %v2949_v50, %v537_v52 }
 0x183   : > { %v690_v37 = vmul.f32 0.3275911, %v658_v5  ;;  %v1074_v15 = vsub.f32 0.0, %v658_v5  ;;  %3471 = vst [vmem:[#allocation35_spill] sm:$0xff] %v3033_v40  ;;  %v1227_v55 = vsub.f32 1.0, %v1195_v18  ;;  %v986_v21 = vmul.f32 %v2784_v43, %v954_v24  ;;  %v3036_v56 = vpop.eup %2108  ;;  %v3473_v4 = vld [vmem:[#allocation14_spill] sm:$0xff] }
 0x184   : > { %v706_v49 = vmul.f32 0.3275911, %v674_v54  ;;  %v987_v33 = vmul.f32 %v2807_v17, %v955_v53  ;;  %v1090_v57 = vsub.f32 0.0, %v674_v54  ;;  %3472 = vst [vmem:[#allocation36_spill] sm:$0xff] %v3040_v28  ;;  %v1290_v7 = vsub.f32 0.0, %v1226_v41  ;;  %v3474_v53 = vld [vmem:[#allocation16_spill] sm:$0xff] }
 0x185   : > { %v722_v61 = vadd.f32 1.0, %v690_v37  ;;  %v1291_v13 = vsub.f32 0.0, %v1227_v55  ;;  %v1018_v44 = vadd.f32 0.2548296, %v986_v21  ;;  %v1106_v12 = vmul.f32 %v1074_v15, %v658_v5 }
 0x186   : > { %v3042_v48 = vpop.eup %2110  ;;  %vm1274_vm14 = vcmp.ge.f32.partialorder %v3473_v4, 0.0  ;;  %v3046_v18 = vmul.f32 0.5, %v2926_v9  ;;  %2112 = vrcp.f32 %v737_v51  ;;  %v1019_v24 = vadd.f32 0.2548296, %v987_v33 }
 0x187   : > { %v738_v40 = vadd.f32 1.0, %v706_v49  ;;  %vm1275_vm15 = vcmp.ge.f32.partialorder %v3474_v53, 0.0  ;;  %v1322_v52 = vsel %vm1258_vm12, %v1226_v41, %v1290_v7  ;;  %v1323_v37 = vsel %vm1259_vm13, %v1227_v55, %v1291_v13  ;;  %v3476_v7 = vld [vmem:[#allocation23_spill] sm:$0xff]  ;;  %v3480_v53 = vld [vmem:[#allocation21_spill] sm:$0xff] }
 0x188   : > { %v1050_v5 = vmul.f32 %v2784_v43, %v1018_v44  ;;  %v1122_v15 = vmul.f32 %v1090_v57, %v674_v54  ;;  %v1354_v21 = vadd.f32 1.0, %v1322_v52  ;;  %v1355_v34 = vadd.f32 1.0, %v1323_v37  ;;  %v3477_v43 = vld [vmem:[#allocation28_spill] sm:$0xff]  ;;  %v577_v57 = vpop.f32.mrf.mxu2 }
 0x189   : > { %2114 = vpow2.f32 %v1182_v22  ;;  %v1051_v9 = vmul.f32 %v2807_v17, %v1019_v24  ;;  %v1152_v49 = vmul.f32 1.442695, %v1106_v12  ;;  %v3057_v33 = vmul.f32 0.70710677, %v3040_v28 }
 0x18a   : > { %v1210_v51 = vmul.f32 %v2787_v32, %v1050_v5  ;;  %2116 = vrcp.f32 %v722_v61  ;;  %v1386_v41 = vmul.f32 %v1354_v21, %v3475_v14  ;;  %v1387_v3 = vmul.f32 %v1355_v34, %v3476_v7 }
 0x18b   : > { %v1211_v55 = vmul.f32 %v2811_v36, %v1051_v9  ;;  %v780_v44 = vmul.f32 1.0614054, %v3477_v43  ;;  %2118 = vrcp.f32 %v738_v40  ;;  %v1184_v22 = vmul.f32 1.442695, %v1122_v15 }
 0x18c   : > { %v1242_v54 = vsub.f32 1.0, %v1210_v51  ;;  %v659_v17 = vand.u32 2147483647, %v3057_v33  ;;  %v3064_v32 = vpop.eup %2112  ;;  %v1415_v12 = vpack.c.bf16 %v1387_v3, %v1386_v41  ;;  %v781_v13 = vmul.f32 1.0614054, %v2866_v16 }
 0x18d   : > { %v1243_v61 = vsub.f32 1.0, %v1211_v55  ;;  %v812_v24 = vadd.f32 -1.4531521, %v780_v44  ;;  %v3068_v36 = vadd.f32 %v2949_v50, %v577_v57  ;;  %2120 = vpow2.f32 %v1152_v49 }
 0x18e   : > { %v1306_v52 = vsub.f32 0.0, %v1242_v54  ;;  %v691_v37 = vmul.f32 0.3275911, %v659_v17  ;;  %v1075_v34 = vsub.f32 0.0, %v659_v17  ;;  %1519 = vmatmul.bf16.gmra.mxu1 %v1415_v12  ;;  %v813_v15 = vadd.f32 -1.4531521, %v781_v13 }
 0x18f   : > { %3478 = vst [vmem:[#allocation14_spill] sm:$0xff] %v3068_v36  ;;  %v3070_v5 = vpop.eup %2114  ;;  %v1307_v40 = vsub.f32 0.0, %v1243_v61  ;;  %v844_v21 = vmul.f32 %v3477_v43, %v812_v24  ;;  %v796_v7 = vmul.f32 1.0614054, %v2839_v42  ;;  %2122 = vpow2.f32 %v1184_v22  ;;  %v3481_v24 = vld [vmem:[#allocation26_spill] sm:$0xff] }
 0x190   : > { %v3073_v9 = vpop.eup %2116  ;;  %v1338_v51 = vsel %vm1274_vm14, %v1242_v54, %v1306_v52  ;;  %v723_v14 = vadd.f32 1.0, %v691_v37  ;;  %v1107_v41 = vmul.f32 %v1075_v34, %v659_v17  ;;  %v845_v55 = vmul.f32 %v2866_v16, %v813_v15 }
 0x191   : > { %v1339_v50 = vsel %vm1275_vm15, %v1243_v61, %v1307_v40  ;;  %v1370_v3 = vadd.f32 1.0, %v1338_v51  ;;  %v876_v44 = vadd.f32 1.4214138, %v844_v21  ;;  %v3081_v49 = vpop.eup %2118  ;;  %v3084_v13 = vmul.f32 0.70710677, %v3068_v36 }
 0x192   : > { %v1371_v57 = vadd.f32 1.0, %v1339_v50  ;;  %v1154_v12 = vmul.f32 1.442695, %v1107_v41  ;;  %2124 = vrcp.f32 %v723_v14  ;;  %v877_v4 = vadd.f32 1.4214138, %v845_v55 }
 0x193   : > { %3479 = vst [vmem:[#allocation16_spill] sm:$0xff] %v3084_v13  ;;  %v908_v54 = vmul.f32 %v3477_v43, %v876_v44  ;;  %v797_v17 = vmul.f32 1.0614054, %v2888_v35  ;;  %v1402_v61 = vmul.f32 %v1370_v3, %v3480_v53  ;;  %v675_v37 = vand.u32 2147483647, %v3084_v13  ;;  %v3091_v34 = vpop.eup %2120 }
 0x194   : > { %v1403_v52 = vmul.f32 %v1371_v57, %v3481_v24  ;;  %2126 = vpow2.f32 %v1154_v12  ;;  %v909_v22 = vmul.f32 %v2866_v16, %v877_v4  ;;  %v828_v15 = vadd.f32 -1.4531521, %v796_v7 }
 0x195   : > { %v940_v40 = vadd.f32 -0.28449672, %v908_v54  ;;  %v829_v21 = vadd.f32 -1.4531521, %v797_v17  ;;  %v707_v14 = vmul.f32 0.3275911, %v675_v37  ;;  %v3098_v12 = vpop.eup %2122 }
 0x196   : > { %v1423_v51 = vpack.c.bf16 %v1403_v52, %v1402_v61  ;;  %v1091_v41 = vsub.f32 0.0, %v675_v37  ;;  %v782_v50 = vmul.f32 1.0614054, %v2920_v27  ;;  %v941_v55 = vadd.f32 -0.28449672, %v909_v22  ;;  %3482 = vst [vmem:[#allocation20_spill] sm:$0xff] %v3098_v12 }
 0x197   : > { %v972_v3 = vmul.f32 %v3477_v43, %v940_v40  ;;  %v860_v44 = vmul.f32 %v2839_v42, %v828_v15  ;;  %v861_v57 = vmul.f32 %v2888_v35, %v829_v21  ;;  %v739_v53 = vadd.f32 1.0, %v707_v14  ;;  %v3483_v15 = vld [vmem:[#allocation19_spill] sm:$0xff] }
 0x198   : > { %1559 = vmatmul.bf16.gmra.mxu3 %v1423_v51  ;;  %v1123_v4 = vmul.f32 %v1091_v41, %v675_v37  ;;  %v783_v7 = vmul.f32 1.0614054, %v2958_v39  ;;  %v814_v54 = vadd.f32 -1.4531521, %v782_v50  ;;  %v3101_v17 = vpop.eup %2124  ;;  %v973_v61 = vmul.f32 %v2866_v16, %v941_v55 }
 0x199   : > { %v1004_v24 = vadd.f32 0.2548296, %v972_v3  ;;  %v892_v52 = vadd.f32 1.4214138, %v860_v44  ;;  %v893_v22 = vadd.f32 1.4214138, %v861_v57  ;;  %2128 = vrcp.f32 %v739_v53 }
 0x19a   : > { %v3104_v40 = vpop.eup %2126  ;;  %vm1260_vm0 = vcmp.ge.f32.partialorder %v3483_v15, 0.0  ;;  %v3108_v21 = vmul.f32 0.5, %v2952_v20  ;;  %v815_v51 = vadd.f32 -1.4531521, %v783_v7  ;;  %v846_v37 = vmul.f32 %v2920_v27, %v814_v54  ;;  %v3484_v3 = vld [vmem:[#allocation24_spill] sm:$0xff] }
 0x19b   : > { %v1005_v14 = vadd.f32 0.2548296, %v973_v61  ;;  %v1036_v41 = vmul.f32 %v3477_v43, %v1004_v24  ;;  %v924_v50 = vmul.f32 %v2839_v42, %v892_v52  ;;  %v925_v55 = vmul.f32 %v2888_v35, %v893_v22 }
 0x19c   : > { %vm1261_vm1 = vcmp.ge.f32.partialorder %v3484_v3, 0.0  ;;  %v3115_v44 = vmul.f32 1.442695, %v1123_v4  ;;  %v847_v57 = vmul.f32 %v2958_v39, %v815_v51  ;;  %v878_v36 = vadd.f32 1.4214138, %v846_v37 }
 0x19d   : > { %v798_v20 = vmul.f32 1.0614054, %v2941_v0  ;;  %v1037_v53 = vmul.f32 %v2866_v16, %v1005_v14  ;;  %v1196_v7 = vmul.f32 %v2834_v19, %v1036_v41  ;;  %v956_v54 = vadd.f32 -0.28449672, %v924_v50 }
 0x19e   : > { %v957_v61 = vadd.f32 -0.28449672, %v925_v55  ;;  %v879_v43 = vadd.f32 1.4214138, %v847_v57  ;;  %v910_v24 = vmul.f32 %v2920_v27, %v878_v36  ;;  %v799_v52 = vmul.f32 1.0614054, %v2977_v2 }
 0x19f   : > { %v830_v22 = vadd.f32 -1.4531521, %v798_v20  ;;  %v1197_v4 = vmul.f32 %v2878_v62, %v1037_v53  ;;  %v1228_v13 = vsub.f32 1.0, %v1196_v7  ;;  %v988_v51 = vmul.f32 %v2839_v42, %v956_v54  ;;  %v3126_v28 = vpop.eup %2128  ;;  %v3485_v20 = vld [vmem:[#allocation22_spill] sm:$0xff]  ;;  %v3486_v62 = vld [vmem:[#allocation25_spill] sm:$0xff] }
 0x1a0   : > { %v989_v37 = vmul.f32 %v2888_v35, %v957_v61  ;;  %v911_v16 = vmul.f32 %v2958_v39, %v879_v43  ;;  %v942_v19 = vadd.f32 -0.28449672, %v910_v24  ;;  %v831_v14 = vadd.f32 -1.4531521, %v799_v52 }
 0x1a1   : > { %v862_v41 = vmul.f32 %v2941_v0, %v830_v22  ;;  %v1229_v50 = vsub.f32 1.0, %v1197_v4  ;;  %v1292_v36 = vsub.f32 0.0, %v1228_v13  ;;  %v1020_v55 = vadd.f32 0.2548296, %v988_v51 }
 0x1a2   : > { %v1021_v57 = vadd.f32 0.2548296, %v989_v37  ;;  %vm1276_vm2 = vcmp.ge.f32.partialorder %v3485_v20, 0.0  ;;  %vm1277_vm3 = vcmp.ge.f32.partialorder %v3486_v62, 0.0  ;;  %v943_v53 = vadd.f32 -0.28449672, %v911_v16 }
 0x1a3   : > { %v974_v7 = vmul.f32 %v2920_v27, %v942_v19  ;;  %v863_v54 = vmul.f32 %v2977_v2, %v831_v14  ;;  %v894_v61 = vadd.f32 1.4214138, %v862_v41  ;;  %v1293_v12 = vsub.f32 0.0, %v1229_v50 }
 0x1a4   : > { %v1324_v43 = vsel %vm1260_vm0, %v1228_v13, %v1292_v36  ;;  %v1052_v24 = vmul.f32 %v2839_v42, %v1020_v55  ;;  %v1053_v52 = vmul.f32 %v2888_v35, %v1021_v57  ;;  %v975_v4 = vmul.f32 %v2958_v39, %v943_v53  ;;  %v3487_v42 = vld [vmem:[#allocation27_spill] sm:$0xff] }
 0x1a5   : > { %v1356_v22 = vadd.f32 1.0, %v1324_v43  ;;  %v1006_v51 = vadd.f32 0.2548296, %v974_v7  ;;  %v895_v37 = vadd.f32 1.4214138, %v863_v54  ;;  %vm1262_vm4 = vcmp.ge.f32.partialorder %v2826_v30, 0.0 }
 0x1a6   : > { %v1325_v16 = vsel %vm1261_vm1, %v1229_v50, %v1293_v12  ;;  %v1212_v19 = vmul.f32 %v2854_v6, %v1052_v24  ;;  %v1213_v14 = vmul.f32 %v2905_v47, %v1053_v52  ;;  %v926_v13 = vmul.f32 %v2941_v0, %v894_v61 }
 0x1a7   : > { %v1357_v15 = vadd.f32 1.0, %v1325_v16  ;;  %v1388_v41 = vmul.f32 %v1356_v22, %v3487_v42  ;;  %v1007_v35 = vadd.f32 0.2548296, %v975_v4  ;;  %v1038_v36 = vmul.f32 %v2920_v27, %v1006_v51 }
 0x1a8   : > { %vm1263_vm5 = vcmp.ge.f32.partialorder %v2872_v26, 0.0  ;;  %v1244_v55 = vsub.f32 1.0, %v1212_v19  ;;  %v1245_v57 = vsub.f32 1.0, %v1213_v14  ;;  %v927_v53 = vmul.f32 %v2977_v2, %v895_v37 }
 0x1a9   : > { %v958_v3 = vadd.f32 -0.28449672, %v926_v13  ;;  %v1389_v12 = vmul.f32 %v1357_v15, %v2857_v46  ;;  %v1039_v6 = vmul.f32 %v2958_v39, %v1007_v35  ;;  %v1198_v47 = vmul.f32 %v2935_v59, %v1038_v36 }
 0x1aa   : > { %v784_v50 = vmul.f32 1.0614054, %v3004_v29  ;;  %v1308_v7 = vsub.f32 0.0, %v1244_v55  ;;  %v1309_v54 = vsub.f32 0.0, %v1245_v57  ;;  %v959_v61 = vadd.f32 -0.28449672, %v927_v53 }
 0x1ab   : > { %v990_v27 = vmul.f32 %v2941_v0, %v958_v3  ;;  %v1416_v43 = vpack.c.bf16 %v1389_v12, %v1388_v41  ;;  %v1199_v24 = vmul.f32 %v2973_v60, %v1039_v6  ;;  %v1230_v52 = vsub.f32 1.0, %v1198_v47 }
 0x1ac   : > { %v785_v22 = vmul.f32 1.0614054, %v3036_v56  ;;  %v1340_v46 = vsel %vm1276_vm2, %v1244_v55, %v1308_v7  ;;  %v1341_v39 = vsel %vm1277_vm3, %v1245_v57, %v1309_v54  ;;  %v991_v59 = vmul.f32 %v2977_v2, %v959_v61 }
 0x1ad   : > { %v1022_v4 = vadd.f32 0.2548296, %v990_v27  ;;  %vm1278_vm6 = vcmp.ge.f32.partialorder %v2845_v58, 0.0  ;;  %1524 = vmatmul.bf16.gmra.mxu1 %v1416_v43  ;;  %v1372_v51 = vadd.f32 1.0, %v1340_v46  ;;  %v1373_v37 = vadd.f32 1.0, %v1341_v39 }
 0x1ae   : > { %v1231_v16 = vsub.f32 1.0, %v1199_v24  ;;  %v1294_v19 = vsub.f32 0.0, %v1230_v52  ;;  %v1023_v60 = vadd.f32 0.2548296, %v991_v59  ;;  %v816_v13 = vadd.f32 -1.4531521, %v784_v50 }
 0x1af   : > { %v1054_v14 = vmul.f32 %v2941_v0, %v1022_v4  ;;  %v817_v15 = vadd.f32 -1.4531521, %v785_v22  ;;  %vm1279_vm7 = vcmp.ge.f32.partialorder %v2893_v8, 0.0  ;;  %v1404_v20 = vmul.f32 %v1372_v51, %v2837_v63  ;;  %v3488_v50 = vld [vmem:[#allocation30_spill] sm:$0xff] }
 0x1b0   : > { %v1405_v62 = vmul.f32 %v1373_v37, %v2860_v11  ;;  %v1295_v42 = vsub.f32 0.0, %v1231_v16  ;;  %v1326_v41 = vsel %vm1262_vm4, %v1230_v52, %v1294_v19  ;;  %v1055_v36 = vmul.f32 %v2977_v2, %v1023_v60 }
 0x1b1   : > { %v1358_v35 = vadd.f32 1.0, %v1326_v41  ;;  %v1214_v55 = vmul.f32 %v2954_v38, %v1054_v14  ;;  %v848_v57 = vmul.f32 %v3004_v29, %v816_v13  ;;  %v849_v3 = vmul.f32 %v3036_v56, %v817_v15  ;;  %v3489_v13 = vld [vmem:[#allocation29_spill] sm:$0xff] }
 0x1b2   : > { %v1424_v0 = vpack.c.bf16 %v1405_v62, %v1404_v20  ;;  %v1327_v53 = vsel %vm1263_vm5, %v1231_v16, %v1295_v42  ;;  %v800_v63 = vmul.f32 1.0614054, %v3031_v1  ;;  %2130 = vpow2.f32 %v3115_v44 }
 0x1b3   : > { %v1359_v11 = vadd.f32 1.0, %v1327_v53  ;;  %v1215_v30 = vmul.f32 %v2984_v10, %v1055_v36  ;;  %v1246_v12 = vsub.f32 1.0, %v1214_v55  ;;  %v1390_v2 = vmul.f32 %v1358_v35, %v2868_v31 }
 0x1b4   : > { %1564 = vmatmul.bf16.gmra.mxu3 %v1424_v0  ;;  %v880_v38 = vadd.f32 1.4214138, %v848_v57  ;;  %v881_v6 = vadd.f32 1.4214138, %v849_v3  ;;  %v801_v47 = vmul.f32 1.0614054, %v3064_v32 }
 0x1b5   : > { %v1391_v26 = vmul.f32 %v1359_v11, %v3488_v50  ;;  %v1247_v7 = vsub.f32 1.0, %v1215_v30  ;;  %v1310_v54 = vsub.f32 0.0, %v1246_v12  ;;  %v832_v61 = vadd.f32 -1.4531521, %v800_v63  ;;  %v3490_v0 = vld [vmem:[#allocation31_spill] sm:$0xff] }
 0x1b6   : > { %v912_v27 = vmul.f32 %v3004_v29, %v880_v38  ;;  %v913_v44 = vmul.f32 %v3036_v56, %v881_v6  ;;  %v833_v43 = vadd.f32 -1.4531521, %v801_v47  ;;  %v786_v10 = vmul.f32 1.0614054, %v3073_v9 }
 0x1b7   : > { %v1417_v24 = vpack.c.bf16 %v1391_v26, %v1390_v2  ;;  %v1311_v52 = vsub.f32 0.0, %v1247_v7  ;;  %v1342_v31 = vsel %vm1278_vm6, %v1246_v12, %v1310_v54  ;;  %v864_v22 = vmul.f32 %v3031_v1, %v832_v61 }
 0x1b8   : > { %v1374_v46 = vadd.f32 1.0, %v1342_v31  ;;  %v944_v39 = vadd.f32 -0.28449672, %v912_v27  ;;  %v945_v59 = vadd.f32 -0.28449672, %v913_v44  ;;  %v865_v4 = vmul.f32 %v3064_v32, %v833_v43  ;;  %v3187_v51 = vpop.eup %2130  ;;  %v3491_v43 = vld [vmem:[#allocation32_spill] sm:$0xff] }
 0x1b9   : > { %v1343_v37 = vsel %vm1279_vm7, %v1247_v7, %v1311_v52  ;;  %v896_v16 = vadd.f32 1.4214138, %v864_v22  ;;  %v787_v19 = vmul.f32 1.0614054, %v3101_v17  ;;  %v818_v60 = vadd.f32 -1.4531521, %v786_v10 }
 0x1ba   : > { %v1375_v14 = vadd.f32 1.0, %v1343_v37  ;;  %v1406_v58 = vmul.f32 %v1374_v46, %v3489_v13  ;;  %v976_v15 = vmul.f32 %v3004_v29, %v944_v39  ;;  %v977_v20 = vmul.f32 %v3036_v56, %v945_v59  ;;  %v3492_v39 = vld [vmem:[#allocation34_spill] sm:$0xff] }
 0x1bb   : > { %v897_v62 = vadd.f32 1.4214138, %v865_v4  ;;  %v928_v42 = vmul.f32 %v3031_v1, %v896_v16  ;;  %v819_v41 = vadd.f32 -1.4531521, %v787_v19  ;;  %v850_v35 = vmul.f32 %v3073_v9, %v818_v60  ;;  %v1505_v19 = vpop.f32.mrf.mxu1 }
 0x1bc   : > { %v1407_v8 = vmul.f32 %v1375_v14, %v2931_v23  ;;  %v1008_v36 = vadd.f32 0.2548296, %v976_v15  ;;  %v1009_v55 = vadd.f32 0.2548296, %v977_v20  ;;  %v802_v57 = vmul.f32 1.0614054, %v3081_v49 }
 0x1bd   : > { %vm1264_vm8 = vcmp.ge.f32.partialorder %v3490_v0, 0.0  ;;  %vm1265_vm9 = vcmp.ge.f32.partialorder %v2969_v25, 0.0  ;;  %v929_v53 = vmul.f32 %v3064_v32, %v897_v62  ;;  %v960_v3 = vadd.f32 -0.28449672, %v928_v42  ;;  %1529 = vmatmul.bf16.gmra.mxu1 %v1417_v24  ;;  %v3493_v14 = vld [vmem:[#allocation35_spill] sm:$0xff] }
 0x1be   : > { %v851_v63 = vmul.f32 %v3101_v17, %v819_v41  ;;  %v882_v11 = vadd.f32 1.4214138, %v850_v35  ;;  %v1425_v30 = vpack.c.bf16 %v1407_v8, %v1406_v58  ;;  %v1040_v12 = vmul.f32 %v3004_v29, %v1008_v36 }
 0x1bf   : > { %v1041_v23 = vmul.f32 %v3036_v56, %v1009_v55  ;;  %v803_v2 = vmul.f32 1.0614054, %v3126_v28  ;;  %v961_v38 = vadd.f32 -0.28449672, %v929_v53  ;;  %v992_v6 = vmul.f32 %v3031_v1, %v960_v3  ;;  %v3232_v55 = vld [vmem:[%s3392_s4] ss:$0 sm:$0xff] }
 0x1c0   : > { %v883_v47 = vadd.f32 1.4214138, %v851_v63  ;;  %v914_v50 = vmul.f32 %v3073_v9, %v882_v11  ;;  %v1200_v26 = vmul.f32 %v3024_v45, %v1040_v12  ;;  %v834_v54 = vadd.f32 -1.4531521, %v802_v57  ;;  %v3494_v3 = vld [vmem:[#allocation33_spill] sm:$0xff] }
 0x1c1   : > { %v1201_v7 = vmul.f32 %v3042_v48, %v1041_v23  ;;  %v835_v61 = vadd.f32 -1.4531521, %v803_v2  ;;  %v993_v27 = vmul.f32 %v3064_v32, %v961_v38  ;;  %v1024_v44 = vadd.f32 0.2548296, %v992_v6 }
 0x1c2   : > { %v915_v29 = vmul.f32 %v3101_v17, %v883_v47  ;;  %v946_v56 = vadd.f32 -0.28449672, %v914_v50  ;;  %vm1280_vm10 = vcmp.ge.f32.partialorder %v3491_v43, 0.0  ;;  %v1232_v10 = vsub.f32 1.0, %v1200_v26 }
 0x1c3   : > { %v1233_v24 = vsub.f32 1.0, %v1201_v7  ;;  %v866_v52 = vmul.f32 %v3081_v49, %v834_v54  ;;  %v867_v31 = vmul.f32 %v3126_v28, %v835_v61  ;;  %v1025_v22 = vadd.f32 0.2548296, %v993_v27  ;;  %v1507_v61 = vpop.f32.mrf.mxu1 }
 0x1c4   : > { %v1056_v45 = vmul.f32 %v3031_v1, %v1024_v44  ;;  %v947_v48 = vadd.f32 -0.28449672, %v915_v29  ;;  %v978_v46 = vmul.f32 %v3073_v9, %v946_v56  ;;  %vm1281_vm11 = vcmp.ge.f32.partialorder %v3492_v39, 0.0  ;;  %1569 = vmatmul.bf16.gmra.mxu3 %v1425_v30  ;;  %v1545_v1 = vpop.f32.mrf.mxu3  ;;  %v3495_v56 = vld [vmem:[#allocation17_spill] sm:$0xff] }
 0x1c5   : > { %v1296_v59 = vsub.f32 0.0, %v1232_v10  ;;  %v1297_v4 = vsub.f32 0.0, %v1233_v24  ;;  %v898_v37 = vadd.f32 1.4214138, %v866_v52  ;;  %v899_v16 = vadd.f32 1.4214138, %v867_v31 }
 0x1c6   : > { %v1057_v60 = vmul.f32 %v3064_v32, %v1025_v22  ;;  %v1216_v13 = vmul.f32 %v3493_v14, %v1056_v45  ;;  %v979_v58 = vmul.f32 %v3101_v17, %v947_v48  ;;  %v1010_v15 = vadd.f32 0.2548296, %v978_v46  ;;  %v3496_v45 = vld [vmem:[#allocation12_spill] sm:$0xff] }
 0x1c7   : > { %v1328_v20 = vsel %vm1264_vm8, %v1232_v10, %v1296_v59  ;;  %v1329_v62 = vsel %vm1265_vm9, %v1233_v24, %v1297_v4  ;;  %v930_v42 = vmul.f32 %v3081_v49, %v898_v37  ;;  %v931_v41 = vmul.f32 %v3126_v28, %v899_v16  ;;  %v3497_v4 = vld [vmem:[#allocation20_spill] sm:$0xff] }
 0x1c8   : > { %v1360_v35 = vadd.f32 1.0, %v1328_v20  ;;  %v1361_v8 = vadd.f32 1.0, %v1329_v62  ;;  %v1217_v32 = vmul.f32 %v3070_v5, %v1057_v60  ;;  %v1248_v36 = vsub.f32 1.0, %v1216_v13  ;;  %v3498_v13 = vld [vmem:[#allocation36_spill] sm:$0xff]  ;;  %v3499_v20 = vld [vmem:[#allocation13_spill] sm:$0xff]  ;;  %v3500_v62 = vld [vmem:[#allocation15_spill] sm:$0xff] }
 0x1c9   : > { %v1011_v57 = vadd.f32 0.2548296, %v979_v58  ;;  %v1042_v0 = vmul.f32 %v3073_v9, %v1010_v15  ;;  %v962_v25 = vadd.f32 -0.28449672, %v930_v42  ;;  %v963_v53 = vadd.f32 -0.28449672, %v931_v41 }
 0x1ca   : > { %v1392_v63 = vmul.f32 %v1360_v35, %v3494_v3  ;;  %v1393_v11 = vmul.f32 %v1361_v8, %v3108_v21  ;;  %v1249_v30 = vsub.f32 1.0, %v1217_v32  ;;  %v1312_v12 = vsub.f32 0.0, %v1248_v36  ;;  %v3501_v42 = vld [vmem:[#allocation16_spill] sm:$0xff] }
 0x1cb   : > { %v1043_v5 = vmul.f32 %v3101_v17, %v1011_v57  ;;  %v1202_v23 = vmul.f32 %v3091_v34, %v1042_v0  ;;  %v994_v2 = vmul.f32 %v3081_v49, %v962_v25  ;;  %v995_v38 = vmul.f32 %v3126_v28, %v963_v53  ;;  %v3502_v0 = vld [vmem:[#allocation14_spill] sm:$0xff] }
 0x1cc   : > { %v1418_v6 = vpack.c.bf16 %v1393_v11, %v1392_v63  ;;  %v1313_v47 = vsub.f32 0.0, %v1249_v30  ;;  %v1344_v9 = vsel %vm1280_vm10, %v1248_v36, %v1312_v12  ;;  %v1506_v50 = vadd.f32 %v3232_v55, %v1505_v19  ;;  %v1547_v29 = vpop.f32.mrf.mxu3  ;;  %v3503_v63 = vld [vmem:[#allocation18_spill] sm:$0xff] }
 0x1cd   : > { %v1376_v26 = vadd.f32 1.0, %v1344_v9  ;;  %v1203_v21 = vmul.f32 %v3104_v40, %v1043_v5  ;;  %v1234_v7 = vsub.f32 1.0, %v1202_v23  ;;  %v1026_v54 = vadd.f32 0.2548296, %v994_v2 }
 0x1ce   : > { %v1345_v34 = vsel %vm1281_vm11, %v1249_v30, %v1313_v47  ;;  %v1027_v17 = vadd.f32 0.2548296, %v995_v38  ;;  %1585 = vst [vmem:[%s3247_s25] sm:$0xff] %v1506_v50  ;;  %v1508_v27 = vadd.f32 %v3232_v55, %v1507_v61  ;;  %v1546_v44 = vadd.f32 %v3232_v55, %v1545_v1  ;;  %1534 = vmatmul.bf16.gmra.mxu1 %v1418_v6 }
 0x1cf   : > { %v609_v40 = vmul.f32 0.5, %v3495_v56  ;;  %v1377_v43 = vadd.f32 1.0, %v1345_v34  ;;  %v1235_v10 = vsub.f32 1.0, %v1203_v21  ;;  %v1298_v24 = vsub.f32 0.0, %v1234_v7 }
 0x1d0   : > { %v1058_v52 = vmul.f32 %v3081_v49, %v1026_v54  ;;  %v1059_v31 = vmul.f32 %v3126_v28, %v1027_v17  ;;  %1586 = vst [vmem:[%s3247_s25 + $0x8] sm:$0xff] %v1508_v27  ;;  %v1548_v22 = vadd.f32 %v3232_v55, %v1547_v29  ;;  %vm1266_vm12 = vcmp.ge.f32.partialorder %v3496_v45, 0.0 }
 0x1d1   : > { %v1408_v48 = vmul.f32 %v1376_v26, %v3046_v18  ;;  %v1409_v46 = vmul.f32 %v1377_v43, %v609_v40  ;;  %v1299_v39 = vsub.f32 0.0, %v1235_v10  ;;  %1601 = vst [vmem:[%s3247_s25 + $0x80] sm:$0xff] %v1546_v44  ;;  %vm1267_vm13 = vcmp.ge.f32.partialorder %v3057_v33, 0.0 }
 0x1d2   : > { %v1330_v59 = vsel %vm1266_vm12, %v1234_v7, %v1298_v24  ;;  %v1218_v37 = vmul.f32 %v3497_v4, %v1058_v52  ;;  %v1219_v16 = vmul.f32 %v3187_v51, %v1059_v31  ;;  %1602 = vst [vmem:[%s3247_s25 + $0x88] sm:$0xff] %v1548_v22  ;;  %v595_v58 = vmul.f32 0.5, %v3498_v13 }
 0x1d3   : > { %v1426_v49 = vpack.c.bf16 %v1409_v46, %v1408_v48  ;;  %v1331_v28 = vsel %vm1267_vm13, %v1235_v10, %v1299_v39  ;;  %v1362_v18 = vadd.f32 1.0, %v1330_v59  ;;  %v594_v33 = vmul.f32 0.5, %v3499_v20  ;;  %v1510_v36 = vpop.f32.mrf.mxu1 }
 0x1d4   : > { %v1363_v19 = vadd.f32 1.0, %v1331_v28  ;;  %v1250_v60 = vsub.f32 1.0, %v1218_v37  ;;  %v1251_v14 = vsub.f32 1.0, %v1219_v16  ;;  %vm1282_vm14 = vcmp.ge.f32.partialorder %v3500_v62, 0.0 }
 0x1d5   : > { %1574 = vmatmul.bf16.gmra.mxu3 %v1426_v49  ;;  %vm1283_vm15 = vcmp.ge.f32.partialorder %v3501_v42, 0.0  ;;  %v1394_v8 = vmul.f32 %v1362_v18, %v594_v33  ;;  %v1511_v57 = vadd.f32 %v3232_v55, %v1510_v36  ;;  %v611_v25 = vmul.f32 0.5, %v3502_v0 }
 0x1d6   : > { %v1314_v15 = vsub.f32 0.0, %v1250_v60  ;;  %v1315_v1 = vsub.f32 0.0, %v1251_v14  ;;  %v1395_v51 = vmul.f32 %v1363_v19, %v595_v58  ;;  %v610_v11 = vmul.f32 0.5, %v3503_v63 }
 0x1d7   : > { %1587 = vst [vmem:[%s3247_s25 + $0x10] sm:$0xff] %v1511_v57 }
 0x1d8   : > { %v1346_v41 = vsel %vm1282_vm14, %v1250_v60, %v1314_v15  ;;  %v1347_v35 = vsel %vm1283_vm15, %v1251_v14, %v1315_v1  ;;  %v1419_v53 = vpack.c.bf16 %v1395_v51, %v1394_v8 }
 0x1d9   : > { %v1379_v32 = vadd.f32 1.0, %v1347_v35  ;;  %v1378_v3 = vadd.f32 1.0, %v1346_v41 }
 0x1db   : > { %v1411_v30 = vmul.f32 %v1379_v32, %v611_v25  ;;  %v1410_v12 = vmul.f32 %v1378_v3, %v610_v11  ;;  %v1512_v23 = vpop.f32.mrf.mxu1 }
 0x1dc   : > { %v1513_v2 = vadd.f32 %v3232_v55, %v1512_v23 }
 0x1dd   : > { %v1427_v5 = vpack.c.bf16 %v1411_v30, %v1410_v12 }
 0x1de   : > { %1539 = vmatmul.bf16.gmra.mxu1 %v1419_v53  ;;  %1588 = vst [vmem:[%s3247_s25 + $0x18] sm:$0xff] %v1513_v2 }
 0x1e1   : > { %v1550_v38 = vpop.f32.mrf.mxu3 }
 0x1e2   : > { %v1551_v6 = vadd.f32 %v3232_v55, %v1550_v38 }
 0x1e4   : > { %1603 = vst [vmem:[%s3247_s25 + $0x90] sm:$0xff] %v1551_v6 }
 0x1e5   : > { %1579 = vmatmul.bf16.gmra.mxu3 %v1427_v5 }
 0x1e9   : > { %v1552_v47 = vpop.f32.mrf.mxu3 }
 0x1ea   : > { %v1553_v9 = vadd.f32 %v3232_v55, %v1552_v47 }
 0x1ec   : > { %1604 = vst [vmem:[%s3247_s25 + $0x98] sm:$0xff] %v1553_v9 }
 0x1ef   : > { %v1515_v50 = vpop.f32.mrf.mxu1 }
 0x1f0   : > { %v1516_v26 = vadd.f32 %v3232_v55, %v1515_v50 }
 0x1f2   : > { %1589 = vst [vmem:[%s3247_s25 + $0x20] sm:$0xff] %v1516_v26 }
 0x1f7   : > { %v1517_v21 = vpop.f32.mrf.mxu1 }
 0x1f8   : > { %v1518_v7 = vadd.f32 %v3232_v55, %v1517_v21 }
 0x1fa   : > { %1590 = vst [vmem:[%s3247_s25 + $0x28] sm:$0xff] %v1518_v7 }
 0x1fe   : > { %v1555_v54 = vpop.f32.mrf.mxu3 }
 0x1ff   : > { %v1556_v61 = vadd.f32 %v3232_v55, %v1555_v54 }
 0x201   : > { %1605 = vst [vmem:[%s3247_s25 + $0xa0] sm:$0xff] %v1556_v61 }
 0x206   : > { %v1557_v34 = vpop.f32.mrf.mxu3 }
 0x207   : > { %v1558_v17 = vadd.f32 %v3232_v55, %v1557_v34 }
 0x209   : > { %1606 = vst [vmem:[%s3247_s25 + $0xa8] sm:$0xff] %v1558_v17 }
 0x20b   : > { %v1520_v27 = vpop.f32.mrf.mxu1 }
 0x20c   : > { %v1521_v44 = vadd.f32 %v3232_v55, %v1520_v27 }
 0x20e   : > { %1591 = vst [vmem:[%s3247_s25 + $0x30] sm:$0xff] %v1521_v44 }
 0x213   : > { %v1522_v29 = vpop.f32.mrf.mxu1 }
 0x214   : > { %v1523_v56 = vadd.f32 %v3232_v55, %v1522_v29 }
 0x216   : > { %1592 = vst [vmem:[%s3247_s25 + $0x38] sm:$0xff] %v1523_v56 }
 0x21b   : > { %v1560_v40 = vpop.f32.mrf.mxu3 }
 0x21c   : > { %v1561_v43 = vadd.f32 %v3232_v55, %v1560_v40 }
 0x21e   : > { %1607 = vst [vmem:[%s3247_s25 + $0xb0] sm:$0xff] %v1561_v43 }
 0x223   : > { %v1562_v10 = vpop.f32.mrf.mxu3 }
 0x224   : > { %v1563_v24 = vadd.f32 %v3232_v55, %v1562_v10 }
 0x226   : > { %1608 = vst [vmem:[%s3247_s25 + $0xb8] sm:$0xff] %v1563_v24 }
 0x22a   : > { %v1525_v52 = vpop.f32.mrf.mxu1 }
 0x22b   : > { %v1526_v31 = vadd.f32 %v3232_v55, %v1525_v52 }
 0x22d   : > { %1593 = vst [vmem:[%s3247_s25 + $0x40] sm:$0xff] %v1526_v31 }
 0x232   : > { %v1527_v22 = vpop.f32.mrf.mxu1 }
 0x233   : > { %v1528_v45 = vadd.f32 %v3232_v55, %v1527_v22 }
 0x235   : > { %1594 = vst [vmem:[%s3247_s25 + $0x48] sm:$0xff] %v1528_v45 }
 0x237   : > { %v1565_v48 = vpop.f32.mrf.mxu3 }
 0x238   : > { %v1566_v46 = vadd.f32 %v3232_v55, %v1565_v48 }
 0x23a   : > { %1609 = vst [vmem:[%s3247_s25 + $0xc0] sm:$0xff] %v1566_v46  ;;  %v1530_v39 = vpop.f32.mrf.mxu1 }
 0x23b   : > { %v1531_v59 = vadd.f32 %v3232_v55, %v1530_v39 }
 0x23d   : > { %1595 = vst [vmem:[%s3247_s25 + $0x50] sm:$0xff] %v1531_v59 }
 0x23f   : > { %v1567_v4 = vpop.f32.mrf.mxu3 }
 0x240   : > { %v1568_v37 = vadd.f32 %v3232_v55, %v1567_v4 }
 0x242   : > { %1610 = vst [vmem:[%s3247_s25 + $0xc8] sm:$0xff] %v1568_v37  ;;  %v1532_v16 = vpop.f32.mrf.mxu1 }
 0x243   : > { %v1533_v49 = vadd.f32 %v3232_v55, %v1532_v16 }
 0x245   : > { %1596 = vst [vmem:[%s3247_s25 + $0x58] sm:$0xff] %v1533_v49 }
 0x247   : > { %v1570_v28 = vpop.f32.mrf.mxu3 }
 0x248   : > { %v1571_v19 = vadd.f32 %v3232_v55, %v1570_v28 }
 0x24a   : > { %1611 = vst [vmem:[%s3247_s25 + $0xd0] sm:$0xff] %v1571_v19 }
 0x24b   : > { %v1535_v60 = vpop.f32.mrf.mxu1 }
 0x24c   : > { %v1536_v14 = vadd.f32 %v3232_v55, %v1535_v60 }
 0x24e   : > { %1597 = vst [vmem:[%s3247_s25 + $0x60] sm:$0xff] %v1536_v14 }
 0x24f   : > { %v1572_v13 = vpop.f32.mrf.mxu3 }
 0x250   : > { %v1573_v58 = vadd.f32 %v3232_v55, %v1572_v13 }
 0x252   : > { %1612 = vst [vmem:[%s3247_s25 + $0xd8] sm:$0xff] %v1573_v58 }
 0x253   : > { %v1537_v18 = vpop.f32.mrf.mxu1 }
 0x254   : > { %v1538_v15 = vadd.f32 %v3232_v55, %v1537_v18 }
 0x256   : > { %1598 = vst [vmem:[%s3247_s25 + $0x68] sm:$0xff] %v1538_v15 }
 0x258   : > { %v1575_v1 = vpop.f32.mrf.mxu3 }
 0x259   : > { %v1576_v20 = vadd.f32 %v3232_v55, %v1575_v1 }
 0x25b   : > { %1613 = vst [vmem:[%s3247_s25 + $0xe0] sm:$0xff] %v1576_v20  ;;  %v1540_v33 = vpop.f32.mrf.mxu1 }
 0x25c   : > { %v1541_v62 = vadd.f32 %v3232_v55, %v1540_v33 }
 0x25e   : > { %1599 = vst [vmem:[%s3247_s25 + $0x70] sm:$0xff] %v1541_v62 }
 0x260   : > { %v1577_v42 = vpop.f32.mrf.mxu3 }
 0x261   : > { %v1578_v51 = vadd.f32 %v3232_v55, %v1577_v42 }
 0x263   : > { %1614 = vst [vmem:[%s3247_s25 + $0xe8] sm:$0xff] %v1578_v51  ;;  %v1542_v41 = vpop.f32.mrf.mxu1 }
 0x264   : > { %v1543_v35 = vadd.f32 %v3232_v55, %v1542_v41 }
 0x266   : > { %1600 = vst [vmem:[%s3247_s25 + $0x78] sm:$0xff] %v1543_v35 }
 0x268   : > { %v1580_v8 = vpop.f32.mrf.mxu3 }
 0x269   : > { %v1581_v32 = vadd.f32 %v3232_v55, %v1580_v8 }
 0x26b   : > { %1615 = vst [vmem:[%s3247_s25 + $0xf0] sm:$0xff] %v1581_v32 }
 0x26f   : > { %1624 = sbr.rel (!%p2407_p11) target bundleno = 659 (0x293), region = 56 }
 0x270   : > { %v1582_v36 = vpop.f32.mrf.mxu3 }
 0x271   : > { %v1583_v57 = vadd.f32 %v3232_v55, %v1582_v36 }
 0x273   : > { %1616 = vst [vmem:[%s3247_s25 + $0xf8] sm:$0xff] %v1583_v57 }
 0x274   : > { %s3513_s12 = smov (!%p1627_p6, %s1626_s12), 32 }
 0x275   : > { %s1879_s13 = sshll.u32 %s3513_s12, 3 }
 0x276   : > { %s1630_s15 = ssub.s32 256, %s1879_s13 }
 0x277   : > { %s1631_s9 = sshll.u32 %s1630_s15, 4 }
 0x278   : > { %1632 = vsyncadd %s1618_s17, %s1631_s9  ;;  %p3335_p13 = scmp.ne.s32.totalorder %s1879_s13, 0  ;;  %s1919_s10 = sshll.u32 %s2376_s22, 8 }
 0x279   : > { %s1635_s7 = scalar_lea.hbm %s3393_s5, %s1919_s10  ;;  %s1637_s11 = sshll.u32 %s3247_s25, 4  ;;  %s3344_s11 = int_to_ptr.vmem [resolvable:$true] %s1637_s11 }
 0x27a   : > { %s1639_s14 = sshll.u32 %s1635_s7, 4  ;;  %s1883_s28 = sshll.u32 %s3513_s12, 7  ;;  %s3346_s14 = int_to_ptr.hbm [resolvable:$true] %s1639_s14 }
 0x27b   : > { %s2232_s8 = sshra.s32 %s3344_s11, 4  ;;  %s2234_s26 = sshrl.u32 %s1883_s28, 4  ;;  %s2233_s8 = int_to_ptr.vmem [resolvable:$true] %s2232_s8 }
 0x27c   : > { %s2239_s16 = scalar_lea.vmem %s2233_s8, %s2234_s26  ;;  %s2322_s22 = smov [#allocation8]  }
 0x27d   : > { %p2240_p11 = scmp.ne.s32.totalorder %s2233_s8, %s2239_s16  ;;  %s2243_s13 = scalar_lea.vmem %s2322_s22, 512 }
 0x27e   : > { %p2245_p10 = scmp.lt.s32.totalorder %s2243_s13, %s2239_s16 }
 0x27f   : > { %p2241_p5 = pnand %p2240_p11, %p3335_p13 }
 0x281   : > { %p2242_p9 = pneg %p2241_p5 }
 0x283   : > { %p2247_p1 = pnand %p2245_p10, %p2242_p9 }
 0x285   : > { %2250 = shalt.err (!%p2247_p1)
}
 0x286   : > { %s2251_s25 = sshra.s32 %s3346_s14, 4  ;;  %s2262_s23 = scalar_lea.hbm %s3393_s5, 944  ;;  %s2252_s25 = int_to_ptr.hbm [resolvable:$true] %s2251_s25 }
 0x287   : > { %s2258_s15 = scalar_lea.hbm %s2252_s25, %s2234_s26  ;;  %p2263_p7 = scmp.lt.s32.totalorder %s2252_s25, %s3393_s5 }
 0x288   : > { %p2259_p0 = scmp.ne.s32.totalorder %s2252_s25, %s2258_s15  ;;  %p2264_p8 = scmp.lt.s32.totalorder %s2262_s23, %s2258_s15 }
 0x28a   : > { %p2260_p2 = pnand %p2259_p0, %p3335_p13  ;;  %p2265_p4 = por %p2264_p8, %p2263_p7 }
 0x28c   : > { %p2261_p3 = pneg %p2260_p2 }
 0x28e   : > { %p2266_p12 = pnand %p2265_p4, %p2261_p3 }
 0x290   : > { %2269 = shalt.err (!%p2266_p12)
}
 0x291   : > { %s2323_s8 = smov 128   ;;  %s2324_s26 = smov 8  }
 0x292   : > { %1645 = dma.vmem_to_hbm [thread:$0]  (%p3335_p13), %s3344_s11, %s1883_s28, %s3346_s14, %s1618_s17, %s2323_s8, %s2323_s8, %s2324_s26  }
 0x293 PF: > { %p1961_p6 = scmp.ge.s32.totalorder %s2313_s21, 2  ;;  %s1654_s16 = sand.u32 1, %s2301_s18  }
 0x294   : > { %p3505_p11 = scmp.ne.s32.totalorder %s3431_s6, 0  ;;  %s1655_s22 = scalar_lea.sflag [#allocation4], %s1654_s16 }
 0x296   : > { %p1954_p5 = pnand %p1961_p6, %p3505_p11 }
 0x298   : > { %p1955_p9 = pneg %p1954_p5 }
 0x29a   : > { %2296 = dma.done.wait (%p1955_p9), %s1655_s22, 4096  }
 0x29b   : > { %2298 = vsyncadd (%p1955_p9), %s1655_s22, 4294963200  ;;  %p19_p10 = scmp.ge.s32.totalorder %s2380_s24, 6   ;;  %s3506_s18 = smov %s2305_s19 }
 0x29c   : > { %s3507_s19 = smov %s2309_s20  ;;  %s3508_s20 = smov %s2392_s27 }
 0x29d   : > { %s3509_s21 = smov %s2380_s24  ;;  %21 = sbr.rel (!%p19_p10) target bundleno = 8 (0x8), region = 93 }
 0x2a2   :  { %1661 = vsyncpa [#allocation3], 1 }
 0x2a3   :  { %1663 = vsyncpa [#allocation3 + $0x1], 1 }
 0x2a4   :  { %1664 = vsyncpa [#allocation6], 1 }
 0x2a5   :  { %1665 = vsyncpa [#allocation4], 1 }
 0x2a6   :  { %1667 = vsyncpa [#allocation4 + $0x1], 1 }

// kernel: tpu_custom_call.1
= control target key start
LH: loop header
LB: loop body
LE: loop exit
PB: predicated region body
PF: predicated region fallthrough
CT: control target
= control target key end

     0   :  { %s3388_s0 = inlined_call_operand.hbm [shape: bf16[938,128], index: 0, kind: input, shape index: {}]   ;;  %s3389_s1 = inlined_call_operand.hbm [shape: bf16[128,128], index: 1, kind: input, shape index: {}]   ;;  %s3390_s2 = inlined_call_operand.vmem [shape: f32[1,128], index: 2, kind: input, shape index: {}]   ;;  %s3391_s3 = inlined_call_operand.hbm [shape: bf16[128,128], index: 3, kind: input, shape index: {}]   ;;  %s3392_s4 = inlined_call_operand.vmem [shape: f32[1,128], index: 4, kind: input, shape index: {}]   ;;  %s3393_s5 = inlined_call_operand.hbm [shape: f32[938,128], index: 5, kind: output, shape index: {}]  }
   0x1   :  { %3427 = sst [smem:[#allocation37_spill]] %s3389_s1 }
   0x2   :  { %10 = vsyncpa [#allocation3], 0 }
   0x3   :  { %12 = vsyncpa [#allocation3 + $0x1], 0 }
   0x4   :  { %13 = vsyncpa [#allocation6], 0 }
   0x5   :  { %14 = vsyncpa [#allocation4], 0 }
   0x6   :  { %16 = vsyncpa [#allocation4 + $0x1], 0  ;;  %s2355_s18 = smov 0   ;;  %s2357_s19 = smov 0  }
   0x7   :  { %s2359_s20 = smov 0   ;;  %s2361_s21 = smov 0  }
   0x8 LB: > { %s2376_s22 = sadd.s32 4294967295, %s2313_s21   ;;  %s1732_s23 = sadd.s32 4294967294, %s2313_s21   ;;  %s2313_s21 = sphi %s2361_s21, %s3509_s21   ;;  %s2309_s20 = sphi %s2359_s20, %s3508_s20   ;;  %s2305_s19 = sphi %s2357_s19, %s3507_s19   ;;  %s2301_s18 = sphi %s2355_s18, %s3506_s18  }
   0x9   : > { %s2380_s24 = sadd.s32 1, %s2313_s21   ;;  %s29_s25 = sadd.s32 1, %s2309_s20 }
   0xa   : > { %s26_s26 = ssub.s32 %s2313_s21, %s2380_s24  ;;  %p36_p0 = scmp.ne.s32.totalorder %s2309_s20, %s2305_s19 }
   0xb   : > { %p27_p1 = scmp.eq.s32.totalorder %s26_s26, 0  ;;  %p37_p2 = scmp.eq.s32.totalorder %s2313_s21, 0 }
   0xc   : > { %p42_p3 = scmp.ne.s32.totalorder %s2305_s19, %s2301_s18  ;;  %p3395_p4 = scmp.eq.s32.totalorder %s2376_s22, 0 }
   0xd   : > { %s2392_s27 = scalar_select %p27_p1, %s2309_s20, %s29_s25  }
   0xe   : > { %p2394_p5 = por %p37_p2, %p36_p0  ;;  %p2400_p6 = por %p3395_p4, %p42_p3 }
   0xf   : > { %p150_p7 = scmp.eq.s32.totalorder %s2376_s22, 3  ;;  %p156_p8 = scmp.eq.s32.totalorder %s1732_s23, 3 }
  0x10   : > { %p1733_p9 = scmp.ge.s32.totalorder %s2313_s21, 1  ;;  %p163_p10 = scmp.lt.s32.totalorder %s2313_s21, 5 }
  0x11   : > { %p2407_p11 = por %p150_p7, %p36_p0  ;;  %p2411_p12 = por %p156_p8, %p42_p3 }
  0x12   : > { %p2415_p13 = pnand %p1733_p9, %p163_p10  ;;  %s3433_s1 = sld [smem:[#allocation37_spill]] }
  0x13   : > { %s3431_s6 = scalar_select %p2411_p12, 1, 0 }
  0x14   : > { %p1946_p1 = pneg %p2415_p13  ;;  %s2315_s11 = smov [#allocation5]  }
  0x15   : > { %s176_s12 = sshll.u32 %s2315_s11, 4  ;;  %s191_s15 = sshll.u32 %s3391_s3, 4  ;;  %s177_s12 = int_to_ptr.vmem [resolvable:$true] %s176_s12  ;;  %s192_s15 = int_to_ptr.hbm [resolvable:$true] %s191_s15 }
  0x16   : > { %p1947_p0 = pnand %p1946_p1, %p3395_p4  ;;  %s2316_s16 = smov 64  }
  0x17   : > { %s2317_s17 = smov 4   ;;  %s2318_s23 = smov [#allocation7]  }
  0x18   : > { %s174_s10 = sshll.u32 %s3433_s1, 4  ;;  %s193_s25 = sshll.u32 %s2318_s23, 4  ;;  %s175_s10 = int_to_ptr.hbm [resolvable:$true] %s174_s10  ;;  %s194_s25 = int_to_ptr.vmem [resolvable:$true] %s193_s25 }
  0x19   : > { %1949 = dma.hbm_to_vmem [thread:$0]  (!%p1947_p0), %s175_s10, 1024, %s177_s12, [#allocation6], %s2316_s16, %s2316_s16, %s2317_s17  }
  0x1a   : > { %1952 = dma.hbm_to_vmem [thread:$0]  (!%p1947_p0), %s192_s15, 1024, %s194_s25, [#allocation6], %s2316_s16, %s2316_s16, %s2317_s17  }
  0x1b   : > { %p1736_p2 = scmp.ge.s32.totalorder %s2313_s21, 4 }
  0x1d   : > { %206 = sbr.rel (%p1736_p2) target bundleno = 71 (0x47), region = 32 }
  0x22   : > { %209 = sbr.rel (!%p2394_p5) target bundleno = 71 (0x47), region = 36  ;;  %s210_s26 = sand.u32 (%p2394_p5), 1, %s2309_s20  }
  0x23   : > { %s1738_s8 = sshll.u32 (%p2394_p5), %s2313_s21, 5  ;;  %s1737_s9 = sshll.u32 (%p2394_p5), %s210_s26, 7 }
  0x24   : > { %s216_s11 = ssub.s32 (%p2394_p5), 118, %s1738_s8  ;;  %s2437_s14 = scalar_lea.sflag (%p2394_p5), [#allocation3], %s210_s26 }
  0x25   : > { %p217_p3 = scmp.lt.s32.totalorder (%p2394_p5), %s216_s11, 32  ;;  %s214_s15 = scalar_lea.vmem (%p2394_p5), [#allocation2], %s1737_s9 }
  0x27   : > { %s3511_s11 = smov (!%p217_p3, %s216_s11), 32 }
  0x28   : > { %s1739_s10 = sshll.u32 %s3511_s11, 2 }
  0x29   : > { %s220_s12 = ssub.s32 128, %s1739_s10 }
  0x2a   : > { %s221_s13 = sshll.u32 %s220_s12, 4 }
  0x2b   : > { %222 = vsyncadd %s2437_s14, %s221_s13  ;;  %p2440_p5 = scmp.ne.s32.totalorder %s1739_s10, 0  ;;  %s1886_s16 = sshll.u32 %s2313_s21, 7 }
  0x2c   : > { %s225_s25 = scalar_lea.hbm %s3388_s0, %s1886_s16  ;;  %s2448_s8 = sshll.u32 %s214_s15, 4  ;;  %s230_s8 = int_to_ptr.vmem [resolvable:$true] %s2448_s8 }
  0x2d   : > { %s227_s26 = sshll.u32 %s225_s25, 4  ;;  %s3394_s9 = sshll.u32 %s3511_s11, 6  ;;  %s2451_s26 = int_to_ptr.hbm [resolvable:$true] %s227_s26 }
  0x2e   : > { %s2193_s12 = sshra.s32 %s2451_s26, 4  ;;  %s2195_s10 = sshrl.u32 %s3394_s9, 4  ;;  %s2194_s12 = int_to_ptr.hbm [resolvable:$true] %s2193_s12 }
  0x2f   : > { %s2200_s13 = scalar_lea.hbm %s2194_s12, %s2195_s10  ;;  %s2204_s15 = scalar_lea.hbm %s3388_s0, 472 }
  0x30   : > { %p2201_p7 = scmp.ne.s32.totalorder %s2194_s12, %s2200_s13  ;;  %p2205_p10 = scmp.lt.s32.totalorder %s2194_s12, %s3388_s0 }
  0x31   : > { %p2206_p1 = scmp.lt.s32.totalorder %s2204_s15, %s2200_s13 }
  0x32   : > { %p2202_p8 = pnand %p2201_p7, %p2440_p5 }
  0x33   : > { %p2207_p0 = por %p2206_p1, %p2205_p10 }
  0x34   : > { %p2203_p9 = pneg %p2202_p8 }
  0x36   : > { %p2208_p2 = pnand %p2207_p0, %p2203_p9 }
  0x38   : > { %2211 = shalt.err (!%p2208_p2)
}
  0x39   : > { %s2212_s9 = sshra.s32 %s230_s8, 4  ;;  %s2319_s17 = smov [#allocation2]   ;;  %s2213_s9 = int_to_ptr.vmem [resolvable:$true] %s2212_s9 }
  0x3a   : > { %s2219_s1 = scalar_lea.vmem %s2213_s9, %s2195_s10  ;;  %s2223_s16 = scalar_lea.vmem %s2319_s17, 256 }
  0x3b   : > { %p2220_p3 = scmp.ne.s32.totalorder %s2213_s9, %s2219_s1  ;;  %p2225_p4 = scmp.lt.s32.totalorder %s2223_s16, %s2219_s1 }
  0x3d   : > { %p2221_p7 = pnand %p2220_p3, %p2440_p5 }
  0x3f   : > { %p2222_p8 = pneg %p2221_p7 }
  0x41   : > { %p2227_p12 = pnand %p2225_p4, %p2222_p8 }
  0x43   : > { %2230 = shalt.err (!%p2227_p12)
}
  0x44   : > { %s2320_s12 = smov 64   ;;  %s2321_s13 = smov 4  }
  0x45   : > { %s3435_s15 = sshll.u32 %s3511_s11, 6 }
  0x46   : > { %235 = dma.hbm_to_vmem [thread:$0]  (%p2440_p5), %s2451_s26, %s3435_s15, %s230_s8, %s2437_s14, %s2320_s12, %s2320_s12, %s2321_s13  }
  0x47 PF: > { %241 = sbr.rel (%p2415_p13) target bundleno = 659 (0x293), region = 40 }
  0x4c   : > { %s2480_s1 = sand.u32 1, %s2305_s19  }
  0x4d   : > { %s1745_s9 = sshll.u32 %s2480_s1, 7  ;;  %s244_s10 = scalar_lea.sflag [#allocation3], %s2480_s1 }
  0x4e   : > { %s2484_s23 = scalar_lea.vmem [#allocation2], %s1745_s9 }
  0x4f   : > { %2288 = dma.done.wait (%p2400_p6), %s244_s10, 2048  }
  0x50   : > { %2290 = vsyncadd (%p2400_p6), %s244_s10, 4294965248  ;;  %p3436_p4 = scmp.eq.s32.totalorder %s2376_s22, 0 }
  0x52   : > { %2292 = dma.done.wait (%p3436_p4), [#allocation6], 2048   ;;  %p3437_p12 = pmov %p3436_p4 }
  0x53   : > { %v1910_v0 = vld [vmem:[#allocation5 + $0x38] sm:$0xff]  ;;  %v1909_v1 = vld [vmem:[#allocation5 + $0x30] sm:$0xff]  ;;  %v1908_v2 = vld [vmem:[#allocation5 + $0x28] sm:$0xff]  ;;  %s1748_s28 = sshll.u32 %s2480_s1, 8  ;;  %s1618_s17 = scalar_lea.sflag [#allocation4], %s2480_s1 }
  0x54   : > { %2294 = vsyncadd (%p3437_p12), [#allocation6], 4294965248  ;;  %491 = vmatpush.bf16.msra.mxu0 %v1910_v0  ;;  %1920 = vmatpush.bf16.msra.mxu2 %v1910_v0  ;;  %v1907_v3 = vld [vmem:[#allocation5 + $0x20] sm:$0xff]  ;;  %v1906_v4 = vld [vmem:[#allocation5 + $0x18] sm:$0xff]  ;;  %s3247_s25 = scalar_lea.vmem [#allocation8], %s1748_s28  ;;  %s1878_s16 = sshll.u32 (%p2407_p11), %s2376_s22, 5 }
  0x55   : > { %v1905_v5 = vld [vmem:[#allocation5 + $0x10] sm:$0xff]  ;;  %v1904_v6 = vld [vmem:[#allocation5 + $0x8] sm:$0xff]  ;;  %v1903_v7 = vld [vmem:[#allocation5] sm:$0xff]  ;;  %s1626_s12 = ssub.s32 (%p2407_p11), 118, %s1878_s16 }
  0x56   : > { %v1887_v8 = vld [vmem:[%s2484_s23] sm:$0xff]  ;;  %v1888_v10 = vld [vmem:[%s2484_s23 + $0x8] sm:$0xff]  ;;  %v1889_v12 = vld [vmem:[%s2484_s23 + $0x10] sm:$0xff]  ;;  %p1627_p6 = scmp.lt.s32.totalorder (%p2407_p11), %s1626_s12, 32 }
  0x57   : > { %v1895_v9 = vld [vmem:[%s2484_s23 + $0x40] sm:$0xff]  ;;  %v1896_v11 = vld [vmem:[%s2484_s23 + $0x48] sm:$0xff]  ;;  %v1897_v13 = vld [vmem:[%s2484_s23 + $0x50] sm:$0xff] }
  0x58   : > { %492 = vmatpush.bf16.msra.mxu0 %v1909_v1  ;;  %1921 = vmatpush.bf16.msra.mxu2 %v1909_v1  ;;  %v1890_v14 = vld [vmem:[%s2484_s23 + $0x18] sm:$0xff]  ;;  %v1891_v16 = vld [vmem:[%s2484_s23 + $0x20] sm:$0xff]  ;;  %v1892_v18 = vld [vmem:[%s2484_s23 + $0x28] sm:$0xff] }
  0x59   : > { %v1898_v15 = vld [vmem:[%s2484_s23 + $0x58] sm:$0xff]  ;;  %v1899_v17 = vld [vmem:[%s2484_s23 + $0x60] sm:$0xff]  ;;  %v1900_v19 = vld [vmem:[%s2484_s23 + $0x68] sm:$0xff] }
  0x5a   : > { %v1893_v20 = vld [vmem:[%s2484_s23 + $0x30] sm:$0xff]  ;;  %v1894_v22 = vld [vmem:[%s2484_s23 + $0x38] sm:$0xff]  ;;  %v2513_v25 = vld [vmem:[%s3390_s2] ss:$0 sm:$0xff] }
  0x5b   : > { %v1901_v21 = vld [vmem:[%s2484_s23 + $0x70] sm:$0xff]  ;;  %v1902_v23 = vld [vmem:[%s2484_s23 + $0x78] sm:$0xff]  ;;  %v1916_v29 = vld [vmem:[#allocation7 + $0x28] sm:$0xff] }
  0x5c   : > { %493 = vmatpush.bf16.msra.mxu0 %v1908_v2  ;;  %1922 = vmatpush.bf16.msra.mxu2 %v1908_v2  ;;  %v1918_v24 = vld [vmem:[#allocation7 + $0x38] sm:$0xff]  ;;  %v1917_v26 = vld [vmem:[#allocation7 + $0x30] sm:$0xff]  ;;  %v1915_v32 = vld [vmem:[#allocation7 + $0x20] sm:$0xff] }
  0x5d   : > { %1496 = vmatpush.bf16.msra.mxu1 %v1918_v24  ;;  %1928 = vmatpush.bf16.msra.mxu3 %v1918_v24  ;;  %v1914_v38 = vld [vmem:[#allocation7 + $0x18] sm:$0xff]  ;;  %v1913_v42 = vld [vmem:[#allocation7 + $0x10] sm:$0xff]  ;;  %v1912_v50 = vld [vmem:[#allocation7 + $0x8] sm:$0xff] }
  0x5e   : > { %v1911_v55 = vld [vmem:[#allocation7] sm:$0xff] }
  0x60   : > { %494 = vmatpush.bf16.msra.mxu0 %v1907_v3  ;;  %1923 = vmatpush.bf16.msra.mxu2 %v1907_v3 }
  0x61   : > { %1497 = vmatpush.bf16.msra.mxu1 %v1917_v26  ;;  %1929 = vmatpush.bf16.msra.mxu3 %v1917_v26 }
  0x64   : > { %495 = vmatpush.bf16.msra.mxu0 %v1906_v4  ;;  %1924 = vmatpush.bf16.msra.mxu2 %v1906_v4 }
  0x65   : > { %1498 = vmatpush.bf16.msra.mxu1 %v1916_v29  ;;  %1930 = vmatpush.bf16.msra.mxu3 %v1916_v29 }
  0x68   : > { %496 = vmatpush.bf16.msra.mxu0 %v1905_v5  ;;  %1925 = vmatpush.bf16.msra.mxu2 %v1905_v5 }
  0x69   : > { %1499 = vmatpush.bf16.msra.mxu1 %v1915_v32  ;;  %1931 = vmatpush.bf16.msra.mxu3 %v1915_v32 }
  0x6c   : > { %497 = vmatpush.bf16.msra.mxu0 %v1904_v6  ;;  %1926 = vmatpush.bf16.msra.mxu2 %v1904_v6 }
  0x6d   : > { %1500 = vmatpush.bf16.msra.mxu1 %v1914_v38  ;;  %1932 = vmatpush.bf16.msra.mxu3 %v1914_v38 }
  0x70   : > { %498 = vmatpush.bf16.msra.mxu0 %v1903_v7  ;;  %1927 = vmatpush.bf16.msra.mxu2 %v1903_v7 }
  0x71   : > { %1501 = vmatpush.bf16.msra.mxu1 %v1913_v42  ;;  %1933 = vmatpush.bf16.msra.mxu3 %v1913_v42 }
  0x73   : > { %499 = vmatmul.bf16.vlgmr.msra.gmra.mxu0 %v1887_v8  ;;  %539 = vmatmul.bf16.vlgmr.msra.gmra.mxu2 %v1895_v9 }
  0x75   : > { %1502 = vmatpush.bf16.msra.mxu1 %v1912_v50  ;;  %1934 = vmatpush.bf16.msra.mxu3 %v1912_v50 }
  0x79   : > { %1503 = vmatpush.bf16.msra.mxu1 %v1911_v55  ;;  %1935 = vmatpush.bf16.msra.mxu3 %v1911_v55 }
  0x83   : > { %504 = vmatmul.bf16.gmra.mxu0 %v1888_v10  ;;  %544 = vmatmul.bf16.gmra.mxu2 %v1896_v11 }
  0x93   : > { %509 = vmatmul.bf16.gmra.mxu0 %v1889_v12  ;;  %549 = vmatmul.bf16.gmra.mxu2 %v1897_v13 }
  0xa3   : > { %514 = vmatmul.bf16.gmra.mxu0 %v1890_v14  ;;  %554 = vmatmul.bf16.gmra.mxu2 %v1898_v15 }
  0xb3   : > { %519 = vmatmul.bf16.gmra.mxu0 %v1891_v16  ;;  %559 = vmatmul.bf16.gmra.mxu2 %v1899_v17 }
  0xc3   : > { %524 = vmatmul.bf16.gmra.mxu0 %v1892_v18  ;;  %564 = vmatmul.bf16.gmra.mxu2 %v1900_v19 }
  0xd3   : > { %529 = vmatmul.bf16.gmra.mxu0 %v1893_v20  ;;  %569 = vmatmul.bf16.gmra.mxu2 %v1901_v21 }
  0xe3   : > { %534 = vmatmul.bf16.gmra.mxu0 %v1894_v22  ;;  %574 = vmatmul.bf16.gmra.mxu2 %v1902_v23 }
  0xf0   : > { %v500_v27 = vpop.f32.mrf.mxu0 }
  0xf1   : > { %v2516_v28 = vadd.f32 %v2513_v25, %v500_v27 }
  0xf3   : > { %v2519_v30 = vmul.f32 0.70710677, %v2516_v28  ;;  %v2576_v29 = vmul.f32 0.5, %v2516_v28 }
  0xf5   : > { %v644_v31 = vand.u32 2147483647, %v2519_v30  ;;  %vm1252_vm0 = vcmp.ge.f32.partialorder %v2519_v30, 0.0 }
  0xf6   : > { %v540_v33 = vpop.f32.mrf.mxu2 }
  0xf7   : > { %v676_v34 = vmul.f32 0.3275911, %v644_v31  ;;  %v2523_v35 = vadd.f32 %v2513_v25, %v540_v33  ;;  %v1060_v57 = vsub.f32 0.0, %v644_v31 }
  0xf8   : > { %v502_v36 = vpop.f32.mrf.mxu0 }
  0xf9   : > { %v708_v37 = vadd.f32 1.0, %v676_v34  ;;  %v2526_v39 = vadd.f32 %v2513_v25, %v502_v36  ;;  %v2529_v40 = vmul.f32 0.70710677, %v2523_v35  ;;  %v1092_v4 = vmul.f32 %v1060_v57, %v644_v31 }
  0xfa   : > { %v2581_v38 = vmul.f32 0.5, %v2523_v35 }
  0xfb   : > { %2004 = vrcp.f32 %v708_v37  ;;  %v2532_v41 = vmul.f32 0.70710677, %v2526_v39  ;;  %v660_v45 = vand.u32 2147483647, %v2529_v40  ;;  %v1124_v16 = vmul.f32 1.442695, %v1092_v4 }
  0xfc   : > { %vm1268_vm2 = vcmp.ge.f32.partialorder %v2529_v40, 0.0 }
  0xfd   : > { %v645_v43 = vand.u32 2147483647, %v2532_v41  ;;  %v692_v53 = vmul.f32 0.3275911, %v660_v45  ;;  %v1076_v60 = vsub.f32 0.0, %v660_v45  ;;  %vm1253_vm1 = vcmp.ge.f32.partialorder %v2532_v41, 0.0 }
  0xfe   : > { %v542_v44 = vpop.f32.mrf.mxu2 }
  0xff   : > { %v677_v46 = vmul.f32 0.3275911, %v645_v43  ;;  %v2537_v47 = vadd.f32 %v2513_v25, %v542_v44  ;;  %v724_v63 = vadd.f32 1.0, %v692_v53  ;;  %v1061_v2 = vsub.f32 0.0, %v645_v43 }
 0x100   : > { %v505_v48 = vpop.f32.mrf.mxu0  ;;  %v1108_v7 = vmul.f32 %v1076_v60, %v660_v45  ;;  %v2585_v44 = vmul.f32 0.5, %v2526_v39 }
 0x101   : > { %v2539_v49 = vpop.eup %2004  ;;  %v709_v51 = vadd.f32 1.0, %v677_v46  ;;  %v2543_v54 = vmul.f32 0.70710677, %v2537_v47  ;;  %v2546_v58 = vadd.f32 %v2513_v25, %v505_v48  ;;  %v1093_v12 = vmul.f32 %v1061_v2, %v645_v43 }
 0x102   : > { %v772_v52 = vmul.f32 1.0614054, %v2539_v49  ;;  %v1156_v19 = vmul.f32 1.442695, %v1108_v7 }
 0x103   : > { %2006 = vrcp.f32 %v709_v51  ;;  %v661_v0 = vand.u32 2147483647, %v2543_v54  ;;  %v2556_v5 = vmul.f32 0.70710677, %v2546_v58  ;;  %v1126_v31 = vmul.f32 1.442695, %v1093_v12 }
 0x104   : > { %v804_v56 = vadd.f32 -1.4531521, %v772_v52  ;;  %2008 = vrcp.f32 %v724_v63  ;;  %v2607_v7 = vmul.f32 0.5, %v2546_v58  ;;  %vm1269_vm3 = vcmp.ge.f32.partialorder %v2543_v54, 0.0 }
 0x105   : > { %v693_v10 = vmul.f32 0.3275911, %v661_v0  ;;  %v1077_v13 = vsub.f32 0.0, %v661_v0  ;;  %v646_v17 = vand.u32 2147483647, %v2556_v5  ;;  %2010 = vpow2.f32 %v1124_v16 }
 0x106   : > { %v545_v59 = vpop.f32.mrf.mxu2  ;;  %v836_v62 = vmul.f32 %v2539_v49, %v804_v56  ;;  %2012 = vpow2.f32 %v1156_v19  ;;  %vm1254_vm4 = vcmp.ge.f32.partialorder %v2556_v5, 0.0 }
 0x107   : > { %v2549_v61 = vadd.f32 %v2513_v25, %v545_v59  ;;  %v725_v22 = vadd.f32 1.0, %v693_v10  ;;  %v1109_v32 = vmul.f32 %v1077_v13, %v661_v0  ;;  %v678_v34 = vmul.f32 0.3275911, %v646_v17 }
 0x108   : > { %v507_v1 = vpop.f32.mrf.mxu0  ;;  %v868_v6 = vadd.f32 1.4214138, %v836_v62  ;;  %v1062_v36 = vsub.f32 0.0, %v646_v17 }
 0x109   : > { %v2553_v3 = vpop.eup %2006  ;;  %v2559_v8 = vmul.f32 0.70710677, %v2549_v61  ;;  %v2563_v11 = vadd.f32 %v2513_v25, %v507_v1  ;;  %2014 = vrcp.f32 %v725_v22  ;;  %v1158_v46 = vmul.f32 1.442695, %v1109_v32 }
 0x10a   : > { %v773_v9 = vmul.f32 1.0614054, %v2553_v3  ;;  %v900_v15 = vmul.f32 %v2539_v49, %v868_v6  ;;  %v2578_v33 = vpop.eup %2008  ;;  %2016 = vpow2.f32 %v1126_v31  ;;  %v710_v35 = vadd.f32 1.0, %v678_v34 }
 0x10b   : > { %v662_v20 = vand.u32 2147483647, %v2559_v8  ;;  %v2570_v23 = vmul.f32 0.70710677, %v2563_v11  ;;  %v1094_v51 = vmul.f32 %v1062_v36, %v646_v17  ;;  %v788_v39 = vmul.f32 1.0614054, %v2578_v33  ;;  %v2011_v60 = vpop.eup %2010 }
 0x10c   : > { %v805_v14 = vadd.f32 -1.4531521, %v773_v9  ;;  %v932_v27 = vadd.f32 -0.28449672, %v900_v15  ;;  %v2601_v4 = vpop.eup %2012  ;;  %v2604_v6 = vmul.f32 0.5, %v2537_v47  ;;  %2018 = vpow2.f32 %v1158_v46 }
 0x10d   : > { %v1078_v42 = vsub.f32 0.0, %v662_v20  ;;  %v647_v28 = vand.u32 2147483647, %v2570_v23  ;;  %v694_v55 = vmul.f32 0.3275911, %v662_v20  ;;  %v2610_v9 = vmul.f32 0.5, %v2549_v61 }
 0x10e   : > { %v547_v18 = vpop.f32.mrf.mxu2  ;;  %v837_v21 = vmul.f32 %v2553_v3, %v805_v14  ;;  %v964_v43 = vmul.f32 %v2539_v49, %v932_v27  ;;  %v1128_v12 = vmul.f32 1.442695, %v1094_v51  ;;  %v820_v14 = vadd.f32 -1.4531521, %v788_v39 }
 0x10f   : > { %v2573_v24 = vadd.f32 %v2513_v25, %v547_v18  ;;  %v1110_v56 = vmul.f32 %v1078_v42, %v662_v20  ;;  %v1063_v57 = vsub.f32 0.0, %v647_v28  ;;  %v679_v62 = vmul.f32 0.3275911, %v647_v28  ;;  %v2612_v10 = vpop.eup %2014 }
 0x110   : > { %v510_v26 = vpop.f32.mrf.mxu0  ;;  %v869_v37 = vadd.f32 1.4214138, %v837_v21  ;;  %v996_v50 = vadd.f32 0.2548296, %v964_v43  ;;  %v2017_v15 = vpop.eup %2016  ;;  %v726_v16 = vadd.f32 1.0, %v694_v55  ;;  %2020 = vrcp.f32 %v710_v35 }
 0x111   : > { %v2589_v45 = vmul.f32 0.70710677, %v2573_v24  ;;  %v2593_v52 = vadd.f32 %v2513_v25, %v510_v26  ;;  %v1160_v47 = vmul.f32 1.442695, %v1110_v56  ;;  %v1095_v17 = vmul.f32 %v1063_v57, %v647_v28 }
 0x112   : > { %v901_v48 = vmul.f32 %v2553_v3, %v869_v37  ;;  %v1028_v2 = vmul.f32 %v2539_v49, %v996_v50  ;;  %v711_v58 = vadd.f32 1.0, %v679_v62  ;;  %v789_v26 = vmul.f32 1.0614054, %v2612_v10  ;;  %v2628_v36 = vpop.eup %2018 }
 0x113   : > { %v663_v63 = vand.u32 2147483647, %v2589_v45  ;;  %v2615_v13 = vmul.f32 0.70710677, %v2593_v52  ;;  %2022 = vpow2.f32 %v1128_v12  ;;  %v852_v34 = vmul.f32 %v2578_v33, %v820_v14 }
 0x114   : > { %v933_v59 = vadd.f32 -0.28449672, %v901_v48  ;;  %v1188_v18 = vmul.f32 %v2011_v60, %v1028_v2  ;;  %2024 = vrcp.f32 %v726_v16  ;;  %v1130_v37 = vmul.f32 1.442695, %v1095_v17 }
 0x115   : > { %v695_v19 = vmul.f32 0.3275911, %v663_v63  ;;  %v1079_v20 = vsub.f32 0.0, %v663_v63  ;;  %v648_v27 = vand.u32 2147483647, %v2615_v13  ;;  %2026 = vpow2.f32 %v1160_v47 }
 0x116   : > { %v550_v53 = vpop.f32.mrf.mxu2  ;;  %v965_v49 = vmul.f32 %v2553_v3, %v933_v59  ;;  %v1220_v32 = vsub.f32 1.0, %v1188_v18  ;;  %2028 = vrcp.f32 %v711_v58  ;;  %v2639_v39 = vpop.eup %2020  ;;  %v2648_v59 = vmul.f32 0.5, %v2563_v11 }
 0x117   : > { %v2598_v0 = vadd.f32 %v2513_v25, %v550_v53  ;;  %v727_v28 = vadd.f32 1.0, %v695_v19  ;;  %v1064_v46 = vsub.f32 0.0, %v648_v27  ;;  %v1111_v35 = vmul.f32 %v1079_v20, %v663_v63 }
 0x118   : > { %v512_v1 = vpop.f32.mrf.mxu0  ;;  %v997_v22 = vadd.f32 0.2548296, %v965_v49  ;;  %v821_v53 = vadd.f32 -1.4531521, %v789_v26  ;;  %v1284_v57 = vsub.f32 0.0, %v1220_v32  ;;  %2030 = vpow2.f32 %v1130_v37 }
 0x119   : > { %v2619_v61 = vmul.f32 0.70710677, %v2598_v0  ;;  %v2623_v21 = vadd.f32 %v2513_v25, %v512_v1  ;;  %v2651_v60 = vmul.f32 0.5, %v2573_v24  ;;  %v680_v62 = vmul.f32 0.3275911, %v648_v27  ;;  %v2653_v63 = vpop.eup %2022 }
 0x11a   : > { %v1029_v43 = vmul.f32 %v2553_v3, %v997_v22  ;;  %2032 = vrcp.f32 %v727_v28  ;;  %v2656_v1 = vmul.f32 0.5, %v2593_v52  ;;  %v1096_v2 = vmul.f32 %v1064_v46, %v648_v27  ;;  %v2658_v49 = vpop.eup %2024 }
 0x11b   : > { %v664_v48 = vand.u32 2147483647, %v2619_v61  ;;  %v2637_v51 = vmul.f32 0.70710677, %v2623_v21  ;;  %v1162_v14 = vmul.f32 1.442695, %v1111_v35  ;;  %v853_v16 = vmul.f32 %v2612_v10, %v821_v53  ;;  %v2662_v47 = vpop.eup %2026 }
 0x11c   : > { %v1189_v56 = vmul.f32 %v2017_v15, %v1029_v43  ;;  %v1316_v52 = vsel %vm1252_vm0, %v1220_v32, %v1284_v57  ;;  %v884_v58 = vadd.f32 1.4214138, %v852_v34  ;;  %v2670_v19 = vpop.eup %2028  ;;  %v712_v20 = vadd.f32 1.0, %v680_v62 }
 0x11d   : > { %v1080_v12 = vsub.f32 0.0, %v664_v48  ;;  %v649_v15 = vand.u32 2147483647, %v2637_v51  ;;  %v696_v22 = vmul.f32 0.3275911, %v664_v48  ;;  %v2676_v37 = vmul.f32 0.5, %v2598_v0 }
 0x11e   : > { %v552_v31 = vpop.f32.mrf.mxu2  ;;  %v1221_v11 = vsub.f32 1.0, %v1189_v56  ;;  %2034 = vpow2.f32 %v1162_v14  ;;  %v1348_v32 = vadd.f32 1.0, %v1316_v52  ;;  %v885_v34 = vadd.f32 1.4214138, %v853_v16 }
 0x11f   : > { %v2631_v42 = vadd.f32 %v2513_v25, %v552_v31  ;;  %v1132_v31 = vmul.f32 1.442695, %v1096_v2  ;;  %3439 = vst [vmem:[#allocation13_spill] sm:$0xff] %v2676_v37  ;;  %v1112_v43 = vmul.f32 %v1080_v12, %v664_v48  ;;  %v1065_v28 = vsub.f32 0.0, %v649_v15 }
 0x120   : > { %v515_v50 = vpop.f32.mrf.mxu0  ;;  %v1285_v27 = vsub.f32 0.0, %v1221_v11  ;;  %v681_v30 = vmul.f32 0.3275911, %v649_v15  ;;  %v916_v0 = vmul.f32 %v2578_v33, %v884_v58  ;;  %2036 = vrcp.f32 %v712_v20 }
 0x121   : > { %v2642_v55 = vmul.f32 0.70710677, %v2631_v42  ;;  %v2645_v3 = vadd.f32 %v2513_v25, %v515_v50  ;;  %v2678_v50 = vpop.eup %2030  ;;  %v728_v48 = vadd.f32 1.0, %v696_v22  ;;  %v1164_v12 = vmul.f32 1.442695, %v1112_v43 }
 0x122   : > { %v2680_v35 = vpop.eup %2032  ;;  %v1317_v57 = vsel %vm1253_vm1, %v1221_v11, %v1285_v27  ;;  %v1097_v14 = vmul.f32 %v1065_v28, %v649_v15  ;;  %v917_v11 = vmul.f32 %v2612_v10, %v885_v34  ;;  %2038 = vpow2.f32 %v1132_v31 }
 0x123   : > { %v665_v24 = vand.u32 2147483647, %v2642_v55  ;;  %v2666_v17 = vmul.f32 0.70710677, %v2645_v3  ;;  %v1349_v2 = vadd.f32 1.0, %v1317_v57  ;;  %v713_v58 = vadd.f32 1.0, %v681_v30 }
 0x124   : > { %v948_v27 = vadd.f32 -0.28449672, %v916_v0  ;;  %v2695_v37 = vpop.eup %2034  ;;  %2040 = vrcp.f32 %v728_v48  ;;  %vm1255_vm5 = vcmp.ge.f32.partialorder %v2570_v23, 0.0  ;;  %vm1270_vm6 = vcmp.ge.f32.partialorder %v2559_v8, 0.0 }
 0x125   : > { %3438 = vst [vmem:[#allocation12_spill] sm:$0xff] %v2666_v17  ;;  %v1081_v53 = vsub.f32 0.0, %v665_v24  ;;  %v650_v56 = vand.u32 2147483647, %v2666_v17  ;;  %v1380_v17 = vmul.f32 %v1348_v32, %v2576_v29  ;;  %v1381_v41 = vmul.f32 %v1349_v2, %v2585_v44 }
 0x126   : > { %v555_v18 = vpop.f32.mrf.mxu2  ;;  %v1134_v29 = vmul.f32 1.442695, %v1097_v14  ;;  %v949_v32 = vadd.f32 -0.28449672, %v917_v11  ;;  %v980_v44 = vmul.f32 %v2578_v33, %v948_v27  ;;  %v2702_v34 = vpop.eup %2036  ;;  %2042 = vpow2.f32 %v1164_v12 }
 0x127   : > { %v2673_v26 = vadd.f32 %v2513_v25, %v555_v18  ;;  %v697_v18 = vmul.f32 0.3275911, %v665_v24  ;;  %v1066_v16 = vsub.f32 0.0, %v650_v56  ;;  %v1113_v20 = vmul.f32 %v1081_v53, %v665_v24 }
 0x128   : > { %v517_v46 = vpop.f32.mrf.mxu0  ;;  %v682_v43 = vmul.f32 0.3275911, %v650_v56  ;;  %v1412_v28 = vpack.c.bf16 %v1381_v41, %v1380_v17  ;;  %v981_v0 = vmul.f32 %v2612_v10, %v949_v32  ;;  %v1012_v48 = vadd.f32 0.2548296, %v980_v44  ;;  %v2715_v14 = vpop.eup %2038 }
 0x129   : > { %v2687_v62 = vmul.f32 0.70710677, %v2673_v26  ;;  %v2690_v52 = vadd.f32 %v2513_v25, %v517_v46  ;;  %v729_v24 = vadd.f32 1.0, %v697_v18  ;;  %v1098_v31 = vmul.f32 %v1066_v16, %v650_v56 }
 0x12a   : > { %1504 = vmatmul.bf16.vlgmr.msra.gmra.mxu1 %v1412_v28  ;;  %v1166_v57 = vmul.f32 1.442695, %v1113_v20  ;;  %v2713_v2 = vmul.f32 0.5, %v2623_v21  ;;  %2044 = vrcp.f32 %v713_v58  ;;  %v714_v12 = vadd.f32 1.0, %v682_v43 }
 0x12b   : > { %3440 = vst [vmem:[#allocation14_spill] sm:$0xff] %v2687_v62  ;;  %v666_v15 = vand.u32 2147483647, %v2687_v62  ;;  %v2705_v30 = vmul.f32 0.70710677, %v2690_v52  ;;  %2046 = vpow2.f32 %v1134_v29  ;;  %v1044_v16 = vmul.f32 %v2578_v33, %v1012_v48 }
 0x12c   : > { %3443 = vst [vmem:[#allocation17_spill] sm:$0xff] %v2713_v2  ;;  %v1013_v18 = vadd.f32 0.2548296, %v981_v0  ;;  %2048 = vrcp.f32 %v729_v24  ;;  %v1136_v11 = vmul.f32 1.442695, %v1098_v31  ;;  %v2731_v29 = vmul.f32 0.5, %v2631_v42 }
 0x12d   : > { %3441 = vst [vmem:[#allocation15_spill] sm:$0xff] %v2705_v30  ;;  %v1082_v56 = vsub.f32 0.0, %v666_v15  ;;  %v698_v20 = vmul.f32 0.3275911, %v666_v15  ;;  %v651_v21 = vand.u32 2147483647, %v2705_v30  ;;  %2050 = vpow2.f32 %v1166_v57 }
 0x12e   : > { %v557_v22 = vpop.f32.mrf.mxu2  ;;  %v1045_v27 = vmul.f32 %v2612_v10, %v1013_v18  ;;  %v1204_v43 = vmul.f32 %v2601_v4, %v1044_v16  ;;  %3444 = vst [vmem:[#allocation18_spill] sm:$0xff] %v2731_v29  ;;  %2052 = vrcp.f32 %v714_v12  ;;  %v2743_v4 = vmul.f32 0.5, %v2645_v3 }
 0x12f   : > { %v2699_v46 = vadd.f32 %v2513_v25, %v557_v22  ;;  %v2723_v22 = vpop.eup %2040  ;;  %v1114_v32 = vmul.f32 %v1082_v56, %v666_v15  ;;  %v1067_v44 = vsub.f32 0.0, %v651_v21  ;;  %2054 = vpow2.f32 %v1136_v11 }
 0x130   : > { %v520_v53 = vpop.f32.mrf.mxu0  ;;  %v2728_v28 = vpop.eup %2042  ;;  %v1205_v24 = vmul.f32 %v2628_v36, %v1045_v27  ;;  %v1236_v31 = vsub.f32 1.0, %v1204_v43  ;;  %3446 = vst [vmem:[#allocation20_spill] sm:$0xff] %v2743_v4  ;;  %v2746_v42 = vmul.f32 0.5, %v2673_v26  ;;  %v730_v15 = vadd.f32 1.0, %v698_v20 }
 0x131   : > { %v2708_v17 = vmul.f32 0.70710677, %v2699_v46  ;;  %v2719_v41 = vadd.f32 %v2513_v25, %v520_v53  ;;  %v2740_v10 = vpop.eup %2044  ;;  %v683_v36 = vmul.f32 0.3275911, %v651_v21  ;;  %v1168_v16 = vmul.f32 1.442695, %v1114_v32 }
 0x132   : > { %3447 = vst [vmem:[#allocation21_spill] sm:$0xff] %v2746_v42  ;;  %v2748_v0 = vpop.eup %2046  ;;  %v1237_v12 = vsub.f32 1.0, %v1205_v24  ;;  %v1300_v56 = vsub.f32 0.0, %v1236_v31  ;;  %v1099_v27 = vmul.f32 %v1067_v44, %v651_v21  ;;  %v774_v3 = vmul.f32 1.0614054, %v2639_v39 }
 0x133   : > { %3442 = vst [vmem:[#allocation16_spill] sm:$0xff] %v2708_v17  ;;  %v667_v58 = vand.u32 2147483647, %v2708_v17  ;;  %v2735_v53 = vmul.f32 0.70710677, %v2719_v41  ;;  %v2750_v18 = vpop.eup %2048  ;;  %2056 = vrcp.f32 %v730_v15  ;;  %v2764_v21 = vmul.f32 0.5, %v2690_v52 }
 0x134   : > { %v2753_v4 = vpop.eup %2050  ;;  %v1301_v11 = vsub.f32 0.0, %v1237_v12  ;;  %v1332_v26 = vsel %vm1268_vm2, %v1236_v31, %v1300_v56  ;;  %v775_v44 = vmul.f32 1.0614054, %v2670_v19  ;;  %v715_v17 = vadd.f32 1.0, %v683_v36 }
 0x135   : > { %3445 = vst [vmem:[#allocation19_spill] sm:$0xff] %v2735_v53  ;;  %v1083_v48 = vsub.f32 0.0, %v667_v58  ;;  %v699_v43 = vmul.f32 0.3275911, %v667_v58  ;;  %v652_v20 = vand.u32 2147483647, %v2735_v53  ;;  %v2761_v24 = vpop.eup %2052  ;;  %2058 = vpow2.f32 %v1168_v16 }
 0x136   : > { %v560_v33 = vpop.f32.mrf.mxu2  ;;  %3449 = vst [vmem:[#allocation23_spill] sm:$0xff] %v2764_v21  ;;  %v1364_v32 = vadd.f32 1.0, %v1332_v26  ;;  %v1333_v40 = vsel %vm1269_vm3, %v1237_v12, %v1301_v11  ;;  %v2772_v56 = vpop.eup %2054  ;;  %v1138_v53 = vmul.f32 1.442695, %v1099_v27  ;;  %v806_v15 = vadd.f32 -1.4531521, %v774_v3 }
 0x137   : > { %v2738_v57 = vadd.f32 %v2513_v25, %v560_v33  ;;  %v1115_v62 = vmul.f32 %v1083_v48, %v667_v58  ;;  %v1365_v30 = vadd.f32 1.0, %v1333_v40  ;;  %v731_v52 = vadd.f32 1.0, %v699_v43 }
 0x138   : > { %v522_v33 = vpop.f32.mrf.mxu0  ;;  %v684_v21 = vmul.f32 0.3275911, %v652_v20  ;;  %v1068_v26 = vsub.f32 0.0, %v652_v20  ;;  %v1396_v58 = vmul.f32 %v1364_v32, %v2581_v38  ;;  %v807_v36 = vadd.f32 -1.4531521, %v775_v44 }
 0x139   : > { %v2759_v42 = vmul.f32 0.70710677, %v2738_v57  ;;  %v2770_v31 = vadd.f32 %v2513_v25, %v522_v33  ;;  %v1397_v54 = vmul.f32 %v1365_v30, %v2604_v6  ;;  %v838_v48 = vmul.f32 %v2639_v39, %v806_v15  ;;  %v2784_v43 = vpop.eup %2056 }
 0x13a   : > { %2060 = vrcp.f32 %v715_v17  ;;  %v1170_v12 = vmul.f32 1.442695, %v1115_v62  ;;  %v839_v3 = vmul.f32 %v2670_v19, %v807_v36  ;;  %v716_v6 = vadd.f32 1.0, %v684_v21 }
 0x13b   : > { %3448 = vst [vmem:[#allocation22_spill] sm:$0xff] %v2759_v42  ;;  %v668_v2 = vand.u32 2147483647, %v2759_v42  ;;  %v2779_v16 = vmul.f32 0.70710677, %v2770_v31  ;;  %2062 = vpow2.f32 %v1138_v53  ;;  %v1420_v33 = vpack.c.bf16 %v1397_v54, %v1396_v58  ;;  %v2787_v32 = vpop.eup %2058 }
 0x13c   : > { %v870_v38 = vadd.f32 1.4214138, %v838_v48  ;;  %2064 = vrcp.f32 %v731_v52  ;;  %v1100_v30 = vmul.f32 %v1068_v26, %v652_v20  ;;  %v871_v62 = vadd.f32 1.4214138, %v839_v3 }
 0x13d   : > { %3450 = vst [vmem:[#allocation24_spill] sm:$0xff] %v2779_v16  ;;  %v1084_v11 = vsub.f32 0.0, %v668_v2  ;;  %1544 = vmatmul.bf16.vlgmr.msra.gmra.mxu3 %v1420_v33  ;;  %v791_v44 = vmul.f32 1.0614054, %v2680_v35  ;;  %2066 = vpow2.f32 %v1170_v12  ;;  %v700_v53 = vmul.f32 0.3275911, %v668_v2 }
 0x13e   : > { %v562_v29 = vpop.f32.mrf.mxu2  ;;  %v902_v17 = vmul.f32 %v2639_v39, %v870_v38  ;;  %v653_v40 = vand.u32 2147483647, %v2779_v16  ;;  %v903_v20 = vmul.f32 %v2670_v19, %v871_v62  ;;  %v2800_v36 = vmul.f32 0.5, %v2699_v46 }
 0x13f   : > { %v2782_v27 = vadd.f32 %v2513_v25, %v562_v29  ;;  %v790_v29 = vmul.f32 1.0614054, %v2658_v49  ;;  %v823_v26 = vadd.f32 -1.4531521, %v791_v44  ;;  %2068 = vrcp.f32 %v716_v6 }
 0x140   : > { %v934_v21 = vadd.f32 -0.28449672, %v902_v17  ;;  %v525_v58 = vpop.f32.mrf.mxu0  ;;  %v2797_v54 = vpop.eup %2060  ;;  %3452 = vst [vmem:[#allocation26_spill] sm:$0xff] %v2800_v36  ;;  %v1140_v48 = vmul.f32 1.442695, %v1100_v30  ;;  %v1116_v12 = vmul.f32 %v1084_v11, %v668_v2  ;;  %v1069_v16 = vsub.f32 0.0, %v653_v40 }
 0x141   : > { %v2794_v15 = vmul.f32 0.70710677, %v2782_v27  ;;  %v822_v52 = vadd.f32 -1.4531521, %v790_v29  ;;  %v2802_v33 = vpop.eup %2062  ;;  %v935_v3 = vadd.f32 -0.28449672, %v903_v20  ;;  %v855_v62 = vmul.f32 %v2680_v35, %v823_v26 }
 0x142   : > { %v966_v38 = vmul.f32 %v2639_v39, %v934_v21  ;;  %v2807_v17 = vpop.eup %2064  ;;  %v732_v29 = vadd.f32 1.0, %v700_v53  ;;  %v685_v44 = vmul.f32 0.3275911, %v653_v40  ;;  %v2815_v20 = vmul.f32 0.5, %v2719_v41 }
 0x143   : > { %3451 = vst [vmem:[#allocation25_spill] sm:$0xff] %v2794_v15  ;;  %v854_v42 = vmul.f32 %v2658_v49, %v822_v52  ;;  %v669_v46 = vand.u32 2147483647, %v2794_v15  ;;  %v967_v6 = vmul.f32 %v2670_v19, %v935_v3  ;;  %v887_v11 = vadd.f32 1.4214138, %v855_v62  ;;  %v2811_v36 = vpop.eup %2066 }
 0x144   : > { %v998_v30 = vadd.f32 0.2548296, %v966_v38  ;;  %3453 = vst [vmem:[#allocation27_spill] sm:$0xff] %v2815_v20  ;;  %2070 = vpow2.f32 %v1140_v48  ;;  %v1172_v21 = vmul.f32 1.442695, %v1116_v12  ;;  %v526_v53 = vadd.f32 %v2513_v25, %v525_v58 }
 0x145   : > { %v886_v2 = vadd.f32 1.4214138, %v854_v42  ;;  %v999_v52 = vadd.f32 0.2548296, %v967_v6  ;;  %v919_v3 = vmul.f32 %v2680_v35, %v887_v11  ;;  %v2821_v38 = vpop.eup %2068  ;;  %2072 = vrcp.f32 %v732_v29 }
 0x146   : > { %v1030_v26 = vmul.f32 %v2639_v39, %v998_v30  ;;  %v565_v42 = vpop.f32.mrf.mxu2  ;;  %3454 = vst [vmem:[#allocation28_spill] sm:$0xff] %v2821_v38  ;;  %v717_v62 = vadd.f32 1.0, %v685_v44  ;;  %v1101_v41 = vmul.f32 %v1069_v16, %v653_v40  ;;  %v701_v20 = vmul.f32 0.3275911, %v669_v46 }
 0x147   : > { %v918_v15 = vmul.f32 %v2658_v49, %v886_v2  ;;  %v1031_v48 = vmul.f32 %v2670_v19, %v999_v52  ;;  %v951_v6 = vadd.f32 -0.28449672, %v919_v3  ;;  %2074 = vpow2.f32 %v1172_v21 }
 0x148   : > { %v1190_v58 = vmul.f32 %v2653_v63, %v1030_v26  ;;  %v1085_v39 = vsub.f32 0.0, %v669_v46  ;;  %v2826_v30 = vmul.f32 0.70710677, %v526_v53  ;;  %v2829_v2 = vadd.f32 %v2513_v25, %v565_v42  ;;  %v527_v40 = vpop.f32.mrf.mxu0 }
 0x149   : > { %v950_v12 = vadd.f32 -0.28449672, %v918_v15  ;;  %v1191_v11 = vmul.f32 %v2678_v50, %v1031_v48  ;;  %v983_v16 = vmul.f32 %v2680_v35, %v951_v6  ;;  %v2837_v63 = vmul.f32 0.5, %v2738_v57 }
 0x14a   : > { %v1222_v38 = vsub.f32 1.0, %v1190_v58  ;;  %v2834_v19 = vpop.eup %2070  ;;  %2076 = vrcp.f32 %v717_v62  ;;  %v1142_v15 = vmul.f32 1.442695, %v1101_v41  ;;  %v733_v44 = vadd.f32 1.0, %v701_v20 }
 0x14b   : > { %v982_v29 = vmul.f32 %v2658_v49, %v950_v12  ;;  %v1223_v21 = vsub.f32 1.0, %v1191_v11  ;;  %v1015_v3 = vadd.f32 0.2548296, %v983_v16  ;;  %v2839_v42 = vpop.eup %2072  ;;  %vm1271_vm7 = vcmp.ge.f32.partialorder %v2589_v45, 0.0 }
 0x14c   : > { %v1286_v52 = vsub.f32 0.0, %v1222_v38  ;;  %v1117_v50 = vmul.f32 %v1085_v39, %v669_v46  ;;  %v654_v48 = vand.u32 2147483647, %v2826_v30  ;;  %v2845_v58 = vmul.f32 0.70710677, %v2829_v2 }
 0x14d   : > { %v1014_v26 = vadd.f32 0.2548296, %v982_v29  ;;  %v2848_v57 = vadd.f32 %v2513_v25, %v527_v40  ;;  %v1287_v20 = vsub.f32 0.0, %v1223_v21  ;;  %v1047_v12 = vmul.f32 %v2680_v35, %v1015_v3  ;;  %v2854_v6 = vpop.eup %2074 }
 0x14e   : > { %v1318_v62 = vsel %vm1254_vm4, %v1222_v38, %v1286_v52  ;;  %v2857_v46 = vmul.f32 0.5, %v2770_v31  ;;  %2078 = vpow2.f32 %v1142_v15  ;;  %v2860_v11 = vmul.f32 0.5, %v2782_v27  ;;  %v567_v23 = vpop.f32.mrf.mxu2 }
 0x14f   : > { %v1046_v41 = vmul.f32 %v2658_v49, %v1014_v26  ;;  %v1350_v39 = vadd.f32 1.0, %v1318_v62  ;;  %v1319_v29 = vsel %vm1255_vm5, %v1223_v21, %v1287_v20  ;;  %v1207_v38 = vmul.f32 %v2695_v37, %v1047_v12 }
 0x150   : > { %v1070_v49 = vsub.f32 0.0, %v654_v48  ;;  %v2866_v16 = vpop.eup %2076  ;;  %v1351_v35 = vadd.f32 1.0, %v1319_v29  ;;  %2080 = vrcp.f32 %v733_v44  ;;  %v1174_v40 = vmul.f32 1.442695, %v1117_v50 }
 0x151   : > { %v1206_v5 = vmul.f32 %v2662_v47, %v1046_v41  ;;  %v2868_v31 = vmul.f32 0.5, %v526_v53  ;;  %v1239_v52 = vsub.f32 1.0, %v1207_v38  ;;  %v670_v27 = vand.u32 2147483647, %v2845_v58 }
 0x152   : > { %v2872_v26 = vmul.f32 0.70710677, %v2848_v57  ;;  %v1382_v47 = vmul.f32 %v1350_v39, %v2607_v7  ;;  %v1383_v37 = vmul.f32 %v1351_v35, %v2648_v59  ;;  %v776_v21 = vmul.f32 1.0614054, %v2702_v34 }
 0x153   : > { %v1238_v15 = vsub.f32 1.0, %v1206_v5  ;;  %v777_v3 = vmul.f32 1.0614054, %v2740_v10  ;;  %v1303_v50 = vsub.f32 0.0, %v1239_v52  ;;  %v686_v53 = vmul.f32 0.3275911, %v654_v48 }
 0x154   : > { %v1102_v20 = vmul.f32 %v1070_v49, %v654_v48  ;;  %v2878_v62 = vpop.eup %2078  ;;  %v1413_v41 = vpack.c.bf16 %v1383_v37, %v1382_v47  ;;  %v808_v12 = vadd.f32 -1.4531521, %v776_v21  ;;  %v2881_v5 = vadd.f32 %v2513_v25, %v567_v23 }
 0x155   : > { %v1302_v44 = vsub.f32 0.0, %v1238_v15  ;;  %v809_v29 = vadd.f32 -1.4531521, %v777_v3  ;;  %v1335_v59 = vsel %vm1271_vm7, %v1239_v52, %v1303_v50  ;;  %v1086_v39 = vsub.f32 0.0, %v670_v27 }
 0x156   : > { %v655_v38 = vand.u32 2147483647, %v2872_v26  ;;  %v2888_v35 = vpop.eup %2080  ;;  %1509 = vmatmul.bf16.gmra.mxu1 %v1413_v41  ;;  %v1367_v49 = vadd.f32 1.0, %v1335_v59  ;;  %v840_v47 = vmul.f32 %v2702_v34, %v808_v12  ;;  %2082 = vpow2.f32 %v1174_v40 }
 0x157   : > { %v1334_v7 = vsel %vm1270_vm6, %v1238_v15, %v1302_v44  ;;  %v841_v37 = vmul.f32 %v2740_v10, %v809_v29  ;;  %v718_v23 = vadd.f32 1.0, %v686_v53  ;;  %v1144_v21 = vmul.f32 1.442695, %v1102_v20  ;;  %v530_v20 = vpop.f32.mrf.mxu0 }
 0x158   : > { %v1366_v48 = vadd.f32 1.0, %v1334_v7  ;;  %v2893_v8 = vmul.f32 0.70710677, %v2881_v5  ;;  %v1399_v15 = vmul.f32 %v1367_v49, %v2651_v60  ;;  %v872_v52 = vadd.f32 1.4214138, %v840_v47 }
 0x159   : > { %v873_v3 = vadd.f32 1.4214138, %v841_v37  ;;  %v702_v44 = vmul.f32 0.3275911, %v670_v27  ;;  %v1118_v50 = vmul.f32 %v1086_v39, %v670_v27  ;;  %v687_v41 = vmul.f32 0.3275911, %v655_v38 }
 0x15a   : > { %v1398_v45 = vmul.f32 %v1366_v48, %v2610_v9  ;;  %v792_v7 = vmul.f32 1.0614054, %v2723_v22  ;;  %v904_v29 = vmul.f32 %v2702_v34, %v872_v52  ;;  %v793_v53 = vmul.f32 1.0614054, %v2750_v18 }
 0x15b   : > { %v905_v40 = vmul.f32 %v2740_v10, %v873_v3  ;;  %v2902_v59 = vmul.f32 0.5, %v2829_v2  ;;  %v1071_v9 = vsub.f32 0.0, %v655_v38  ;;  %v671_v60 = vand.u32 2147483647, %v2893_v8 }
 0x15c   : > { %v1421_v12 = vpack.c.bf16 %v1399_v15, %v1398_v45  ;;  %v824_v48 = vadd.f32 -1.4531521, %v792_v7  ;;  %2084 = vrcp.f32 %v718_v23  ;;  %v936_v27 = vadd.f32 -0.28449672, %v904_v29  ;;  %v2905_v47 = vpop.eup %2082 }
 0x15d   : > { %3455 = vst [vmem:[#allocation29_spill] sm:$0xff] %v2902_v59  ;;  %v937_v39 = vadd.f32 -0.28449672, %v905_v40  ;;  %v825_v49 = vadd.f32 -1.4531521, %v793_v53  ;;  %v734_v37 = vadd.f32 1.0, %v702_v44  ;;  %v531_v2 = vadd.f32 %v2513_v25, %v530_v20  ;;  %v570_v59 = vpop.f32.mrf.mxu2 }
 0x15e   : > { %1549 = vmatmul.bf16.gmra.mxu3 %v1421_v12  ;;  %v2908_v45 = vmul.f32 0.5, %v2848_v57  ;;  %v856_v15 = vmul.f32 %v2723_v22, %v824_v48  ;;  %v1176_v52 = vmul.f32 1.442695, %v1118_v50  ;;  %v968_v3 = vmul.f32 %v2702_v34, %v936_v27 }
 0x15f   : > { %v969_v7 = vmul.f32 %v2740_v10, %v937_v39  ;;  %v857_v23 = vmul.f32 %v2750_v18, %v825_v49  ;;  %v719_v12 = vadd.f32 1.0, %v687_v41  ;;  %v1103_v29 = vmul.f32 %v1071_v9, %v655_v38 }
 0x160   : > { %3456 = vst [vmem:[#allocation30_spill] sm:$0xff] %v2908_v45  ;;  %v1087_v40 = vsub.f32 0.0, %v671_v60  ;;  %v888_v53 = vadd.f32 1.4214138, %v856_v15  ;;  %2086 = vpow2.f32 %v1144_v21  ;;  %v1000_v44 = vadd.f32 0.2548296, %v968_v3 }
 0x161   : > { %v1001_v57 = vadd.f32 0.2548296, %v969_v7  ;;  %v889_v45 = vadd.f32 1.4214138, %v857_v23  ;;  %vm1256_vm8 = vcmp.ge.f32.partialorder %v2615_v13, 0.0  ;;  %vm1257_vm9 = vcmp.ge.f32.partialorder %v2637_v51, 0.0 }
 0x162   : > { %2088 = vrcp.f32 %v734_v37  ;;  %v703_v50 = vmul.f32 0.3275911, %v671_v60  ;;  %v920_v20 = vmul.f32 %v2723_v22, %v888_v53  ;;  %v2918_v48 = vmul.f32 0.70710677, %v531_v2  ;;  %v2920_v27 = vpop.eup %2084 }
 0x163   : > { %v1032_v38 = vmul.f32 %v2702_v34, %v1000_v44  ;;  %v1033_v41 = vmul.f32 %v2740_v10, %v1001_v57  ;;  %v921_v21 = vmul.f32 %v2750_v18, %v889_v45  ;;  %v2926_v9 = vadd.f32 %v2513_v25, %v570_v59  ;;  %v532_v25 = vpop.f32.mrf.mxu0 }
 0x164   : > { %3457 = vst [vmem:[#allocation31_spill] sm:$0xff] %v2918_v48  ;;  %2090 = vpow2.f32 %v1176_v52  ;;  %v1146_v39 = vmul.f32 1.442695, %v1103_v29  ;;  %v1119_v49 = vmul.f32 %v1087_v40, %v671_v60  ;;  %v952_v37 = vadd.f32 -0.28449672, %v920_v20 }
 0x165   : > { %2092 = vrcp.f32 %v719_v12  ;;  %v1192_v15 = vmul.f32 %v2715_v14, %v1032_v38  ;;  %v1193_v3 = vmul.f32 %v2748_v0, %v1033_v41  ;;  %v953_v7 = vadd.f32 -0.28449672, %v921_v21  ;;  %v572_v51 = vpop.f32.mrf.mxu2 }
 0x166   : > { %v2931_v23 = vmul.f32 0.5, %v2881_v5  ;;  %v735_v34 = vadd.f32 1.0, %v703_v50  ;;  %v984_v10 = vmul.f32 %v2723_v22, %v952_v37  ;;  %v656_v45 = vand.u32 2147483647, %v2918_v48  ;;  %v2935_v59 = vpop.eup %2086  ;;  %v2949_v50 = vld [vmem:[%s3390_s2] ss:$0 sm:$0xff] }
 0x167   : > { %v1224_v52 = vsub.f32 1.0, %v1192_v15  ;;  %v1225_v60 = vsub.f32 1.0, %v1193_v3  ;;  %v985_v12 = vmul.f32 %v2750_v18, %v953_v7  ;;  %v2939_v14 = vmul.f32 0.70710677, %v2926_v9 }
 0x168   : > { %v2941_v0 = vpop.eup %2088  ;;  %2094 = vpow2.f32 %v1146_v39  ;;  %v1178_v5 = vmul.f32 1.442695, %v1119_v49  ;;  %v1016_v29 = vadd.f32 0.2548296, %v984_v10  ;;  %v2943_v40 = vmul.f32 0.5, %v531_v2 }
 0x169   : > { %3458 = vst [vmem:[#allocation32_spill] sm:$0xff] %v2939_v14  ;;  %vm1272_vm10 = vcmp.ge.f32.partialorder %v2619_v61, 0.0  ;;  %v1288_v53 = vsub.f32 0.0, %v1224_v52  ;;  %v1289_v44 = vsub.f32 0.0, %v1225_v60  ;;  %v1017_v57 = vadd.f32 0.2548296, %v985_v12 }
 0x16a   : > { %3459 = vst [vmem:[#allocation33_spill] sm:$0xff] %v2943_v40  ;;  %v2952_v20 = vadd.f32 %v2949_v50, %v532_v25  ;;  %v2954_v38 = vpop.eup %2090  ;;  %vm1273_vm11 = vcmp.ge.f32.partialorder %v2642_v55, 0.0  ;;  %2096 = vrcp.f32 %v735_v34  ;;  %v1048_v2 = vmul.f32 %v2723_v22, %v1016_v29  ;;  %v3460_v12 = vld [vmem:[#allocation17_spill] sm:$0xff] }
 0x16b   : > { %v688_v41 = vmul.f32 0.3275911, %v656_v45  ;;  %v1072_v21 = vsub.f32 0.0, %v656_v45  ;;  %v2958_v39 = vpop.eup %2092  ;;  %v1320_v49 = vsel %vm1256_vm8, %v1224_v52, %v1288_v53  ;;  %v1321_v37 = vsel %vm1257_vm9, %v1225_v60, %v1289_v44 }
 0x16c   : > { %v1049_v15 = vmul.f32 %v2750_v18, %v1017_v57  ;;  %v672_v3 = vand.u32 2147483647, %v2939_v14  ;;  %v1352_v7 = vadd.f32 1.0, %v1320_v49  ;;  %v1353_v10 = vadd.f32 1.0, %v1321_v37 }
 0x16d   : > { %2098 = vpow2.f32 %v1178_v5  ;;  %v1208_v34 = vmul.f32 %v2728_v28, %v1048_v2  ;;  %v2969_v25 = vmul.f32 0.70710677, %v2952_v20  ;;  %v778_v13 = vmul.f32 1.0614054, %v2761_v24 }
 0x16e   : > { %v1209_v22 = vmul.f32 %v2753_v4, %v1049_v15  ;;  %v779_v52 = vmul.f32 1.0614054, %v2797_v54  ;;  %v2973_v60 = vpop.eup %2094  ;;  %v1384_v18 = vmul.f32 %v1352_v7, %v2656_v1  ;;  %v1385_v29 = vmul.f32 %v1353_v10, %v3460_v12 }
 0x16f   : > { %v1240_v53 = vsub.f32 1.0, %v1208_v34  ;;  %v1104_v5 = vmul.f32 %v1072_v21, %v656_v45  ;;  %v720_v28 = vadd.f32 1.0, %v688_v41  ;;  %v1088_v57 = vsub.f32 0.0, %v672_v3 }
 0x170   : > { %v1241_v44 = vsub.f32 1.0, %v1209_v22  ;;  %v810_v4 = vadd.f32 -1.4531521, %v778_v13  ;;  %v2977_v2 = vpop.eup %2096  ;;  %v1414_v49 = vpack.c.bf16 %v1385_v29, %v1384_v18  ;;  %v811_v15 = vadd.f32 -1.4531521, %v779_v52 }
 0x171   : > { %v1304_v37 = vsub.f32 0.0, %v1240_v53  ;;  %v2980_v40 = vadd.f32 %v2949_v50, %v572_v51  ;;  %v704_v48 = vmul.f32 0.3275911, %v672_v3  ;;  %v657_v1 = vand.u32 2147483647, %v2969_v25 }
 0x172   : > { %v1305_v14 = vsub.f32 0.0, %v1241_v44  ;;  %v842_v7 = vmul.f32 %v2761_v24, %v810_v4  ;;  %1514 = vmatmul.bf16.gmra.mxu1 %v1414_v49  ;;  %v1148_v41 = vmul.f32 1.442695, %v1104_v5  ;;  %v843_v21 = vmul.f32 %v2797_v54, %v811_v15  ;;  %v3463_v4 = vld [vmem:[#allocation13_spill] sm:$0xff] }
 0x173   : > { %3461 = vst [vmem:[#allocation17_spill] sm:$0xff] %v2980_v40  ;;  %v2984_v10 = vpop.eup %2098  ;;  %v1336_v45 = vsel %vm1272_vm10, %v1240_v53, %v1304_v37  ;;  %v2990_v34 = vmul.f32 0.70710677, %v2980_v40  ;;  %v1120_v52 = vmul.f32 %v1088_v57, %v672_v3  ;;  %v1073_v51 = vsub.f32 0.0, %v657_v1  ;;  %v3464_v37 = vld [vmem:[#allocation18_spill] sm:$0xff]  ;;  %v535_v3 = vpop.f32.mrf.mxu0 }
 0x174   : > { %v1337_v22 = vsel %vm1273_vm11, %v1241_v44, %v1305_v14  ;;  %v1368_v13 = vadd.f32 1.0, %v1336_v45  ;;  %2100 = vrcp.f32 %v720_v28  ;;  %v874_v12 = vadd.f32 1.4214138, %v842_v7  ;;  %v575_v45 = vpop.f32.mrf.mxu2 }
 0x175   : > { %3462 = vst [vmem:[#allocation34_spill] sm:$0xff] %v2990_v34  ;;  %v1369_v18 = vadd.f32 1.0, %v1337_v22  ;;  %v875_v29 = vadd.f32 1.4214138, %v843_v21  ;;  %v736_v61 = vadd.f32 1.0, %v704_v48  ;;  %v1105_v57 = vmul.f32 %v1073_v51, %v657_v1 }
 0x176   : > { %v1400_v49 = vmul.f32 %v1368_v13, %v3463_v4  ;;  %v689_v53 = vmul.f32 0.3275911, %v657_v1  ;;  %v673_v5 = vand.u32 2147483647, %v2990_v34  ;;  %v906_v40 = vmul.f32 %v2761_v24, %v874_v12 }
 0x177   : > { %v1401_v15 = vmul.f32 %v1369_v18, %v3464_v37  ;;  %v907_v55 = vmul.f32 %v2797_v54, %v875_v29  ;;  %v794_v14 = vmul.f32 1.0614054, %v2784_v43  ;;  %v1180_v44 = vmul.f32 1.442695, %v1120_v52 }
 0x178   : > { %v1089_v28 = vsub.f32 0.0, %v673_v5  ;;  %v795_v7 = vmul.f32 1.0614054, %v2807_v17  ;;  %v938_v48 = vadd.f32 -0.28449672, %v906_v40  ;;  %2102 = vpow2.f32 %v1148_v41 }
 0x179   : > { %v1422_v21 = vpack.c.bf16 %v1401_v15, %v1400_v49  ;;  %v939_v22 = vadd.f32 -0.28449672, %v907_v55  ;;  %v826_v13 = vadd.f32 -1.4531521, %v794_v14  ;;  %v721_v4 = vadd.f32 1.0, %v689_v53  ;;  %v3467_v14 = vld [vmem:[#allocation12_spill] sm:$0xff] }
 0x17a   : > { %v827_v18 = vadd.f32 -1.4531521, %v795_v7  ;;  %v3002_v12 = vadd.f32 %v2949_v50, %v535_v3  ;;  %v3004_v29 = vpop.eup %2100  ;;  %v970_v52 = vmul.f32 %v2761_v24, %v938_v48  ;;  %v3010_v49 = vadd.f32 %v2949_v50, %v575_v45  ;;  %v3468_v3 = vld [vmem:[#allocation15_spill] sm:$0xff] }
 0x17b   : > { %1554 = vmatmul.bf16.gmra.mxu3 %v1422_v21  ;;  %v971_v1 = vmul.f32 %v2797_v54, %v939_v22  ;;  %v858_v51 = vmul.f32 %v2784_v43, %v826_v13  ;;  %2104 = vrcp.f32 %v736_v61  ;;  %v1150_v40 = vmul.f32 1.442695, %v1105_v57 }
 0x17c   : > { %3465 = vst [vmem:[#allocation13_spill] sm:$0xff] %v3002_v12  ;;  %v1121_v41 = vmul.f32 %v1089_v28, %v673_v5  ;;  %v859_v53 = vmul.f32 %v2807_v17, %v827_v18  ;;  %2106 = vpow2.f32 %v1180_v44  ;;  %v1002_v37 = vadd.f32 0.2548296, %v970_v52  ;;  %v537_v52 = vpop.f32.mrf.mxu0 }
 0x17d   : > { %3466 = vst [vmem:[#allocation18_spill] sm:$0xff] %v3010_v49  ;;  %v1003_v15 = vadd.f32 0.2548296, %v971_v1  ;;  %v890_v55 = vadd.f32 1.4214138, %v858_v51  ;;  %vm1258_vm12 = vcmp.ge.f32.partialorder %v3467_v14, 0.0  ;;  %2108 = vrcp.f32 %v721_v4 }
 0x17e   : > { %vm1259_vm13 = vcmp.ge.f32.partialorder %v3468_v3, 0.0  ;;  %v705_v7 = vmul.f32 0.3275911, %v673_v5  ;;  %v891_v21 = vadd.f32 1.4214138, %v859_v53  ;;  %v1034_v61 = vmul.f32 %v2761_v24, %v1002_v37  ;;  %v3024_v45 = vpop.eup %2102  ;;  %v3475_v14 = vld [vmem:[#allocation20_spill] sm:$0xff] }
 0x17f   : > { %v3016_v48 = vmul.f32 0.70710677, %v3002_v12  ;;  %v1035_v57 = vmul.f32 %v2797_v54, %v1003_v15  ;;  %v922_v28 = vmul.f32 %v2784_v43, %v890_v55  ;;  %v3022_v44 = vmul.f32 0.70710677, %v3010_v49 }
 0x180   : > { %2110 = vpow2.f32 %v1150_v40  ;;  %v1182_v22 = vmul.f32 1.442695, %v1121_v41  ;;  %v923_v13 = vmul.f32 %v2807_v17, %v891_v21  ;;  %v1194_v4 = vmul.f32 %v2772_v56, %v1034_v61 }
 0x181   : > { %3469 = vst [vmem:[#allocation12_spill] sm:$0xff] %v3016_v48  ;;  %v658_v5 = vand.u32 2147483647, %v3016_v48  ;;  %v1195_v18 = vmul.f32 %v2802_v33, %v1035_v57  ;;  %v954_v24 = vadd.f32 -0.28449672, %v922_v28  ;;  %v3031_v1 = vpop.eup %2104  ;;  %v737_v51 = vadd.f32 1.0, %v705_v7 }
 0x182   : > { %3470 = vst [vmem:[#allocation15_spill] sm:$0xff] %v3022_v44  ;;  %v674_v54 = vand.u32 2147483647, %v3022_v44  ;;  %v955_v53 = vadd.f32 -0.28449672, %v923_v13  ;;  %v3033_v40 = vpop.eup %2106  ;;  %v1226_v41 = vsub.f32 1.0, %v1194_v4  ;;  %v3040_v28 = vadd.f32 %v2949_v50, %v537_v52 }
 0x183   : > { %v690_v37 = vmul.f32 0.3275911, %v658_v5  ;;  %v1074_v15 = vsub.f32 0.0, %v658_v5  ;;  %3471 = vst [vmem:[#allocation35_spill] sm:$0xff] %v3033_v40  ;;  %v1227_v55 = vsub.f32 1.0, %v1195_v18  ;;  %v986_v21 = vmul.f32 %v2784_v43, %v954_v24  ;;  %v3036_v56 = vpop.eup %2108  ;;  %v3473_v4 = vld [vmem:[#allocation14_spill] sm:$0xff] }
 0x184   : > { %v706_v49 = vmul.f32 0.3275911, %v674_v54  ;;  %v987_v33 = vmul.f32 %v2807_v17, %v955_v53  ;;  %v1090_v57 = vsub.f32 0.0, %v674_v54  ;;  %3472 = vst [vmem:[#allocation36_spill] sm:$0xff] %v3040_v28  ;;  %v1290_v7 = vsub.f32 0.0, %v1226_v41  ;;  %v3474_v53 = vld [vmem:[#allocation16_spill] sm:$0xff] }
 0x185   : > { %v722_v61 = vadd.f32 1.0, %v690_v37  ;;  %v1291_v13 = vsub.f32 0.0, %v1227_v55  ;;  %v1018_v44 = vadd.f32 0.2548296, %v986_v21  ;;  %v1106_v12 = vmul.f32 %v1074_v15, %v658_v5 }
 0x186   : > { %v3042_v48 = vpop.eup %2110  ;;  %vm1274_vm14 = vcmp.ge.f32.partialorder %v3473_v4, 0.0  ;;  %v3046_v18 = vmul.f32 0.5, %v2926_v9  ;;  %2112 = vrcp.f32 %v737_v51  ;;  %v1019_v24 = vadd.f32 0.2548296, %v987_v33 }
 0x187   : > { %v738_v40 = vadd.f32 1.0, %v706_v49  ;;  %vm1275_vm15 = vcmp.ge.f32.partialorder %v3474_v53, 0.0  ;;  %v1322_v52 = vsel %vm1258_vm12, %v1226_v41, %v1290_v7  ;;  %v1323_v37 = vsel %vm1259_vm13, %v1227_v55, %v1291_v13  ;;  %v3476_v7 = vld [vmem:[#allocation23_spill] sm:$0xff]  ;;  %v3480_v53 = vld [vmem:[#allocation21_spill] sm:$0xff] }
 0x188   : > { %v1050_v5 = vmul.f32 %v2784_v43, %v1018_v44  ;;  %v1122_v15 = vmul.f32 %v1090_v57, %v674_v54  ;;  %v1354_v21 = vadd.f32 1.0, %v1322_v52  ;;  %v1355_v34 = vadd.f32 1.0, %v1323_v37  ;;  %v3477_v43 = vld [vmem:[#allocation28_spill] sm:$0xff]  ;;  %v577_v57 = vpop.f32.mrf.mxu2 }
 0x189   : > { %2114 = vpow2.f32 %v1182_v22  ;;  %v1051_v9 = vmul.f32 %v2807_v17, %v1019_v24  ;;  %v1152_v49 = vmul.f32 1.442695, %v1106_v12  ;;  %v3057_v33 = vmul.f32 0.70710677, %v3040_v28 }
 0x18a   : > { %v1210_v51 = vmul.f32 %v2787_v32, %v1050_v5  ;;  %2116 = vrcp.f32 %v722_v61  ;;  %v1386_v41 = vmul.f32 %v1354_v21, %v3475_v14  ;;  %v1387_v3 = vmul.f32 %v1355_v34, %v3476_v7 }
 0x18b   : > { %v1211_v55 = vmul.f32 %v2811_v36, %v1051_v9  ;;  %v780_v44 = vmul.f32 1.0614054, %v3477_v43  ;;  %2118 = vrcp.f32 %v738_v40  ;;  %v1184_v22 = vmul.f32 1.442695, %v1122_v15 }
 0x18c   : > { %v1242_v54 = vsub.f32 1.0, %v1210_v51  ;;  %v659_v17 = vand.u32 2147483647, %v3057_v33  ;;  %v3064_v32 = vpop.eup %2112  ;;  %v1415_v12 = vpack.c.bf16 %v1387_v3, %v1386_v41  ;;  %v781_v13 = vmul.f32 1.0614054, %v2866_v16 }
 0x18d   : > { %v1243_v61 = vsub.f32 1.0, %v1211_v55  ;;  %v812_v24 = vadd.f32 -1.4531521, %v780_v44  ;;  %v3068_v36 = vadd.f32 %v2949_v50, %v577_v57  ;;  %2120 = vpow2.f32 %v1152_v49 }
 0x18e   : > { %v1306_v52 = vsub.f32 0.0, %v1242_v54  ;;  %v691_v37 = vmul.f32 0.3275911, %v659_v17  ;;  %v1075_v34 = vsub.f32 0.0, %v659_v17  ;;  %1519 = vmatmul.bf16.gmra.mxu1 %v1415_v12  ;;  %v813_v15 = vadd.f32 -1.4531521, %v781_v13 }
 0x18f   : > { %3478 = vst [vmem:[#allocation14_spill] sm:$0xff] %v3068_v36  ;;  %v3070_v5 = vpop.eup %2114  ;;  %v1307_v40 = vsub.f32 0.0, %v1243_v61  ;;  %v844_v21 = vmul.f32 %v3477_v43, %v812_v24  ;;  %v796_v7 = vmul.f32 1.0614054, %v2839_v42  ;;  %2122 = vpow2.f32 %v1184_v22  ;;  %v3481_v24 = vld [vmem:[#allocation26_spill] sm:$0xff] }
 0x190   : > { %v3073_v9 = vpop.eup %2116  ;;  %v1338_v51 = vsel %vm1274_vm14, %v1242_v54, %v1306_v52  ;;  %v723_v14 = vadd.f32 1.0, %v691_v37  ;;  %v1107_v41 = vmul.f32 %v1075_v34, %v659_v17  ;;  %v845_v55 = vmul.f32 %v2866_v16, %v813_v15 }
 0x191   : > { %v1339_v50 = vsel %vm1275_vm15, %v1243_v61, %v1307_v40  ;;  %v1370_v3 = vadd.f32 1.0, %v1338_v51  ;;  %v876_v44 = vadd.f32 1.4214138, %v844_v21  ;;  %v3081_v49 = vpop.eup %2118  ;;  %v3084_v13 = vmul.f32 0.70710677, %v3068_v36 }
 0x192   : > { %v1371_v57 = vadd.f32 1.0, %v1339_v50  ;;  %v1154_v12 = vmul.f32 1.442695, %v1107_v41  ;;  %2124 = vrcp.f32 %v723_v14  ;;  %v877_v4 = vadd.f32 1.4214138, %v845_v55 }
 0x193   : > { %3479 = vst [vmem:[#allocation16_spill] sm:$0xff] %v3084_v13  ;;  %v908_v54 = vmul.f32 %v3477_v43, %v876_v44  ;;  %v797_v17 = vmul.f32 1.0614054, %v2888_v35  ;;  %v1402_v61 = vmul.f32 %v1370_v3, %v3480_v53  ;;  %v675_v37 = vand.u32 2147483647, %v3084_v13  ;;  %v3091_v34 = vpop.eup %2120 }
 0x194   : > { %v1403_v52 = vmul.f32 %v1371_v57, %v3481_v24  ;;  %2126 = vpow2.f32 %v1154_v12  ;;  %v909_v22 = vmul.f32 %v2866_v16, %v877_v4  ;;  %v828_v15 = vadd.f32 -1.4531521, %v796_v7 }
 0x195   : > { %v940_v40 = vadd.f32 -0.28449672, %v908_v54  ;;  %v829_v21 = vadd.f32 -1.4531521, %v797_v17  ;;  %v707_v14 = vmul.f32 0.3275911, %v675_v37  ;;  %v3098_v12 = vpop.eup %2122 }
 0x196   : > { %v1423_v51 = vpack.c.bf16 %v1403_v52, %v1402_v61  ;;  %v1091_v41 = vsub.f32 0.0, %v675_v37  ;;  %v782_v50 = vmul.f32 1.0614054, %v2920_v27  ;;  %v941_v55 = vadd.f32 -0.28449672, %v909_v22  ;;  %3482 = vst [vmem:[#allocation20_spill] sm:$0xff] %v3098_v12 }
 0x197   : > { %v972_v3 = vmul.f32 %v3477_v43, %v940_v40  ;;  %v860_v44 = vmul.f32 %v2839_v42, %v828_v15  ;;  %v861_v57 = vmul.f32 %v2888_v35, %v829_v21  ;;  %v739_v53 = vadd.f32 1.0, %v707_v14  ;;  %v3483_v15 = vld [vmem:[#allocation19_spill] sm:$0xff] }
 0x198   : > { %1559 = vmatmul.bf16.gmra.mxu3 %v1423_v51  ;;  %v1123_v4 = vmul.f32 %v1091_v41, %v675_v37  ;;  %v783_v7 = vmul.f32 1.0614054, %v2958_v39  ;;  %v814_v54 = vadd.f32 -1.4531521, %v782_v50  ;;  %v3101_v17 = vpop.eup %2124  ;;  %v973_v61 = vmul.f32 %v2866_v16, %v941_v55 }
 0x199   : > { %v1004_v24 = vadd.f32 0.2548296, %v972_v3  ;;  %v892_v52 = vadd.f32 1.4214138, %v860_v44  ;;  %v893_v22 = vadd.f32 1.4214138, %v861_v57  ;;  %2128 = vrcp.f32 %v739_v53 }
 0x19a   : > { %v3104_v40 = vpop.eup %2126  ;;  %vm1260_vm0 = vcmp.ge.f32.partialorder %v3483_v15, 0.0  ;;  %v3108_v21 = vmul.f32 0.5, %v2952_v20  ;;  %v815_v51 = vadd.f32 -1.4531521, %v783_v7  ;;  %v846_v37 = vmul.f32 %v2920_v27, %v814_v54  ;;  %v3484_v3 = vld [vmem:[#allocation24_spill] sm:$0xff] }
 0x19b   : > { %v1005_v14 = vadd.f32 0.2548296, %v973_v61  ;;  %v1036_v41 = vmul.f32 %v3477_v43, %v1004_v24  ;;  %v924_v50 = vmul.f32 %v2839_v42, %v892_v52  ;;  %v925_v55 = vmul.f32 %v2888_v35, %v893_v22 }
 0x19c   : > { %vm1261_vm1 = vcmp.ge.f32.partialorder %v3484_v3, 0.0  ;;  %v3115_v44 = vmul.f32 1.442695, %v1123_v4  ;;  %v847_v57 = vmul.f32 %v2958_v39, %v815_v51  ;;  %v878_v36 = vadd.f32 1.4214138, %v846_v37 }
 0x19d   : > { %v798_v20 = vmul.f32 1.0614054, %v2941_v0  ;;  %v1037_v53 = vmul.f32 %v2866_v16, %v1005_v14  ;;  %v1196_v7 = vmul.f32 %v2834_v19, %v1036_v41  ;;  %v956_v54 = vadd.f32 -0.28449672, %v924_v50 }
 0x19e   : > { %v957_v61 = vadd.f32 -0.28449672, %v925_v55  ;;  %v879_v43 = vadd.f32 1.4214138, %v847_v57  ;;  %v910_v24 = vmul.f32 %v2920_v27, %v878_v36  ;;  %v799_v52 = vmul.f32 1.0614054, %v2977_v2 }
 0x19f   : > { %v830_v22 = vadd.f32 -1.4531521, %v798_v20  ;;  %v1197_v4 = vmul.f32 %v2878_v62, %v1037_v53  ;;  %v1228_v13 = vsub.f32 1.0, %v1196_v7  ;;  %v988_v51 = vmul.f32 %v2839_v42, %v956_v54  ;;  %v3126_v28 = vpop.eup %2128  ;;  %v3485_v20 = vld [vmem:[#allocation22_spill] sm:$0xff]  ;;  %v3486_v62 = vld [vmem:[#allocation25_spill] sm:$0xff] }
 0x1a0   : > { %v989_v37 = vmul.f32 %v2888_v35, %v957_v61  ;;  %v911_v16 = vmul.f32 %v2958_v39, %v879_v43  ;;  %v942_v19 = vadd.f32 -0.28449672, %v910_v24  ;;  %v831_v14 = vadd.f32 -1.4531521, %v799_v52 }
 0x1a1   : > { %v862_v41 = vmul.f32 %v2941_v0, %v830_v22  ;;  %v1229_v50 = vsub.f32 1.0, %v1197_v4  ;;  %v1292_v36 = vsub.f32 0.0, %v1228_v13  ;;  %v1020_v55 = vadd.f32 0.2548296, %v988_v51 }
 0x1a2   : > { %v1021_v57 = vadd.f32 0.2548296, %v989_v37  ;;  %vm1276_vm2 = vcmp.ge.f32.partialorder %v3485_v20, 0.0  ;;  %vm1277_vm3 = vcmp.ge.f32.partialorder %v3486_v62, 0.0  ;;  %v943_v53 = vadd.f32 -0.28449672, %v911_v16 }
 0x1a3   : > { %v974_v7 = vmul.f32 %v2920_v27, %v942_v19  ;;  %v863_v54 = vmul.f32 %v2977_v2, %v831_v14  ;;  %v894_v61 = vadd.f32 1.4214138, %v862_v41  ;;  %v1293_v12 = vsub.f32 0.0, %v1229_v50 }
 0x1a4   : > { %v1324_v43 = vsel %vm1260_vm0, %v1228_v13, %v1292_v36  ;;  %v1052_v24 = vmul.f32 %v2839_v42, %v1020_v55  ;;  %v1053_v52 = vmul.f32 %v2888_v35, %v1021_v57  ;;  %v975_v4 = vmul.f32 %v2958_v39, %v943_v53  ;;  %v3487_v42 = vld [vmem:[#allocation27_spill] sm:$0xff] }
 0x1a5   : > { %v1356_v22 = vadd.f32 1.0, %v1324_v43  ;;  %v1006_v51 = vadd.f32 0.2548296, %v974_v7  ;;  %v895_v37 = vadd.f32 1.4214138, %v863_v54  ;;  %vm1262_vm4 = vcmp.ge.f32.partialorder %v2826_v30, 0.0 }
 0x1a6   : > { %v1325_v16 = vsel %vm1261_vm1, %v1229_v50, %v1293_v12  ;;  %v1212_v19 = vmul.f32 %v2854_v6, %v1052_v24  ;;  %v1213_v14 = vmul.f32 %v2905_v47, %v1053_v52  ;;  %v926_v13 = vmul.f32 %v2941_v0, %v894_v61 }
 0x1a7   : > { %v1357_v15 = vadd.f32 1.0, %v1325_v16  ;;  %v1388_v41 = vmul.f32 %v1356_v22, %v3487_v42  ;;  %v1007_v35 = vadd.f32 0.2548296, %v975_v4  ;;  %v1038_v36 = vmul.f32 %v2920_v27, %v1006_v51 }
 0x1a8   : > { %vm1263_vm5 = vcmp.ge.f32.partialorder %v2872_v26, 0.0  ;;  %v1244_v55 = vsub.f32 1.0, %v1212_v19  ;;  %v1245_v57 = vsub.f32 1.0, %v1213_v14  ;;  %v927_v53 = vmul.f32 %v2977_v2, %v895_v37 }
 0x1a9   : > { %v958_v3 = vadd.f32 -0.28449672, %v926_v13  ;;  %v1389_v12 = vmul.f32 %v1357_v15, %v2857_v46  ;;  %v1039_v6 = vmul.f32 %v2958_v39, %v1007_v35  ;;  %v1198_v47 = vmul.f32 %v2935_v59, %v1038_v36 }
 0x1aa   : > { %v784_v50 = vmul.f32 1.0614054, %v3004_v29  ;;  %v1308_v7 = vsub.f32 0.0, %v1244_v55  ;;  %v1309_v54 = vsub.f32 0.0, %v1245_v57  ;;  %v959_v61 = vadd.f32 -0.28449672, %v927_v53 }
 0x1ab   : > { %v990_v27 = vmul.f32 %v2941_v0, %v958_v3  ;;  %v1416_v43 = vpack.c.bf16 %v1389_v12, %v1388_v41  ;;  %v1199_v24 = vmul.f32 %v2973_v60, %v1039_v6  ;;  %v1230_v52 = vsub.f32 1.0, %v1198_v47 }
 0x1ac   : > { %v785_v22 = vmul.f32 1.0614054, %v3036_v56  ;;  %v1340_v46 = vsel %vm1276_vm2, %v1244_v55, %v1308_v7  ;;  %v1341_v39 = vsel %vm1277_vm3, %v1245_v57, %v1309_v54  ;;  %v991_v59 = vmul.f32 %v2977_v2, %v959_v61 }
 0x1ad   : > { %v1022_v4 = vadd.f32 0.2548296, %v990_v27  ;;  %vm1278_vm6 = vcmp.ge.f32.partialorder %v2845_v58, 0.0  ;;  %1524 = vmatmul.bf16.gmra.mxu1 %v1416_v43  ;;  %v1372_v51 = vadd.f32 1.0, %v1340_v46  ;;  %v1373_v37 = vadd.f32 1.0, %v1341_v39 }
 0x1ae   : > { %v1231_v16 = vsub.f32 1.0, %v1199_v24  ;;  %v1294_v19 = vsub.f32 0.0, %v1230_v52  ;;  %v1023_v60 = vadd.f32 0.2548296, %v991_v59  ;;  %v816_v13 = vadd.f32 -1.4531521, %v784_v50 }
 0x1af   : > { %v1054_v14 = vmul.f32 %v2941_v0, %v1022_v4  ;;  %v817_v15 = vadd.f32 -1.4531521, %v785_v22  ;;  %vm1279_vm7 = vcmp.ge.f32.partialorder %v2893_v8, 0.0  ;;  %v1404_v20 = vmul.f32 %v1372_v51, %v2837_v63  ;;  %v3488_v50 = vld [vmem:[#allocation30_spill] sm:$0xff] }
 0x1b0   : > { %v1405_v62 = vmul.f32 %v1373_v37, %v2860_v11  ;;  %v1295_v42 = vsub.f32 0.0, %v1231_v16  ;;  %v1326_v41 = vsel %vm1262_vm4, %v1230_v52, %v1294_v19  ;;  %v1055_v36 = vmul.f32 %v2977_v2, %v1023_v60 }
 0x1b1   : > { %v1358_v35 = vadd.f32 1.0, %v1326_v41  ;;  %v1214_v55 = vmul.f32 %v2954_v38, %v1054_v14  ;;  %v848_v57 = vmul.f32 %v3004_v29, %v816_v13  ;;  %v849_v3 = vmul.f32 %v3036_v56, %v817_v15  ;;  %v3489_v13 = vld [vmem:[#allocation29_spill] sm:$0xff] }
 0x1b2   : > { %v1424_v0 = vpack.c.bf16 %v1405_v62, %v1404_v20  ;;  %v1327_v53 = vsel %vm1263_vm5, %v1231_v16, %v1295_v42  ;;  %v800_v63 = vmul.f32 1.0614054, %v3031_v1  ;;  %2130 = vpow2.f32 %v3115_v44 }
 0x1b3   : > { %v1359_v11 = vadd.f32 1.0, %v1327_v53  ;;  %v1215_v30 = vmul.f32 %v2984_v10, %v1055_v36  ;;  %v1246_v12 = vsub.f32 1.0, %v1214_v55  ;;  %v1390_v2 = vmul.f32 %v1358_v35, %v2868_v31 }
 0x1b4   : > { %1564 = vmatmul.bf16.gmra.mxu3 %v1424_v0  ;;  %v880_v38 = vadd.f32 1.4214138, %v848_v57  ;;  %v881_v6 = vadd.f32 1.4214138, %v849_v3  ;;  %v801_v47 = vmul.f32 1.0614054, %v3064_v32 }
 0x1b5   : > { %v1391_v26 = vmul.f32 %v1359_v11, %v3488_v50  ;;  %v1247_v7 = vsub.f32 1.0, %v1215_v30  ;;  %v1310_v54 = vsub.f32 0.0, %v1246_v12  ;;  %v832_v61 = vadd.f32 -1.4531521, %v800_v63  ;;  %v3490_v0 = vld [vmem:[#allocation31_spill] sm:$0xff] }
 0x1b6   : > { %v912_v27 = vmul.f32 %v3004_v29, %v880_v38  ;;  %v913_v44 = vmul.f32 %v3036_v56, %v881_v6  ;;  %v833_v43 = vadd.f32 -1.4531521, %v801_v47  ;;  %v786_v10 = vmul.f32 1.0614054, %v3073_v9 }
 0x1b7   : > { %v1417_v24 = vpack.c.bf16 %v1391_v26, %v1390_v2  ;;  %v1311_v52 = vsub.f32 0.0, %v1247_v7  ;;  %v1342_v31 = vsel %vm1278_vm6, %v1246_v12, %v1310_v54  ;;  %v864_v22 = vmul.f32 %v3031_v1, %v832_v61 }
 0x1b8   : > { %v1374_v46 = vadd.f32 1.0, %v1342_v31  ;;  %v944_v39 = vadd.f32 -0.28449672, %v912_v27  ;;  %v945_v59 = vadd.f32 -0.28449672, %v913_v44  ;;  %v865_v4 = vmul.f32 %v3064_v32, %v833_v43  ;;  %v3187_v51 = vpop.eup %2130  ;;  %v3491_v43 = vld [vmem:[#allocation32_spill] sm:$0xff] }
 0x1b9   : > { %v1343_v37 = vsel %vm1279_vm7, %v1247_v7, %v1311_v52  ;;  %v896_v16 = vadd.f32 1.4214138, %v864_v22  ;;  %v787_v19 = vmul.f32 1.0614054, %v3101_v17  ;;  %v818_v60 = vadd.f32 -1.4531521, %v786_v10 }
 0x1ba   : > { %v1375_v14 = vadd.f32 1.0, %v1343_v37  ;;  %v1406_v58 = vmul.f32 %v1374_v46, %v3489_v13  ;;  %v976_v15 = vmul.f32 %v3004_v29, %v944_v39  ;;  %v977_v20 = vmul.f32 %v3036_v56, %v945_v59  ;;  %v3492_v39 = vld [vmem:[#allocation34_spill] sm:$0xff] }
 0x1bb   : > { %v897_v62 = vadd.f32 1.4214138, %v865_v4  ;;  %v928_v42 = vmul.f32 %v3031_v1, %v896_v16  ;;  %v819_v41 = vadd.f32 -1.4531521, %v787_v19  ;;  %v850_v35 = vmul.f32 %v3073_v9, %v818_v60  ;;  %v1505_v19 = vpop.f32.mrf.mxu1 }
 0x1bc   : > { %v1407_v8 = vmul.f32 %v1375_v14, %v2931_v23  ;;  %v1008_v36 = vadd.f32 0.2548296, %v976_v15  ;;  %v1009_v55 = vadd.f32 0.2548296, %v977_v20  ;;  %v802_v57 = vmul.f32 1.0614054, %v3081_v49 }
 0x1bd   : > { %vm1264_vm8 = vcmp.ge.f32.partialorder %v3490_v0, 0.0  ;;  %vm1265_vm9 = vcmp.ge.f32.partialorder %v2969_v25, 0.0  ;;  %v929_v53 = vmul.f32 %v3064_v32, %v897_v62  ;;  %v960_v3 = vadd.f32 -0.28449672, %v928_v42  ;;  %1529 = vmatmul.bf16.gmra.mxu1 %v1417_v24  ;;  %v3493_v14 = vld [vmem:[#allocation35_spill] sm:$0xff] }
 0x1be   : > { %v851_v63 = vmul.f32 %v3101_v17, %v819_v41  ;;  %v882_v11 = vadd.f32 1.4214138, %v850_v35  ;;  %v1425_v30 = vpack.c.bf16 %v1407_v8, %v1406_v58  ;;  %v1040_v12 = vmul.f32 %v3004_v29, %v1008_v36 }
 0x1bf   : > { %v1041_v23 = vmul.f32 %v3036_v56, %v1009_v55  ;;  %v803_v2 = vmul.f32 1.0614054, %v3126_v28  ;;  %v961_v38 = vadd.f32 -0.28449672, %v929_v53  ;;  %v992_v6 = vmul.f32 %v3031_v1, %v960_v3  ;;  %v3232_v55 = vld [vmem:[%s3392_s4] ss:$0 sm:$0xff] }
 0x1c0   : > { %v883_v47 = vadd.f32 1.4214138, %v851_v63  ;;  %v914_v50 = vmul.f32 %v3073_v9, %v882_v11  ;;  %v1200_v26 = vmul.f32 %v3024_v45, %v1040_v12  ;;  %v834_v54 = vadd.f32 -1.4531521, %v802_v57  ;;  %v3494_v3 = vld [vmem:[#allocation33_spill] sm:$0xff] }
 0x1c1   : > { %v1201_v7 = vmul.f32 %v3042_v48, %v1041_v23  ;;  %v835_v61 = vadd.f32 -1.4531521, %v803_v2  ;;  %v993_v27 = vmul.f32 %v3064_v32, %v961_v38  ;;  %v1024_v44 = vadd.f32 0.2548296, %v992_v6 }
 0x1c2   : > { %v915_v29 = vmul.f32 %v3101_v17, %v883_v47  ;;  %v946_v56 = vadd.f32 -0.28449672, %v914_v50  ;;  %vm1280_vm10 = vcmp.ge.f32.partialorder %v3491_v43, 0.0  ;;  %v1232_v10 = vsub.f32 1.0, %v1200_v26 }
 0x1c3   : > { %v1233_v24 = vsub.f32 1.0, %v1201_v7  ;;  %v866_v52 = vmul.f32 %v3081_v49, %v834_v54  ;;  %v867_v31 = vmul.f32 %v3126_v28, %v835_v61  ;;  %v1025_v22 = vadd.f32 0.2548296, %v993_v27  ;;  %v1507_v61 = vpop.f32.mrf.mxu1 }
 0x1c4   : > { %v1056_v45 = vmul.f32 %v3031_v1, %v1024_v44  ;;  %v947_v48 = vadd.f32 -0.28449672, %v915_v29  ;;  %v978_v46 = vmul.f32 %v3073_v9, %v946_v56  ;;  %vm1281_vm11 = vcmp.ge.f32.partialorder %v3492_v39, 0.0  ;;  %1569 = vmatmul.bf16.gmra.mxu3 %v1425_v30  ;;  %v1545_v1 = vpop.f32.mrf.mxu3  ;;  %v3495_v56 = vld [vmem:[#allocation17_spill] sm:$0xff] }
 0x1c5   : > { %v1296_v59 = vsub.f32 0.0, %v1232_v10  ;;  %v1297_v4 = vsub.f32 0.0, %v1233_v24  ;;  %v898_v37 = vadd.f32 1.4214138, %v866_v52  ;;  %v899_v16 = vadd.f32 1.4214138, %v867_v31 }
 0x1c6   : > { %v1057_v60 = vmul.f32 %v3064_v32, %v1025_v22  ;;  %v1216_v13 = vmul.f32 %v3493_v14, %v1056_v45  ;;  %v979_v58 = vmul.f32 %v3101_v17, %v947_v48  ;;  %v1010_v15 = vadd.f32 0.2548296, %v978_v46  ;;  %v3496_v45 = vld [vmem:[#allocation12_spill] sm:$0xff] }
 0x1c7   : > { %v1328_v20 = vsel %vm1264_vm8, %v1232_v10, %v1296_v59  ;;  %v1329_v62 = vsel %vm1265_vm9, %v1233_v24, %v1297_v4  ;;  %v930_v42 = vmul.f32 %v3081_v49, %v898_v37  ;;  %v931_v41 = vmul.f32 %v3126_v28, %v899_v16  ;;  %v3497_v4 = vld [vmem:[#allocation20_spill] sm:$0xff] }
 0x1c8   : > { %v1360_v35 = vadd.f32 1.0, %v1328_v20  ;;  %v1361_v8 = vadd.f32 1.0, %v1329_v62  ;;  %v1217_v32 = vmul.f32 %v3070_v5, %v1057_v60  ;;  %v1248_v36 = vsub.f32 1.0, %v1216_v13  ;;  %v3498_v13 = vld [vmem:[#allocation36_spill] sm:$0xff]  ;;  %v3499_v20 = vld [vmem:[#allocation13_spill] sm:$0xff]  ;;  %v3500_v62 = vld [vmem:[#allocation15_spill] sm:$0xff] }
 0x1c9   : > { %v1011_v57 = vadd.f32 0.2548296, %v979_v58  ;;  %v1042_v0 = vmul.f32 %v3073_v9, %v1010_v15  ;;  %v962_v25 = vadd.f32 -0.28449672, %v930_v42  ;;  %v963_v53 = vadd.f32 -0.28449672, %v931_v41 }
 0x1ca   : > { %v1392_v63 = vmul.f32 %v1360_v35, %v3494_v3  ;;  %v1393_v11 = vmul.f32 %v1361_v8, %v3108_v21  ;;  %v1249_v30 = vsub.f32 1.0, %v1217_v32  ;;  %v1312_v12 = vsub.f32 0.0, %v1248_v36  ;;  %v3501_v42 = vld [vmem:[#allocation16_spill] sm:$0xff] }
 0x1cb   : > { %v1043_v5 = vmul.f32 %v3101_v17, %v1011_v57  ;;  %v1202_v23 = vmul.f32 %v3091_v34, %v1042_v0  ;;  %v994_v2 = vmul.f32 %v3081_v49, %v962_v25  ;;  %v995_v38 = vmul.f32 %v3126_v28, %v963_v53  ;;  %v3502_v0 = vld [vmem:[#allocation14_spill] sm:$0xff] }
 0x1cc   : > { %v1418_v6 = vpack.c.bf16 %v1393_v11, %v1392_v63  ;;  %v1313_v47 = vsub.f32 0.0, %v1249_v30  ;;  %v1344_v9 = vsel %vm1280_vm10, %v1248_v36, %v1312_v12  ;;  %v1506_v50 = vadd.f32 %v3232_v55, %v1505_v19  ;;  %v1547_v29 = vpop.f32.mrf.mxu3  ;;  %v3503_v63 = vld [vmem:[#allocation18_spill] sm:$0xff] }
 0x1cd   : > { %v1376_v26 = vadd.f32 1.0, %v1344_v9  ;;  %v1203_v21 = vmul.f32 %v3104_v40, %v1043_v5  ;;  %v1234_v7 = vsub.f32 1.0, %v1202_v23  ;;  %v1026_v54 = vadd.f32 0.2548296, %v994_v2 }
 0x1ce   : > { %v1345_v34 = vsel %vm1281_vm11, %v1249_v30, %v1313_v47  ;;  %v1027_v17 = vadd.f32 0.2548296, %v995_v38  ;;  %1585 = vst [vmem:[%s3247_s25] sm:$0xff] %v1506_v50  ;;  %v1508_v27 = vadd.f32 %v3232_v55, %v1507_v61  ;;  %v1546_v44 = vadd.f32 %v3232_v55, %v1545_v1  ;;  %1534 = vmatmul.bf16.gmra.mxu1 %v1418_v6 }
 0x1cf   : > { %v609_v40 = vmul.f32 0.5, %v3495_v56  ;;  %v1377_v43 = vadd.f32 1.0, %v1345_v34  ;;  %v1235_v10 = vsub.f32 1.0, %v1203_v21  ;;  %v1298_v24 = vsub.f32 0.0, %v1234_v7 }
 0x1d0   : > { %v1058_v52 = vmul.f32 %v3081_v49, %v1026_v54  ;;  %v1059_v31 = vmul.f32 %v3126_v28, %v1027_v17  ;;  %1586 = vst [vmem:[%s3247_s25 + $0x8] sm:$0xff] %v1508_v27  ;;  %v1548_v22 = vadd.f32 %v3232_v55, %v1547_v29  ;;  %vm1266_vm12 = vcmp.ge.f32.partialorder %v3496_v45, 0.0 }
 0x1d1   : > { %v1408_v48 = vmul.f32 %v1376_v26, %v3046_v18  ;;  %v1409_v46 = vmul.f32 %v1377_v43, %v609_v40  ;;  %v1299_v39 = vsub.f32 0.0, %v1235_v10  ;;  %1601 = vst [vmem:[%s3247_s25 + $0x80] sm:$0xff] %v1546_v44  ;;  %vm1267_vm13 = vcmp.ge.f32.partialorder %v3057_v33, 0.0 }
 0x1d2   : > { %v1330_v59 = vsel %vm1266_vm12, %v1234_v7, %v1298_v24  ;;  %v1218_v37 = vmul.f32 %v3497_v4, %v1058_v52  ;;  %v1219_v16 = vmul.f32 %v3187_v51, %v1059_v31  ;;  %1602 = vst [vmem:[%s3247_s25 + $0x88] sm:$0xff] %v1548_v22  ;;  %v595_v58 = vmul.f32 0.5, %v3498_v13 }
 0x1d3   : > { %v1426_v49 = vpack.c.bf16 %v1409_v46, %v1408_v48  ;;  %v1331_v28 = vsel %vm1267_vm13, %v1235_v10, %v1299_v39  ;;  %v1362_v18 = vadd.f32 1.0, %v1330_v59  ;;  %v594_v33 = vmul.f32 0.5, %v3499_v20  ;;  %v1510_v36 = vpop.f32.mrf.mxu1 }
 0x1d4   : > { %v1363_v19 = vadd.f32 1.0, %v1331_v28  ;;  %v1250_v60 = vsub.f32 1.0, %v1218_v37  ;;  %v1251_v14 = vsub.f32 1.0, %v1219_v16  ;;  %vm1282_vm14 = vcmp.ge.f32.partialorder %v3500_v62, 0.0 }
 0x1d5   : > { %1574 = vmatmul.bf16.gmra.mxu3 %v1426_v49  ;;  %vm1283_vm15 = vcmp.ge.f32.partialorder %v3501_v42, 0.0  ;;  %v1394_v8 = vmul.f32 %v1362_v18, %v594_v33  ;;  %v1511_v57 = vadd.f32 %v3232_v55, %v1510_v36  ;;  %v611_v25 = vmul.f32 0.5, %v3502_v0 }
 0x1d6   : > { %v1314_v15 = vsub.f32 0.0, %v1250_v60  ;;  %v1315_v1 = vsub.f32 0.0, %v1251_v14  ;;  %v1395_v51 = vmul.f32 %v1363_v19, %v595_v58  ;;  %v610_v11 = vmul.f32 0.5, %v3503_v63 }
 0x1d7   : > { %1587 = vst [vmem:[%s3247_s25 + $0x10] sm:$0xff] %v1511_v57 }
 0x1d8   : > { %v1346_v41 = vsel %vm1282_vm14, %v1250_v60, %v1314_v15  ;;  %v1347_v35 = vsel %vm1283_vm15, %v1251_v14, %v1315_v1  ;;  %v1419_v53 = vpack.c.bf16 %v1395_v51, %v1394_v8 }
 0x1d9   : > { %v1379_v32 = vadd.f32 1.0, %v1347_v35  ;;  %v1378_v3 = vadd.f32 1.0, %v1346_v41 }
 0x1db   : > { %v1411_v30 = vmul.f32 %v1379_v32, %v611_v25  ;;  %v1410_v12 = vmul.f32 %v1378_v3, %v610_v11  ;;  %v1512_v23 = vpop.f32.mrf.mxu1 }
 0x1dc   : > { %v1513_v2 = vadd.f32 %v3232_v55, %v1512_v23 }
 0x1dd   : > { %v1427_v5 = vpack.c.bf16 %v1411_v30, %v1410_v12 }
 0x1de   : > { %1539 = vmatmul.bf16.gmra.mxu1 %v1419_v53  ;;  %1588 = vst [vmem:[%s3247_s25 + $0x18] sm:$0xff] %v1513_v2 }
 0x1e1   : > { %v1550_v38 = vpop.f32.mrf.mxu3 }
 0x1e2   : > { %v1551_v6 = vadd.f32 %v3232_v55, %v1550_v38 }
 0x1e4   : > { %1603 = vst [vmem:[%s3247_s25 + $0x90] sm:$0xff] %v1551_v6 }
 0x1e5   : > { %1579 = vmatmul.bf16.gmra.mxu3 %v1427_v5 }
 0x1e9   : > { %v1552_v47 = vpop.f32.mrf.mxu3 }
 0x1ea   : > { %v1553_v9 = vadd.f32 %v3232_v55, %v1552_v47 }
 0x1ec   : > { %1604 = vst [vmem:[%s3247_s25 + $0x98] sm:$0xff] %v1553_v9 }
 0x1ef   : > { %v1515_v50 = vpop.f32.mrf.mxu1 }
 0x1f0   : > { %v1516_v26 = vadd.f32 %v3232_v55, %v1515_v50 }
 0x1f2   : > { %1589 = vst [vmem:[%s3247_s25 + $0x20] sm:$0xff] %v1516_v26 }
 0x1f7   : > { %v1517_v21 = vpop.f32.mrf.mxu1 }
 0x1f8   : > { %v1518_v7 = vadd.f32 %v3232_v55, %v1517_v21 }
 0x1fa   : > { %1590 = vst [vmem:[%s3247_s25 + $0x28] sm:$0xff] %v1518_v7 }
 0x1fe   : > { %v1555_v54 = vpop.f32.mrf.mxu3 }
 0x1ff   : > { %v1556_v61 = vadd.f32 %v3232_v55, %v1555_v54 }
 0x201   : > { %1605 = vst [vmem:[%s3247_s25 + $0xa0] sm:$0xff] %v1556_v61 }
 0x206   : > { %v1557_v34 = vpop.f32.mrf.mxu3 }
 0x207   : > { %v1558_v17 = vadd.f32 %v3232_v55, %v1557_v34 }
 0x209   : > { %1606 = vst [vmem:[%s3247_s25 + $0xa8] sm:$0xff] %v1558_v17 }
 0x20b   : > { %v1520_v27 = vpop.f32.mrf.mxu1 }
 0x20c   : > { %v1521_v44 = vadd.f32 %v3232_v55, %v1520_v27 }
 0x20e   : > { %1591 = vst [vmem:[%s3247_s25 + $0x30] sm:$0xff] %v1521_v44 }
 0x213   : > { %v1522_v29 = vpop.f32.mrf.mxu1 }
 0x214   : > { %v1523_v56 = vadd.f32 %v3232_v55, %v1522_v29 }
 0x216   : > { %1592 = vst [vmem:[%s3247_s25 + $0x38] sm:$0xff] %v1523_v56 }
 0x21b   : > { %v1560_v40 = vpop.f32.mrf.mxu3 }
 0x21c   : > { %v1561_v43 = vadd.f32 %v3232_v55, %v1560_v40 }
 0x21e   : > { %1607 = vst [vmem:[%s3247_s25 + $0xb0] sm:$0xff] %v1561_v43 }
 0x223   : > { %v1562_v10 = vpop.f32.mrf.mxu3 }
 0x224   : > { %v1563_v24 = vadd.f32 %v3232_v55, %v1562_v10 }
 0x226   : > { %1608 = vst [vmem:[%s3247_s25 + $0xb8] sm:$0xff] %v1563_v24 }
 0x22a   : > { %v1525_v52 = vpop.f32.mrf.mxu1 }
 0x22b   : > { %v1526_v31 = vadd.f32 %v3232_v55, %v1525_v52 }
 0x22d   : > { %1593 = vst [vmem:[%s3247_s25 + $0x40] sm:$0xff] %v1526_v31 }
 0x232   : > { %v1527_v22 = vpop.f32.mrf.mxu1 }
 0x233   : > { %v1528_v45 = vadd.f32 %v3232_v55, %v1527_v22 }
 0x235   : > { %1594 = vst [vmem:[%s3247_s25 + $0x48] sm:$0xff] %v1528_v45 }
 0x237   : > { %v1565_v48 = vpop.f32.mrf.mxu3 }
 0x238   : > { %v1566_v46 = vadd.f32 %v3232_v55, %v1565_v48 }
 0x23a   : > { %1609 = vst [vmem:[%s3247_s25 + $0xc0] sm:$0xff] %v1566_v46  ;;  %v1530_v39 = vpop.f32.mrf.mxu1 }
 0x23b   : > { %v1531_v59 = vadd.f32 %v3232_v55, %v1530_v39 }
 0x23d   : > { %1595 = vst [vmem:[%s3247_s25 + $0x50] sm:$0xff] %v1531_v59 }
 0x23f   : > { %v1567_v4 = vpop.f32.mrf.mxu3 }
 0x240   : > { %v1568_v37 = vadd.f32 %v3232_v55, %v1567_v4 }
 0x242   : > { %1610 = vst [vmem:[%s3247_s25 + $0xc8] sm:$0xff] %v1568_v37  ;;  %v1532_v16 = vpop.f32.mrf.mxu1 }
 0x243   : > { %v1533_v49 = vadd.f32 %v3232_v55, %v1532_v16 }
 0x245   : > { %1596 = vst [vmem:[%s3247_s25 + $0x58] sm:$0xff] %v1533_v49 }
 0x247   : > { %v1570_v28 = vpop.f32.mrf.mxu3 }
 0x248   : > { %v1571_v19 = vadd.f32 %v3232_v55, %v1570_v28 }
 0x24a   : > { %1611 = vst [vmem:[%s3247_s25 + $0xd0] sm:$0xff] %v1571_v19 }
 0x24b   : > { %v1535_v60 = vpop.f32.mrf.mxu1 }
 0x24c   : > { %v1536_v14 = vadd.f32 %v3232_v55, %v1535_v60 }
 0x24e   : > { %1597 = vst [vmem:[%s3247_s25 + $0x60] sm:$0xff] %v1536_v14 }
 0x24f   : > { %v1572_v13 = vpop.f32.mrf.mxu3 }
 0x250   : > { %v1573_v58 = vadd.f32 %v3232_v55, %v1572_v13 }
 0x252   : > { %1612 = vst [vmem:[%s3247_s25 + $0xd8] sm:$0xff] %v1573_v58 }
 0x253   : > { %v1537_v18 = vpop.f32.mrf.mxu1 }
 0x254   : > { %v1538_v15 = vadd.f32 %v3232_v55, %v1537_v18 }
 0x256   : > { %1598 = vst [vmem:[%s3247_s25 + $0x68] sm:$0xff] %v1538_v15 }
 0x258   : > { %v1575_v1 = vpop.f32.mrf.mxu3 }
 0x259   : > { %v1576_v20 = vadd.f32 %v3232_v55, %v1575_v1 }
 0x25b   : > { %1613 = vst [vmem:[%s3247_s25 + $0xe0] sm:$0xff] %v1576_v20  ;;  %v1540_v33 = vpop.f32.mrf.mxu1 }
 0x25c   : > { %v1541_v62 = vadd.f32 %v3232_v55, %v1540_v33 }
 0x25e   : > { %1599 = vst [vmem:[%s3247_s25 + $0x70] sm:$0xff] %v1541_v62 }
 0x260   : > { %v1577_v42 = vpop.f32.mrf.mxu3 }
 0x261   : > { %v1578_v51 = vadd.f32 %v3232_v55, %v1577_v42 }
 0x263   : > { %1614 = vst [vmem:[%s3247_s25 + $0xe8] sm:$0xff] %v1578_v51  ;;  %v1542_v41 = vpop.f32.mrf.mxu1 }
 0x264   : > { %v1543_v35 = vadd.f32 %v3232_v55, %v1542_v41 }
 0x266   : > { %1600 = vst [vmem:[%s3247_s25 + $0x78] sm:$0xff] %v1543_v35 }
 0x268   : > { %v1580_v8 = vpop.f32.mrf.mxu3 }
 0x269   : > { %v1581_v32 = vadd.f32 %v3232_v55, %v1580_v8 }
 0x26b   : > { %1615 = vst [vmem:[%s3247_s25 + $0xf0] sm:$0xff] %v1581_v32 }
 0x26f   : > { %1624 = sbr.rel (!%p2407_p11) target bundleno = 659 (0x293), region = 56 }
 0x270   : > { %v1582_v36 = vpop.f32.mrf.mxu3 }
 0x271   : > { %v1583_v57 = vadd.f32 %v3232_v55, %v1582_v36 }
 0x273   : > { %1616 = vst [vmem:[%s3247_s25 + $0xf8] sm:$0xff] %v1583_v57 }
 0x274   : > { %s3513_s12 = smov (!%p1627_p6, %s1626_s12), 32 }
 0x275   : > { %s1879_s13 = sshll.u32 %s3513_s12, 3 }
 0x276   : > { %s1630_s15 = ssub.s32 256, %s1879_s13 }
 0x277   : > { %s1631_s9 = sshll.u32 %s1630_s15, 4 }
 0x278   : > { %1632 = vsyncadd %s1618_s17, %s1631_s9  ;;  %p3335_p13 = scmp.ne.s32.totalorder %s1879_s13, 0  ;;  %s1919_s10 = sshll.u32 %s2376_s22, 8 }
 0x279   : > { %s1635_s7 = scalar_lea.hbm %s3393_s5, %s1919_s10  ;;  %s1637_s11 = sshll.u32 %s3247_s25, 4  ;;  %s3344_s11 = int_to_ptr.vmem [resolvable:$true] %s1637_s11 }
 0x27a   : > { %s1639_s14 = sshll.u32 %s1635_s7, 4  ;;  %s1883_s28 = sshll.u32 %s3513_s12, 7  ;;  %s3346_s14 = int_to_ptr.hbm [resolvable:$true] %s1639_s14 }
 0x27b   : > { %s2232_s8 = sshra.s32 %s3344_s11, 4  ;;  %s2234_s26 = sshrl.u32 %s1883_s28, 4  ;;  %s2233_s8 = int_to_ptr.vmem [resolvable:$true] %s2232_s8 }
 0x27c   : > { %s2239_s16 = scalar_lea.vmem %s2233_s8, %s2234_s26  ;;  %s2322_s22 = smov [#allocation8]  }
 0x27d   : > { %p2240_p11 = scmp.ne.s32.totalorder %s2233_s8, %s2239_s16  ;;  %s2243_s13 = scalar_lea.vmem %s2322_s22, 512 }
 0x27e   : > { %p2245_p10 = scmp.lt.s32.totalorder %s2243_s13, %s2239_s16 }
 0x27f   : > { %p2241_p5 = pnand %p2240_p11, %p3335_p13 }
 0x281   : > { %p2242_p9 = pneg %p2241_p5 }
 0x283   : > { %p2247_p1 = pnand %p2245_p10, %p2242_p9 }
 0x285   : > { %2250 = shalt.err (!%p2247_p1)
}
 0x286   : > { %s2251_s25 = sshra.s32 %s3346_s14, 4  ;;  %s2262_s23 = scalar_lea.hbm %s3393_s5, 944  ;;  %s2252_s25 = int_to_ptr.hbm [resolvable:$true] %s2251_s25 }
 0x287   : > { %s2258_s15 = scalar_lea.hbm %s2252_s25, %s2234_s26  ;;  %p2263_p7 = scmp.lt.s32.totalorder %s2252_s25, %s3393_s5 }
 0x288   : > { %p2259_p0 = scmp.ne.s32.totalorder %s2252_s25, %s2258_s15  ;;  %p2264_p8 = scmp.lt.s32.totalorder %s2262_s23, %s2258_s15 }
 0x28a   : > { %p2260_p2 = pnand %p2259_p0, %p3335_p13  ;;  %p2265_p4 = por %p2264_p8, %p2263_p7 }
 0x28c   : > { %p2261_p3 = pneg %p2260_p2 }
 0x28e   : > { %p2266_p12 = pnand %p2265_p4, %p2261_p3 }
 0x290   : > { %2269 = shalt.err (!%p2266_p12)
}
 0x291   : > { %s2323_s8 = smov 128   ;;  %s2324_s26 = smov 8  }
 0x292   : > { %1645 = dma.vmem_to_hbm [thread:$0]  (%p3335_p13), %s3344_s11, %s1883_s28, %s3346_s14, %s1618_s17, %s2323_s8, %s2323_s8, %s2324_s26  }
 0x293 PF: > { %p1961_p6 = scmp.ge.s32.totalorder %s2313_s21, 2  ;;  %s1654_s16 = sand.u32 1, %s2301_s18  }
 0x294   : > { %p3505_p11 = scmp.ne.s32.totalorder %s3431_s6, 0  ;;  %s1655_s22 = scalar_lea.sflag [#allocation4], %s1654_s16 }
 0x296   : > { %p1954_p5 = pnand %p1961_p6, %p3505_p11 }
 0x298   : > { %p1955_p9 = pneg %p1954_p5 }
 0x29a   : > { %2296 = dma.done.wait (%p1955_p9), %s1655_s22, 4096  }
 0x29b   : > { %2298 = vsyncadd (%p1955_p9), %s1655_s22, 4294963200  ;;  %p19_p10 = scmp.ge.s32.totalorder %s2380_s24, 6   ;;  %s3506_s18 = smov %s2305_s19 }
 0x29c   : > { %s3507_s19 = smov %s2309_s20  ;;  %s3508_s20 = smov %s2392_s27 }
 0x29d   : > { %s3509_s21 = smov %s2380_s24  ;;  %21 = sbr.rel (!%p19_p10) target bundleno = 8 (0x8), region = 93 }
 0x2a2   :  { %1661 = vsyncpa [#allocation3], 1 }
 0x2a3   :  { %1663 = vsyncpa [#allocation3 + $0x1], 1 }
 0x2a4   :  { %1664 = vsyncpa [#allocation6], 1 }
 0x2a5   :  { %1665 = vsyncpa [#allocation4], 1 }
 0x2a6   :  { %1667 = vsyncpa [#allocation4 + $0x1], 1 }

</bundles_post_ra>
